<compile_context>
chip_gen: v7x
topology: tpu7x:2x2x1
jax: 0.10.0
libtpu: 0.0.40
codegen_flags: <defaults>
</compile_context>

<pallas_src>
import functools

import jax
import jax.numpy as jnp
from jax.experimental import pallas as pl
from jax.experimental.pallas import tpu as pltpu

EPS = 1e-5  # nn.BatchNorm1d default eps


def _round_up(x, m):
    return ((x + m - 1) // m) * m


def _bn_rows(y, gamma, beta):
    """Train-mode BatchNorm over the row axis (single sum / sum-of-squares pass)."""
    inv_n = 1.0 / y.shape[0]
    mean = jnp.sum(y, axis=0, keepdims=True) * inv_n
    var = jnp.maximum(jnp.sum(y * y, axis=0, keepdims=True) * inv_n - mean * mean, 0.0)
    return (y - mean) * jax.lax.rsqrt(var + EPS) * gamma + beta


def _dot_bf16(x_f32, w_bf16):
    """bf16 x bf16 MXU matmul with f32 accumulation (reference helper)."""
    return jnp.dot(x_f32.astype(jnp.bfloat16), w_bf16,
                   preferred_element_type=jnp.float32)


# -----------------------------------------------------------------------------
# Fused streaming kernel (single pallas_call, 4-phase grid).
# -----------------------------------------------------------------------------
def _alignment_kernel(pts_ref,
                      w1_ref, b1_ref, g1_ref, t1_ref,
                      w2_ref, b2_ref, g2_ref, t2_ref,
                      w3_ref, b3_ref, g3_ref, t3_ref,
                      w4_ref, b4_ref, g4_ref, t4_ref,
                      w5_ref, b5_ref, g5_ref, t5_ref,
                      w6_ref, b6_ref,
                      o_ref,
                      s1, q1, s2, q2, s3, q3,
                      sc1, sh1, sc2, sh2,
                      mx, mn, tmat,
                      *, batch, npts, npts_pad, tile, k):
    phase = pl.program_id(0)
    b = pl.program_id(1)
    t = pl.program_id(2)
    n_tiles = npts_pad // tile
    first = (phase == 0) & (b == 0) & (t == 0)
    last_bt = (b == batch - 1) & (t == n_tiles - 1)
    inv_n = 1.0 / float(batch * npts)        # counts of VALID rows only (static)

    # Row-validity mask for padded points (only traced when padding exists).
    needs_mask = npts_pad != npts
    if needs_mask:
        rowid = jax.lax.broadcasted_iota(jnp.int32, (tile, 1), 0) + t * tile
        maskf = (rowid < npts).astype(jnp.float32)       # (tile, 1) 0/1
    else:
        maskf = None

    def stats(h):
        """Masked per-channel sum / sum-of-squares over the tile's rows."""
        if maskf is None:
            return (jnp.sum(h, axis=0, keepdims=True),
                    jnp.sum(h * h, axis=0, keepdims=True))
        hm = h * maskf
        return (jnp.sum(hm, axis=0, keepdims=True),
                jnp.sum(hm * h, axis=0, keepdims=True))

    # --- building blocks of the per-point chain (recomputed per phase) --------
    def conv1(x):
        # Cin = k = 3: unrolled broadcast-MAC on the VPU (no padded MXU pass).
        w1 = w1_ref[...]
        h = x[:, 0:1] * w1[0:1, :]
        for kk in range(1, k):
            h = h + x[:, kk:kk + 1] * w1[kk:kk + 1, :]
        return h + b1_ref[...]

    def conv2_in(h1):
        # bn1 affine + ReLU, cast once to bf16 for the MXU (halves live VMEM).
        return jnp.maximum(h1 * sc1[...] + sh1[...], 0.0).astype(jnp.bfloat16)

    def conv2(a1):
        return jnp.dot(a1, w2_ref[...], preferred_element_type=jnp.float32) + b2_ref[...]

    def conv3_in(h2):
        return jnp.maximum(h2 * sc2[...] + sh2[...], 0.0).astype(jnp.bfloat16)

    def conv3(a2):
        return jnp.dot(a2, w3_ref[...], preferred_element_type=jnp.float32) + b3_ref[...]

    def finalize_bn(s_ref, q_ref, g_ref, beta_ref, sc_ref, sh_ref):
        mean = s_ref[...] * inv_n
        var = jnp.maximum(q_ref[...] * inv_n - mean * mean, 0.0)
        scale = g_ref[...] * jax.lax.rsqrt(var + EPS)
        sc_ref[...] = scale
        sh_ref[...] = beta_ref[...] - mean * scale

    # --- init accumulators at the very first grid step -----------------------
    @pl.when(first)
    def _init():
        s1[...] = jnp.zeros_like(s1); q1[...] = jnp.zeros_like(q1)
        s2[...] = jnp.zeros_like(s2); q2[...] = jnp.zeros_like(q2)
        s3[...] = jnp.zeros_like(s3); q3[...] = jnp.zeros_like(q3)
        mx[...] = jnp.full_like(mx, -jnp.inf)
        mn[...] = jnp.full_like(mn, jnp.inf)

    # --- phase 0: conv1, accumulate bn1 batch stats ---------------------------
    @pl.when(phase == 0)
    def _p0():
        su, sq = stats(conv1(pts_ref[...]))
        s1[...] += su
        q1[...] += sq

    @pl.when((phase == 0) & last_bt)
    def _p0_fin():
        finalize_bn(s1, q1, g1_ref, t1_ref, sc1, sh1)

    # --- phase 1: conv1->bn1->relu->conv2, accumulate bn2 stats ---------------
    @pl.when(phase == 1)
    def _p1():
        h2 = conv2(conv2_in(conv1(pts_ref[...])))
        su, sq = stats(h2)
        s2[...] += su
        q2[...] += sq

    @pl.when((phase == 1) & last_bt)
    def _p1_fin():
        finalize_bn(s2, q2, g2_ref, t2_ref, sc2, sh2)

    # --- phase 2: full chain to conv3; bn3 stats + per-batch max/min ----------
    @pl.when(phase == 2)
    def _p2():
        h3 = conv3(conv3_in(conv2(conv2_in(conv1(pts_ref[...])))))
        su, sq = stats(h3)
        s3[...] += su
        q3[...] += sq
        if maskf is None:
            hmax = jnp.max(h3, axis=0, keepdims=True)
            hmin = jnp.min(h3, axis=0, keepdims=True)
        else:
            valid = maskf > 0.0
            hmax = jnp.max(jnp.where(valid, h3, -jnp.inf), axis=0, keepdims=True)
            hmin = jnp.min(jnp.where(valid, h3, jnp.inf), axis=0, keepdims=True)
        mx[pl.ds(b, 1), :] = jnp.maximum(mx[pl.ds(b, 1), :], hmax)
        mn[pl.ds(b, 1), :] = jnp.minimum(mn[pl.ds(b, 1), :], hmin)

    # --- end of phase 2: finalize bn3, pool, fc head -> per-batch transform T -
    @pl.when((phase == 2) & last_bt)
    def _head():
        mean3 = s3[...] * inv_n
        var3 = jnp.maximum(q3[...] * inv_n - mean3 * mean3, 0.0)
        scale3 = g3_ref[...] * jax.lax.rsqrt(var3 + EPS)
        shift3 = t3_ref[...] - mean3 * scale3
        # max over rows of (x*s + t) == (s>=0 ? max_x : min_x)*s + t  (exact)
        pooled = jnp.where(scale3 >= 0.0, mx[...], mn[...]) * scale3 + shift3  # (B,1024)

        g = jnp.dot(pooled.astype(jnp.bfloat16), w4_ref[...],
                    preferred_element_type=jnp.float32) + b4_ref[...]
        g = jnp.maximum(_bn_rows(g, g4_ref[...], t4_ref[...]), 0.0)            # (B,512)
        g = jnp.dot(g.astype(jnp.bfloat16), w5_ref[...],
                    preferred_element_type=jnp.float32) + b5_ref[...]
        g = jnp.maximum(_bn_rows(g, g5_ref[...], t5_ref[...]), 0.0)            # (B,256)
        tmat[...] = jnp.dot(g, w6_ref[...],
                            preferred_element_type=jnp.float32) + b6_ref[...]  # (B,9)

    # --- phase 3: out tile = pts + pts @ T[b]  (identity folded as pts itself) -
    @pl.when(phase == 3)
    def _p3():
        pts = pts_ref[...]                                     # (tile, k)
        acc = pts                                              # identity contribution
        for kk in range(k):
            trow = tmat[pl.ds(b, 1), kk * k:(kk + 1) * k]      # (1, k) = T[b, kk, :]
            acc = acc + pts[:, kk:kk + 1] * trow
        o_ref[...] = acc


def alignment_forward(p, points, *, tile_pts=None):
    batch, npts, k = points.shape
    assert k == 3

    # Row-tile sizing: multiple of 8 sublanes; cap at 512 rows (keeps the
    # conv3 (tile,256)@(256,1024) bf16 matmul MXU-friendly while staying far
    # under the 32 MiB scoped-VMEM budget on every generation, incl. v7x).
    if tile_pts is None:
        tile_pts = min(512, _round_up(npts, 8))
    tile_pts = max(8, _round_up(tile_pts, 8))
    npts_pad = _round_up(npts, tile_pts)
    n_tiles = npts_pad // tile_pts

    pts = points.astype(jnp.float32)
    if npts_pad != npts:
        pts = jnp.pad(pts, ((0, 0), (0, npts_pad - npts), (0, 0)))

    def row(v):  # bias / gamma / beta as (1, C) for in-kernel broadcasting
        return v.reshape(1, -1)

    args = (
        pts,
        p["c1_w"], row(p["c1_b"]), row(p["bn1_g"]), row(p["bn1_b"]),
        p["c2_w"], row(p["c2_b"]), row(p["bn2_g"]), row(p["bn2_b"]),
        p["c3_w"], row(p["c3_b"]), row(p["bn3_g"]), row(p["bn3_b"]),
        p["fc1_w"], row(p["fc1_b"]), row(p["bn4_g"]), row(p["bn4_b"]),
        p["fc2_w"], row(p["fc2_b"]), row(p["bn5_g"]), row(p["bn5_b"]),
        p["fc3_w"], row(p["fc3_b"]),
    )

    # Points / output: tiled per (batch, point-tile); batch dim squeezed.
    pts_spec = pl.BlockSpec((None, tile_pts, k), lambda ph, bb, tt: (bb, tt, 0))
    out_spec = pl.BlockSpec((None, tile_pts, k), lambda ph, bb, tt: (bb, tt, 0))

    # Weights / BN params: full-array blocks, constant index_map -> DMA'd once,
    # resident in VMEM across all grid steps.
    def resident(arr):
        nd = arr.ndim
        return pl.BlockSpec(arr.shape, lambda ph, bb, tt, _nd=nd: (0,) * _nd)

    in_specs = [pts_spec] + [resident(a) for a in args[1:]]

    scratch_shapes = [
        pltpu.VMEM((1, 128), jnp.float32), pltpu.VMEM((1, 128), jnp.float32),    # s1, q1
        pltpu.VMEM((1, 256), jnp.float32), pltpu.VMEM((1, 256), jnp.float32),    # s2, q2
        pltpu.VMEM((1, 1024), jnp.float32), pltpu.VMEM((1, 1024), jnp.float32),  # s3, q3
        pltpu.VMEM((1, 128), jnp.float32), pltpu.VMEM((1, 128), jnp.float32),    # sc1, sh1
        pltpu.VMEM((1, 256), jnp.float32), pltpu.VMEM((1, 256), jnp.float32),    # sc2, sh2
        pltpu.VMEM((batch, 1024), jnp.float32),                                  # per-batch max
        pltpu.VMEM((batch, 1024), jnp.float32),                                  # per-batch min
        pltpu.VMEM((batch, k * k), jnp.float32),                                 # transforms T
    ]

    # Advisory cost estimate for XLA's scheduler around the custom call.
    rows = batch * npts_pad
    flops = int(2 * rows * (3 * k * 128 + 2 * 128 * 256 + 256 * 1024)   # streamed convs (+recompute)
                + 2 * batch * (1024 * 512 + 512 * 256 + 256 * k * k)    # fc head
                + 2 * rows * k * k)                                     # final bmm
    weight_bytes = int(sum(int(a.size) * a.dtype.itemsize for a in args[1:]))
    bytes_accessed = int(weight_bytes + 4 * rows * k * 4 + rows * k * 4)

    kern = functools.partial(_alignment_kernel, batch=batch, npts=npts,
                             npts_pad=npts_pad, tile=tile_pts, k=k)
    out = pl.pallas_call(
        kern,
        out_shape=jax.ShapeDtypeStruct((batch, npts_pad, k), jnp.float32),
        grid_spec=pltpu.PrefetchScalarGridSpec(
            num_scalar_prefetch=0,
            grid=(4, batch, n_tiles),
            in_specs=in_specs,
            out_specs=out_spec,
            scratch_shapes=scratch_shapes),
        compiler_params=pltpu.CompilerParams(
            # Global BN-stat accumulators make every axis sequential.
            dimension_semantics=("arbitrary", "arbitrary", "arbitrary"),
            # Plenty for tile_pts<=512 (weights ~2 MiB resident + ~8 MiB tiles);
            # safe on all generations including v7x's 64 MiB VMEM.
            vmem_limit_bytes=32 << 20),
        cost_estimate=pl.CostEstimate(flops=flops, transcendentals=2176,
                                      bytes_accessed=bytes_accessed),
    )(*args)
    return out[:, :npts, :]


# -----------------------------------------------------------------------------
# Deterministic parameters (shapes follow the module __init__; big matrices bf16)
# -----------------------------------------------------------------------------
def init_params(key):
    p = {}
    keys = iter(jax.random.split(key, 16))

    def dense(name, cin, cout, *, wdtype=jnp.float32):
        kw, kb = jax.random.split(next(keys))
        lim = 1.0 / (cin ** 0.5)
        p[name + "_w"] = jax.random.uniform(kw, (cin, cout), jnp.float32, -lim, lim).astype(wdtype)
        p[name + "_b"] = jax.random.uniform(kb, (cout,), jnp.float32, -lim, lim)

    def bn(name, c):
        p[name + "_g"] = jnp.ones((c,), jnp.float32)
        p[name + "_b"] = jnp.zeros((c,), jnp.float32)

    dense("c1", 3, 128)                          ; bn("bn1", 128)
    dense("c2", 128, 256,  wdtype=jnp.bfloat16)  ; bn("bn2", 256)
    dense("c3", 256, 1024, wdtype=jnp.bfloat16)  ; bn("bn3", 1024)
    dense("fc1", 1024, 512, wdtype=jnp.bfloat16) ; bn("bn4", 512)
    dense("fc2", 512, 256,  wdtype=jnp.bfloat16) ; bn("bn5", 256)
    dense("fc3", 256, 9)
    return p


# -----------------------------------------------------------------------------
# Pure-jnp reference (mirrors kernel math, incl. bf16 weight/activation casts)
# -----------------------------------------------------------------------------
def alignment_reference(p, points):
    batch, npts, k = points.shape
    hi = jax.lax.Precision.HIGHEST
    x = points.reshape(batch * npts, k).astype(jnp.float32)

    h = jnp.dot(x, p["c1_w"], precision=hi, preferred_element_type=jnp.float32) + p["c1_b"]
    h = jnp.maximum(_bn_rows(h, p["bn1_g"], p["bn1_b"]), 0.0)
    h = jnp.maximum(_bn_rows(_dot_bf16(h, p["c2_w"]) + p["c2_b"], p["bn2_g"], p["bn2_b"]), 0.0)
    h = _bn_rows(_dot_bf16(h, p["c3_w"]) + p["c3_b"], p["bn3_g"], p["bn3_b"])
    g = jnp.max(h.reshape(batch, npts, -1), axis=1)
    g = jnp.maximum(_bn_rows(_dot_bf16(g, p["fc1_w"]) + p["fc1_b"], p["bn4_g"], p["bn4_b"]), 0.0)
    g = jnp.maximum(_bn_rows(_dot_bf16(g, p["fc2_w"]) + p["fc2_b"], p["bn5_g"], p["bn5_b"]), 0.0)
    t = jnp.dot(g, p["fc3_w"], precision=hi, preferred_element_type=jnp.float32) + p["fc3_b"]
    T = t.reshape(batch, k, k) + jnp.eye(k, dtype=jnp.float32)
    return jnp.einsum("bnk,bkj->bnj", points.astype(jnp.float32), T, precision=hi)


# -----------------------------------------------------------------------------
if __name__ == "__main__":
    key = jax.random.PRNGKey(0)
    kp, kx = jax.random.split(key)

    BATCH, N_POINTS, K = 2, 32, 3
    params = init_params(kp)
    points = jax.random.normal(kx, (BATCH, N_POINTS, K), dtype=jnp.float32)

    # tile_pts=16 -> 2 row tiles per batch: exercises the streaming grid path.
    fwd = jax.jit(functools.partial(alignment_forward, tile_pts=16))

    out = jax.block_until_ready(fwd(params, points))
    assert out.shape == (BATCH, N_POINTS, K), out.shape
    assert bool(jnp.all(jnp.isfinite(out)))

    # Loose tolerance: train-mode BN over few rows amplifies tiny bf16 /
    # accumulation-order differences between the kernel and the jnp reference.
    ref = jax.block_until_ready(jax.jit(alignment_reference)(params, points))
    assert bool(jnp.allclose(out, ref, rtol=1e-1, atol=1e-1)), \
        float(jnp.max(jnp.abs(out - ref)))

    # Ragged point count (24 -> padded to 32): exercises in-kernel row masking
    # of the BN statistics and the max/min pooling.
    points2 = jax.random.normal(jax.random.PRNGKey(1), (BATCH, 24, K), dtype=jnp.float32)
    out2 = jax.block_until_ready(fwd(params, points2))
    assert out2.shape == (BATCH, 24, K), out2.shape
    ref2 = jax.block_until_ready(jax.jit(alignment_reference)(params, points2))
    assert bool(jnp.allclose(out2, ref2, rtol=1e-1, atol=1e-1)), \
        float(jnp.max(jnp.abs(out2 - ref2)))

    print("KERNEL_OK")
</pallas_src>

<mosaic_0001>
module attributes {stable_mosaic.version = 11 : i64} {
  func.func @_alignment_kernel(%arg0: i32, %arg1: i32, %arg2: i32, %arg3: memref<1x16x3xf32, #tpu.memory_space<vmem>>, %arg4: memref<3x128xf32, #tpu.memory_space<vmem>>, %arg5: memref<1x128xf32, #tpu.memory_space<vmem>>, %arg6: memref<1x128xf32, #tpu.memory_space<vmem>>, %arg7: memref<1x128xf32, #tpu.memory_space<vmem>>, %arg8: memref<128x256xbf16, #tpu.memory_space<vmem>>, %arg9: memref<1x256xf32, #tpu.memory_space<vmem>>, %arg10: memref<1x256xf32, #tpu.memory_space<vmem>>, %arg11: memref<1x256xf32, #tpu.memory_space<vmem>>, %arg12: memref<256x1024xbf16, #tpu.memory_space<vmem>>, %arg13: memref<1x1024xf32, #tpu.memory_space<vmem>>, %arg14: memref<1x1024xf32, #tpu.memory_space<vmem>>, %arg15: memref<1x1024xf32, #tpu.memory_space<vmem>>, %arg16: memref<1024x512xbf16, #tpu.memory_space<vmem>>, %arg17: memref<1x512xf32, #tpu.memory_space<vmem>>, %arg18: memref<1x512xf32, #tpu.memory_space<vmem>>, %arg19: memref<1x512xf32, #tpu.memory_space<vmem>>, %arg20: memref<512x256xbf16, #tpu.memory_space<vmem>>, %arg21: memref<1x256xf32, #tpu.memory_space<vmem>>, %arg22: memref<1x256xf32, #tpu.memory_space<vmem>>, %arg23: memref<1x256xf32, #tpu.memory_space<vmem>>, %arg24: memref<256x9xf32, #tpu.memory_space<vmem>>, %arg25: memref<1x9xf32, #tpu.memory_space<vmem>>, %arg26: memref<1x16x3xf32, #tpu.memory_space<vmem>>, %arg27: memref<1x128xf32, #tpu.memory_space<vmem>>, %arg28: memref<1x128xf32, #tpu.memory_space<vmem>>, %arg29: memref<1x256xf32, #tpu.memory_space<vmem>>, %arg30: memref<1x256xf32, #tpu.memory_space<vmem>>, %arg31: memref<1x1024xf32, #tpu.memory_space<vmem>>, %arg32: memref<1x1024xf32, #tpu.memory_space<vmem>>, %arg33: memref<1x128xf32, #tpu.memory_space<vmem>>, %arg34: memref<1x128xf32, #tpu.memory_space<vmem>>, %arg35: memref<1x256xf32, #tpu.memory_space<vmem>>, %arg36: memref<1x256xf32, #tpu.memory_space<vmem>>, %arg37: memref<2x1024xf32, #tpu.memory_space<vmem>>, %arg38: memref<2x1024xf32, #tpu.memory_space<vmem>>, %arg39: memref<2x9xf32, #tpu.memory_space<vmem>>) attributes {dimension_semantics = [#tpu.dimension_semantics<arbitrary>, #tpu.dimension_semantics<arbitrary>, #tpu.dimension_semantics<arbitrary>], iteration_bounds = array<i64: 4, 2, 2>, scalar_prefetch = 0 : i64, scratch_operands = 13 : i64, tpu.core_type = #tpu.core_type<tc>, window_params = [{transform_indices = @transform_0, window_bounds = array<i64: 1, 16, 3>}, {pipeline_mode = #tpu.pipeline_mode<synchronous>, transform_indices = @transform_1, window_bounds = array<i64: 3, 128>}, {pipeline_mode = #tpu.pipeline_mode<synchronous>, transform_indices = @transform_2, window_bounds = array<i64: 1, 128>}, {pipeline_mode = #tpu.pipeline_mode<synchronous>, transform_indices = @transform_3, window_bounds = array<i64: 1, 128>}, {pipeline_mode = #tpu.pipeline_mode<synchronous>, transform_indices = @transform_4, window_bounds = array<i64: 1, 128>}, {pipeline_mode = #tpu.pipeline_mode<synchronous>, transform_indices = @transform_5, window_bounds = array<i64: 128, 256>}, {pipeline_mode = #tpu.pipeline_mode<synchronous>, transform_indices = @transform_6, window_bounds = array<i64: 1, 256>}, {pipeline_mode = #tpu.pipeline_mode<synchronous>, transform_indices = @transform_7, window_bounds = array<i64: 1, 256>}, {pipeline_mode = #tpu.pipeline_mode<synchronous>, transform_indices = @transform_8, window_bounds = array<i64: 1, 256>}, {pipeline_mode = #tpu.pipeline_mode<synchronous>, transform_indices = @transform_9, window_bounds = array<i64: 256, 1024>}, {pipeline_mode = #tpu.pipeline_mode<synchronous>, transform_indices = @transform_10, window_bounds = array<i64: 1, 1024>}, {pipeline_mode = #tpu.pipeline_mode<synchronous>, transform_indices = @transform_11, window_bounds = array<i64: 1, 1024>}, {pipeline_mode = #tpu.pipeline_mode<synchronous>, transform_indices = @transform_12, window_bounds = array<i64: 1, 1024>}, {pipeline_mode = #tpu.pipeline_mode<synchronous>, transform_indices = @transform_13, window_bounds = array<i64: 1024, 512>}, {pipeline_mode = #tpu.pipeline_mode<synchronous>, transform_indices = @transform_14, window_bounds = array<i64: 1, 512>}, {pipeline_mode = #tpu.pipeline_mode<synchronous>, transform_indices = @transform_15, window_bounds = array<i64: 1, 512>}, {pipeline_mode = #tpu.pipeline_mode<synchronous>, transform_indices = @transform_16, window_bounds = array<i64: 1, 512>}, {pipeline_mode = #tpu.pipeline_mode<synchronous>, transform_indices = @transform_17, window_bounds = array<i64: 512, 256>}, {pipeline_mode = #tpu.pipeline_mode<synchronous>, transform_indices = @transform_18, window_bounds = array<i64: 1, 256>}, {pipeline_mode = #tpu.pipeline_mode<synchronous>, transform_indices = @transform_19, window_bounds = array<i64: 1, 256>}, {pipeline_mode = #tpu.pipeline_mode<synchronous>, transform_indices = @transform_20, window_bounds = array<i64: 1, 256>}, {pipeline_mode = #tpu.pipeline_mode<synchronous>, transform_indices = @transform_21, window_bounds = array<i64: 256, 9>}, {pipeline_mode = #tpu.pipeline_mode<synchronous>, transform_indices = @transform_22, window_bounds = array<i64: 1, 9>}, {transform_indices = @transform_23, window_bounds = array<i64: 1, 16, 3>}]} {
    %c0_i32 = arith.constant 0 : i32
    %0 = arith.cmpi eq, %arg0, %c0_i32 : i32
    %c0_i32_0 = arith.constant 0 : i32
    %1 = arith.cmpi eq, %arg1, %c0_i32_0 : i32
    %2 = arith.andi %0, %1 : i1
    %c0_i32_1 = arith.constant 0 : i32
    %3 = arith.cmpi eq, %arg2, %c0_i32_1 : i32
    %4 = arith.andi %2, %3 : i1
    %c1_i32 = arith.constant 1 : i32
    %5 = arith.cmpi eq, %arg1, %c1_i32 : i32
    %c1_i32_2 = arith.constant 1 : i32
    %6 = arith.cmpi eq, %arg2, %c1_i32_2 : i32
    %7 = arith.andi %5, %6 : i1
    %8 = arith.extui %4 : i1 to i32
    %c0_i32_3 = arith.constant 0 : i32
    %9 = arith.cmpi ne, %8, %c0_i32_3 : i32
    scf.if %9 {
      %cst = arith.constant 0.000000e+00 : f32
      %34 = vector.broadcast %cst : f32 to vector<1x128xf32>
      %c0 = arith.constant 0 : index
      %c0_16 = arith.constant 0 : index
      %35 = vector.load %arg27[%c0, %c0_16] : memref<1x128xf32, #tpu.memory_space<vmem>>, vector<1x128xf32>
      tpu.vector_store %arg27[%c0, %c0_16], %34 {strides = array<i32>} : memref<1x128xf32, #tpu.memory_space<vmem>>, vector<1x128xf32>,
      %cst_17 = arith.constant 0.000000e+00 : f32
      %36 = vector.broadcast %cst_17 : f32 to vector<1x128xf32>
      %c0_18 = arith.constant 0 : index
      %c0_19 = arith.constant 0 : index
      %37 = vector.load %arg28[%c0_18, %c0_19] : memref<1x128xf32, #tpu.memory_space<vmem>>, vector<1x128xf32>
      tpu.vector_store %arg28[%c0_18, %c0_19], %36 {strides = array<i32>} : memref<1x128xf32, #tpu.memory_space<vmem>>, vector<1x128xf32>,
      %cst_20 = arith.constant 0.000000e+00 : f32
      %38 = vector.broadcast %cst_20 : f32 to vector<1x256xf32>
      %c0_21 = arith.constant 0 : index
      %c0_22 = arith.constant 0 : index
      %39 = vector.load %arg29[%c0_21, %c0_22] : memref<1x256xf32, #tpu.memory_space<vmem>>, vector<1x256xf32>
      tpu.vector_store %arg29[%c0_21, %c0_22], %38 {strides = array<i32>} : memref<1x256xf32, #tpu.memory_space<vmem>>, vector<1x256xf32>,
      %cst_23 = arith.constant 0.000000e+00 : f32
      %40 = vector.broadcast %cst_23 : f32 to vector<1x256xf32>
      %c0_24 = arith.constant 0 : index
      %c0_25 = arith.constant 0 : index
      %41 = vector.load %arg30[%c0_24, %c0_25] : memref<1x256xf32, #tpu.memory_space<vmem>>, vector<1x256xf32>
      tpu.vector_store %arg30[%c0_24, %c0_25], %40 {strides = array<i32>} : memref<1x256xf32, #tpu.memory_space<vmem>>, vector<1x256xf32>,
      %cst_26 = arith.constant 0.000000e+00 : f32
      %42 = vector.broadcast %cst_26 : f32 to vector<1x1024xf32>
      %c0_27 = arith.constant 0 : index
      %c0_28 = arith.constant 0 : index
      %43 = vector.load %arg31[%c0_27, %c0_28] : memref<1x1024xf32, #tpu.memory_space<vmem>>, vector<1x1024xf32>
      tpu.vector_store %arg31[%c0_27, %c0_28], %42 {strides = array<i32>} : memref<1x1024xf32, #tpu.memory_space<vmem>>, vector<1x1024xf32>,
      %cst_29 = arith.constant 0.000000e+00 : f32
      %44 = vector.broadcast %cst_29 : f32 to vector<1x1024xf32>
      %c0_30 = arith.constant 0 : index
      %c0_31 = arith.constant 0 : index
      %45 = vector.load %arg32[%c0_30, %c0_31] : memref<1x1024xf32, #tpu.memory_space<vmem>>, vector<1x1024xf32>
      tpu.vector_store %arg32[%c0_30, %c0_31], %44 {strides = array<i32>} : memref<1x1024xf32, #tpu.memory_space<vmem>>, vector<1x1024xf32>,
      %cst_32 = arith.constant 0xFF800000 : f32
      %46 = vector.broadcast %cst_32 : f32 to vector<2x1024xf32>
      %c0_33 = arith.constant 0 : index
      %c0_34 = arith.constant 0 : index
      %47 = vector.load %arg37[%c0_33, %c0_34] : memref<2x1024xf32, #tpu.memory_space<vmem>>, vector<2x1024xf32>
      tpu.vector_store %arg37[%c0_33, %c0_34], %46 {strides = array<i32>} : memref<2x1024xf32, #tpu.memory_space<vmem>>, vector<2x1024xf32>,
      %cst_35 = arith.constant 0x7F800000 : f32
      %48 = vector.broadcast %cst_35 : f32 to vector<2x1024xf32>
      %c0_36 = arith.constant 0 : index
      %c0_37 = arith.constant 0 : index
      %49 = vector.load %arg38[%c0_36, %c0_37] : memref<2x1024xf32, #tpu.memory_space<vmem>>, vector<2x1024xf32>
      tpu.vector_store %arg38[%c0_36, %c0_37], %48 {strides = array<i32>} : memref<2x1024xf32, #tpu.memory_space<vmem>>, vector<2x1024xf32>,
    } else {
    }
    %c0_i32_4 = arith.constant 0 : i32
    %10 = arith.cmpi eq, %arg0, %c0_i32_4 : i32
    %11 = arith.extui %10 : i1 to i32
    %c0_i32_5 = arith.constant 0 : i32
    %12 = arith.cmpi ne, %11, %c0_i32_5 : i32
    scf.if %12 {
      %c0 = arith.constant 0 : index
      %c0_16 = arith.constant 0 : index
      %c0_17 = arith.constant 0 : index
      %34 = vector.load %arg3[%c0, %c0_16, %c0_17] : memref<1x16x3xf32, #tpu.memory_space<vmem>>, vector<1x16x3xf32>
      %35 = vector.shape_cast %34 : vector<1x16x3xf32> to vector<16x3xf32>
      %c0_18 = arith.constant 0 : index
      %c0_19 = arith.constant 0 : index
      %36 = vector.load %arg4[%c0_18, %c0_19] : memref<3x128xf32, #tpu.memory_space<vmem>>, vector<3x128xf32>
      %37 = vector.extract_strided_slice %35 {offsets = [0, 0], sizes = [16, 1], strides = [1, 1]} : vector<16x3xf32> to vector<16x1xf32>
      %38 = vector.extract_strided_slice %36 {offsets = [0, 0], sizes = [1, 128], strides = [1, 1]} : vector<3x128xf32> to vector<1x128xf32>
      %39 = vector.broadcast %37 : vector<16x1xf32> to vector<16x128xf32>
      %40 = vector.broadcast %38 : vector<1x128xf32> to vector<16x128xf32>
      %41 = arith.mulf %39, %40 : vector<16x128xf32>
      %42 = vector.extract_strided_slice %35 {offsets = [0, 1], sizes = [16, 1], strides = [1, 1]} : vector<16x3xf32> to vector<16x1xf32>
      %43 = vector.extract_strided_slice %36 {offsets = [1, 0], sizes = [1, 128], strides = [1, 1]} : vector<3x128xf32> to vector<1x128xf32>
      %44 = vector.broadcast %42 : vector<16x1xf32> to vector<16x128xf32>
      %45 = vector.broadcast %43 : vector<1x128xf32> to vector<16x128xf32>
      %46 = arith.mulf %44, %45 : vector<16x128xf32>
      %47 = arith.addf %41, %46 : vector<16x128xf32>
      %48 = vector.extract_strided_slice %35 {offsets = [0, 2], sizes = [16, 1], strides = [1, 1]} : vector<16x3xf32> to vector<16x1xf32>
      %49 = vector.extract_strided_slice %36 {offsets = [2, 0], sizes = [1, 128], strides = [1, 1]} : vector<3x128xf32> to vector<1x128xf32>
      %50 = vector.broadcast %48 : vector<16x1xf32> to vector<16x128xf32>
      %51 = vector.broadcast %49 : vector<1x128xf32> to vector<16x128xf32>
      %52 = arith.mulf %50, %51 : vector<16x128xf32>
      %53 = arith.addf %47, %52 : vector<16x128xf32>
      %c0_20 = arith.constant 0 : index
      %c0_21 = arith.constant 0 : index
      %54 = vector.load %arg5[%c0_20, %c0_21] : memref<1x128xf32, #tpu.memory_space<vmem>>, vector<1x128xf32>
      %55 = vector.broadcast %54 : vector<1x128xf32> to vector<16x128xf32>
      %56 = arith.addf %53, %55 : vector<16x128xf32>
      %cst = arith.constant dense<0.000000e+00> : vector<128xf32>
      %57 = vector.multi_reduction <add>, %56, %cst [0] : vector<16x128xf32> to vector<128xf32>
      %58 = vector.shape_cast %57 : vector<128xf32> to vector<1x128xf32>
      %59 = arith.mulf %56, %56 : vector<16x128xf32>
      %cst_22 = arith.constant dense<0.000000e+00> : vector<128xf32>
      %60 = vector.multi_reduction <add>, %59, %cst_22 [0] : vector<16x128xf32> to vector<128xf32>
      %61 = vector.shape_cast %60 : vector<128xf32> to vector<1x128xf32>
      %c0_23 = arith.constant 0 : index
      %c0_24 = arith.constant 0 : index
      %62 = vector.load %arg27[%c0_23, %c0_24] : memref<1x128xf32, #tpu.memory_space<vmem>>, vector<1x128xf32>
      %63 = arith.addf %62, %58 : vector<1x128xf32>
      %c0_25 = arith.constant 0 : index
      %c0_26 = arith.constant 0 : index
      %64 = vector.load %arg27[%c0_25, %c0_26] : memref<1x128xf32, #tpu.memory_space<vmem>>, vector<1x128xf32>
      tpu.vector_store %arg27[%c0_25, %c0_26], %63 {strides = array<i32>} : memref<1x128xf32, #tpu.memory_space<vmem>>, vector<1x128xf32>,
      %c0_27 = arith.constant 0 : index
      %c0_28 = arith.constant 0 : index
      %65 = vector.load %arg28[%c0_27, %c0_28] : memref<1x128xf32, #tpu.memory_space<vmem>>, vector<1x128xf32>
      %66 = arith.addf %65, %61 : vector<1x128xf32>
      %c0_29 = arith.constant 0 : index
      %c0_30 = arith.constant 0 : index
      %67 = vector.load %arg28[%c0_29, %c0_30] : memref<1x128xf32, #tpu.memory_space<vmem>>, vector<1x128xf32>
      tpu.vector_store %arg28[%c0_29, %c0_30], %66 {strides = array<i32>} : memref<1x128xf32, #tpu.memory_space<vmem>>, vector<1x128xf32>,
    } else {
    }
    %c0_i32_6 = arith.constant 0 : i32
    %13 = arith.cmpi eq, %arg0, %c0_i32_6 : i32
    %14 = arith.andi %13, %7 : i1
    %15 = arith.extui %14 : i1 to i32
    %c0_i32_7 = arith.constant 0 : i32
    %16 = arith.cmpi ne, %15, %c0_i32_7 : i32
    scf.if %16 {
      %c0 = arith.constant 0 : index
      %c0_16 = arith.constant 0 : index
      %34 = vector.load %arg27[%c0, %c0_16] : memref<1x128xf32, #tpu.memory_space<vmem>>, vector<1x128xf32>
      %cst = arith.constant 1.562500e-02 : f32
      %35 = vector.broadcast %cst : f32 to vector<1x128xf32>
      %36 = arith.mulf %34, %35 : vector<1x128xf32>
      %c0_17 = arith.constant 0 : index
      %c0_18 = arith.constant 0 : index
      %37 = vector.load %arg28[%c0_17, %c0_18] : memref<1x128xf32, #tpu.memory_space<vmem>>, vector<1x128xf32>
      %cst_19 = arith.constant 1.562500e-02 : f32
      %38 = vector.broadcast %cst_19 : f32 to vector<1x128xf32>
      %39 = arith.mulf %37, %38 : vector<1x128xf32>
      %40 = arith.mulf %36, %36 : vector<1x128xf32>
      %41 = arith.subf %39, %40 : vector<1x128xf32>
      %cst_20 = arith.constant 0.000000e+00 : f32
      %42 = vector.broadcast %cst_20 : f32 to vector<1x128xf32>
      %43 = arith.maximumf %41, %42 : vector<1x128xf32>
      %c0_21 = arith.constant 0 : index
      %c0_22 = arith.constant 0 : index
      %44 = vector.load %arg6[%c0_21, %c0_22] : memref<1x128xf32, #tpu.memory_space<vmem>>, vector<1x128xf32>
      %cst_23 = arith.constant 9.99999974E-6 : f32
      %45 = vector.broadcast %cst_23 : f32 to vector<1x128xf32>
      %46 = arith.addf %43, %45 : vector<1x128xf32>
      %47 = math.rsqrt %46 : vector<1x128xf32>
      %48 = arith.mulf %44, %47 : vector<1x128xf32>
      %c0_24 = arith.constant 0 : index
      %c0_25 = arith.constant 0 : index
      %49 = vector.load %arg33[%c0_24, %c0_25] : memref<1x128xf32, #tpu.memory_space<vmem>>, vector<1x128xf32>
      tpu.vector_store %arg33[%c0_24, %c0_25], %48 {strides = array<i32>} : memref<1x128xf32, #tpu.memory_space<vmem>>, vector<1x128xf32>,
      %c0_26 = arith.constant 0 : index
      %c0_27 = arith.constant 0 : index
      %50 = vector.load %arg7[%c0_26, %c0_27] : memref<1x128xf32, #tpu.memory_space<vmem>>, vector<1x128xf32>
      %51 = arith.mulf %36, %48 : vector<1x128xf32>
      %52 = arith.subf %50, %51 : vector<1x128xf32>
      %c0_28 = arith.constant 0 : index
      %c0_29 = arith.constant 0 : index
      %53 = vector.load %arg34[%c0_28, %c0_29] : memref<1x128xf32, #tpu.memory_space<vmem>>, vector<1x128xf32>
      tpu.vector_store %arg34[%c0_28, %c0_29], %52 {strides = array<i32>} : memref<1x128xf32, #tpu.memory_space<vmem>>, vector<1x128xf32>,
    } else {
    }
    %c1_i32_8 = arith.constant 1 : i32
    %17 = arith.cmpi eq, %arg0, %c1_i32_8 : i32
    %18 = arith.extui %17 : i1 to i32
    %c0_i32_9 = arith.constant 0 : i32
    %19 = arith.cmpi ne, %18, %c0_i32_9 : i32
    scf.if %19 {
      %c0 = arith.constant 0 : index
      %c0_16 = arith.constant 0 : index
      %c0_17 = arith.constant 0 : index
      %34 = vector.load %arg3[%c0, %c0_16, %c0_17] : memref<1x16x3xf32, #tpu.memory_space<vmem>>, vector<1x16x3xf32>
      %35 = vector.shape_cast %34 : vector<1x16x3xf32> to vector<16x3xf32>
      %c0_18 = arith.constant 0 : index
      %c0_19 = arith.constant 0 : index
      %36 = vector.load %arg4[%c0_18, %c0_19] : memref<3x128xf32, #tpu.memory_space<vmem>>, vector<3x128xf32>
      %37 = vector.extract_strided_slice %35 {offsets = [0, 0], sizes = [16, 1], strides = [1, 1]} : vector<16x3xf32> to vector<16x1xf32>
      %38 = vector.extract_strided_slice %36 {offsets = [0, 0], sizes = [1, 128], strides = [1, 1]} : vector<3x128xf32> to vector<1x128xf32>
      %39 = vector.broadcast %37 : vector<16x1xf32> to vector<16x128xf32>
      %40 = vector.broadcast %38 : vector<1x128xf32> to vector<16x128xf32>
      %41 = arith.mulf %39, %40 : vector<16x128xf32>
      %42 = vector.extract_strided_slice %35 {offsets = [0, 1], sizes = [16, 1], strides = [1, 1]} : vector<16x3xf32> to vector<16x1xf32>
      %43 = vector.extract_strided_slice %36 {offsets = [1, 0], sizes = [1, 128], strides = [1, 1]} : vector<3x128xf32> to vector<1x128xf32>
      %44 = vector.broadcast %42 : vector<16x1xf32> to vector<16x128xf32>
      %45 = vector.broadcast %43 : vector<1x128xf32> to vector<16x128xf32>
      %46 = arith.mulf %44, %45 : vector<16x128xf32>
      %47 = arith.addf %41, %46 : vector<16x128xf32>
      %48 = vector.extract_strided_slice %35 {offsets = [0, 2], sizes = [16, 1], strides = [1, 1]} : vector<16x3xf32> to vector<16x1xf32>
      %49 = vector.extract_strided_slice %36 {offsets = [2, 0], sizes = [1, 128], strides = [1, 1]} : vector<3x128xf32> to vector<1x128xf32>
      %50 = vector.broadcast %48 : vector<16x1xf32> to vector<16x128xf32>
      %51 = vector.broadcast %49 : vector<1x128xf32> to vector<16x128xf32>
      %52 = arith.mulf %50, %51 : vector<16x128xf32>
      %53 = arith.addf %47, %52 : vector<16x128xf32>
      %c0_20 = arith.constant 0 : index
      %c0_21 = arith.constant 0 : index
      %54 = vector.load %arg5[%c0_20, %c0_21] : memref<1x128xf32, #tpu.memory_space<vmem>>, vector<1x128xf32>
      %55 = vector.broadcast %54 : vector<1x128xf32> to vector<16x128xf32>
      %56 = arith.addf %53, %55 : vector<16x128xf32>
      %c0_22 = arith.constant 0 : index
      %c0_23 = arith.constant 0 : index
      %57 = vector.load %arg33[%c0_22, %c0_23] : memref<1x128xf32, #tpu.memory_space<vmem>>, vector<1x128xf32>
      %58 = vector.broadcast %57 : vector<1x128xf32> to vector<16x128xf32>
      %59 = arith.mulf %56, %58 : vector<16x128xf32>
      %c0_24 = arith.constant 0 : index
      %c0_25 = arith.constant 0 : index
      %60 = vector.load %arg34[%c0_24, %c0_25] : memref<1x128xf32, #tpu.memory_space<vmem>>, vector<1x128xf32>
      %61 = vector.broadcast %60 : vector<1x128xf32> to vector<16x128xf32>
      %62 = arith.addf %59, %61 : vector<16x128xf32>
      %cst = arith.constant 0.000000e+00 : f32
      %63 = vector.broadcast %cst : f32 to vector<16x128xf32>
      %64 = arith.maximumf %62, %63 : vector<16x128xf32>
      %65 = arith.truncf %64 : vector<16x128xf32> to vector<16x128xbf16>
      %c0_26 = arith.constant 0 : index
      %c0_27 = arith.constant 0 : index
      %66 = vector.load %arg8[%c0_26, %c0_27] : memref<128x256xbf16, #tpu.memory_space<vmem>>, vector<128x256xbf16>
      %cst_28 = arith.constant dense<0.000000e+00> : vector<16x256xf32>
      %67 = tpu.matmul %65, %66, %cst_28 {dimension_numbers = #tpu.dot_dimension_numbers<[1], [0], [0], [1], [0, 0, 1, 1], [], []>} : vector<16x128xbf16>, vector<128x256xbf16>, vector<16x256xf32> -> vector<16x256xf32>
      %c0_29 = arith.constant 0 : index
      %c0_30 = arith.constant 0 : index
      %68 = vector.load %arg9[%c0_29, %c0_30] : memref<1x256xf32, #tpu.memory_space<vmem>>, vector<1x256xf32>
      %69 = vector.broadcast %68 : vector<1x256xf32> to vector<16x256xf32>
      %70 = arith.addf %67, %69 : vector<16x256xf32>
      %cst_31 = arith.constant dense<0.000000e+00> : vector<256xf32>
      %71 = vector.multi_reduction <add>, %70, %cst_31 [0] : vector<16x256xf32> to vector<256xf32>
      %72 = vector.shape_cast %71 : vector<256xf32> to vector<1x256xf32>
      %73 = arith.mulf %70, %70 : vector<16x256xf32>
      %cst_32 = arith.constant dense<0.000000e+00> : vector<256xf32>
      %74 = vector.multi_reduction <add>, %73, %cst_32 [0] : vector<16x256xf32> to vector<256xf32>
      %75 = vector.shape_cast %74 : vector<256xf32> to vector<1x256xf32>
      %c0_33 = arith.constant 0 : index
      %c0_34 = arith.constant 0 : index
      %76 = vector.load %arg29[%c0_33, %c0_34] : memref<1x256xf32, #tpu.memory_space<vmem>>, vector<1x256xf32>
      %77 = arith.addf %76, %72 : vector<1x256xf32>
      %c0_35 = arith.constant 0 : index
      %c0_36 = arith.constant 0 : index
      %78 = vector.load %arg29[%c0_35, %c0_36] : memref<1x256xf32, #tpu.memory_space<vmem>>, vector<1x256xf32>
      tpu.vector_store %arg29[%c0_35, %c0_36], %77 {strides = array<i32>} : memref<1x256xf32, #tpu.memory_space<vmem>>, vector<1x256xf32>,
      %c0_37 = arith.constant 0 : index
      %c0_38 = arith.constant 0 : index
      %79 = vector.load %arg30[%c0_37, %c0_38] : memref<1x256xf32, #tpu.memory_space<vmem>>, vector<1x256xf32>
      %80 = arith.addf %79, %75 : vector<1x256xf32>
      %c0_39 = arith.constant 0 : index
      %c0_40 = arith.constant 0 : index
      %81 = vector.load %arg30[%c0_39, %c0_40] : memref<1x256xf32, #tpu.memory_space<vmem>>, vector<1x256xf32>
      tpu.vector_store %arg30[%c0_39, %c0_40], %80 {strides = array<i32>} : memref<1x256xf32, #tpu.memory_space<vmem>>, vector<1x256xf32>,
    } else {
    }
    %c1_i32_10 = arith.constant 1 : i32
    %20 = arith.cmpi eq, %arg0, %c1_i32_10 : i32
    %21 = arith.andi %20, %7 : i1
    %22 = arith.extui %21 : i1 to i32
    %c0_i32_11 = arith.constant 0 : i32
    %23 = arith.cmpi ne, %22, %c0_i32_11 : i32
    scf.if %23 {
      %c0 = arith.constant 0 : index
      %c0_16 = arith.constant 0 : index
      %34 = vector.load %arg29[%c0, %c0_16] : memref<1x256xf32, #tpu.memory_space<vmem>>, vector<1x256xf32>
      %cst = arith.constant 1.562500e-02 : f32
      %35 = vector.broadcast %cst : f32 to vector<1x256xf32>
      %36 = arith.mulf %34, %35 : vector<1x256xf32>
      %c0_17 = arith.constant 0 : index
      %c0_18 = arith.constant 0 : index
      %37 = vector.load %arg30[%c0_17, %c0_18] : memref<1x256xf32, #tpu.memory_space<vmem>>, vector<1x256xf32>
      %cst_19 = arith.constant 1.562500e-02 : f32
      %38 = vector.broadcast %cst_19 : f32 to vector<1x256xf32>
      %39 = arith.mulf %37, %38 : vector<1x256xf32>
      %40 = arith.mulf %36, %36 : vector<1x256xf32>
      %41 = arith.subf %39, %40 : vector<1x256xf32>
      %cst_20 = arith.constant 0.000000e+00 : f32
      %42 = vector.broadcast %cst_20 : f32 to vector<1x256xf32>
      %43 = arith.maximumf %41, %42 : vector<1x256xf32>
      %c0_21 = arith.constant 0 : index
      %c0_22 = arith.constant 0 : index
      %44 = vector.load %arg10[%c0_21, %c0_22] : memref<1x256xf32, #tpu.memory_space<vmem>>, vector<1x256xf32>
      %cst_23 = arith.constant 9.99999974E-6 : f32
      %45 = vector.broadcast %cst_23 : f32 to vector<1x256xf32>
      %46 = arith.addf %43, %45 : vector<1x256xf32>
      %47 = math.rsqrt %46 : vector<1x256xf32>
      %48 = arith.mulf %44, %47 : vector<1x256xf32>
      %c0_24 = arith.constant 0 : index
      %c0_25 = arith.constant 0 : index
      %49 = vector.load %arg35[%c0_24, %c0_25] : memref<1x256xf32, #tpu.memory_space<vmem>>, vector<1x256xf32>
      tpu.vector_store %arg35[%c0_24, %c0_25], %48 {strides = array<i32>} : memref<1x256xf32, #tpu.memory_space<vmem>>, vector<1x256xf32>,
      %c0_26 = arith.constant 0 : index
      %c0_27 = arith.constant 0 : index
      %50 = vector.load %arg11[%c0_26, %c0_27] : memref<1x256xf32, #tpu.memory_space<vmem>>, vector<1x256xf32>
      %51 = arith.mulf %36, %48 : vector<1x256xf32>
      %52 = arith.subf %50, %51 : vector<1x256xf32>
      %c0_28 = arith.constant 0 : index
      %c0_29 = arith.constant 0 : index
      %53 = vector.load %arg36[%c0_28, %c0_29] : memref<1x256xf32, #tpu.memory_space<vmem>>, vector<1x256xf32>
      tpu.vector_store %arg36[%c0_28, %c0_29], %52 {strides = array<i32>} : memref<1x256xf32, #tpu.memory_space<vmem>>, vector<1x256xf32>,
    } else {
    }
    %c2_i32 = arith.constant 2 : i32
    %24 = arith.cmpi eq, %arg0, %c2_i32 : i32
    %25 = arith.extui %24 : i1 to i32
    %c0_i32_12 = arith.constant 0 : i32
    %26 = arith.cmpi ne, %25, %c0_i32_12 : i32
    scf.if %26 {
      %c0 = arith.constant 0 : index
      %c0_16 = arith.constant 0 : index
      %c0_17 = arith.constant 0 : index
      %34 = vector.load %arg3[%c0, %c0_16, %c0_17] : memref<1x16x3xf32, #tpu.memory_space<vmem>>, vector<1x16x3xf32>
      %35 = vector.shape_cast %34 : vector<1x16x3xf32> to vector<16x3xf32>
      %c0_18 = arith.constant 0 : index
      %c0_19 = arith.constant 0 : index
      %36 = vector.load %arg4[%c0_18, %c0_19] : memref<3x128xf32, #tpu.memory_space<vmem>>, vector<3x128xf32>
      %37 = vector.extract_strided_slice %35 {offsets = [0, 0], sizes = [16, 1], strides = [1, 1]} : vector<16x3xf32> to vector<16x1xf32>
      %38 = vector.extract_strided_slice %36 {offsets = [0, 0], sizes = [1, 128], strides = [1, 1]} : vector<3x128xf32> to vector<1x128xf32>
      %39 = vector.broadcast %37 : vector<16x1xf32> to vector<16x128xf32>
      %40 = vector.broadcast %38 : vector<1x128xf32> to vector<16x128xf32>
      %41 = arith.mulf %39, %40 : vector<16x128xf32>
      %42 = vector.extract_strided_slice %35 {offsets = [0, 1], sizes = [16, 1], strides = [1, 1]} : vector<16x3xf32> to vector<16x1xf32>
      %43 = vector.extract_strided_slice %36 {offsets = [1, 0], sizes = [1, 128], strides = [1, 1]} : vector<3x128xf32> to vector<1x128xf32>
      %44 = vector.broadcast %42 : vector<16x1xf32> to vector<16x128xf32>
      %45 = vector.broadcast %43 : vector<1x128xf32> to vector<16x128xf32>
      %46 = arith.mulf %44, %45 : vector<16x128xf32>
      %47 = arith.addf %41, %46 : vector<16x128xf32>
      %48 = vector.extract_strided_slice %35 {offsets = [0, 2], sizes = [16, 1], strides = [1, 1]} : vector<16x3xf32> to vector<16x1xf32>
      %49 = vector.extract_strided_slice %36 {offsets = [2, 0], sizes = [1, 128], strides = [1, 1]} : vector<3x128xf32> to vector<1x128xf32>
      %50 = vector.broadcast %48 : vector<16x1xf32> to vector<16x128xf32>
      %51 = vector.broadcast %49 : vector<1x128xf32> to vector<16x128xf32>
      %52 = arith.mulf %50, %51 : vector<16x128xf32>
      %53 = arith.addf %47, %52 : vector<16x128xf32>
      %c0_20 = arith.constant 0 : index
      %c0_21 = arith.constant 0 : index
      %54 = vector.load %arg5[%c0_20, %c0_21] : memref<1x128xf32, #tpu.memory_space<vmem>>, vector<1x128xf32>
      %55 = vector.broadcast %54 : vector<1x128xf32> to vector<16x128xf32>
      %56 = arith.addf %53, %55 : vector<16x128xf32>
      %c0_22 = arith.constant 0 : index
      %c0_23 = arith.constant 0 : index
      %57 = vector.load %arg33[%c0_22, %c0_23] : memref<1x128xf32, #tpu.memory_space<vmem>>, vector<1x128xf32>
      %58 = vector.broadcast %57 : vector<1x128xf32> to vector<16x128xf32>
      %59 = arith.mulf %56, %58 : vector<16x128xf32>
      %c0_24 = arith.constant 0 : index
      %c0_25 = arith.constant 0 : index
      %60 = vector.load %arg34[%c0_24, %c0_25] : memref<1x128xf32, #tpu.memory_space<vmem>>, vector<1x128xf32>
      %61 = vector.broadcast %60 : vector<1x128xf32> to vector<16x128xf32>
      %62 = arith.addf %59, %61 : vector<16x128xf32>
      %cst = arith.constant 0.000000e+00 : f32
      %63 = vector.broadcast %cst : f32 to vector<16x128xf32>
      %64 = arith.maximumf %62, %63 : vector<16x128xf32>
      %65 = arith.truncf %64 : vector<16x128xf32> to vector<16x128xbf16>
      %c0_26 = arith.constant 0 : index
      %c0_27 = arith.constant 0 : index
      %66 = vector.load %arg8[%c0_26, %c0_27] : memref<128x256xbf16, #tpu.memory_space<vmem>>, vector<128x256xbf16>
      %cst_28 = arith.constant dense<0.000000e+00> : vector<16x256xf32>
      %67 = tpu.matmul %65, %66, %cst_28 {dimension_numbers = #tpu.dot_dimension_numbers<[1], [0], [0], [1], [0, 0, 1, 1], [], []>} : vector<16x128xbf16>, vector<128x256xbf16>, vector<16x256xf32> -> vector<16x256xf32>
      %c0_29 = arith.constant 0 : index
      %c0_30 = arith.constant 0 : index
      %68 = vector.load %arg9[%c0_29, %c0_30] : memref<1x256xf32, #tpu.memory_space<vmem>>, vector<1x256xf32>
      %69 = vector.broadcast %68 : vector<1x256xf32> to vector<16x256xf32>
      %70 = arith.addf %67, %69 : vector<16x256xf32>
      %c0_31 = arith.constant 0 : index
      %c0_32 = arith.constant 0 : index
      %71 = vector.load %arg35[%c0_31, %c0_32] : memref<1x256xf32, #tpu.memory_space<vmem>>, vector<1x256xf32>
      %72 = vector.broadcast %71 : vector<1x256xf32> to vector<16x256xf32>
      %73 = arith.mulf %70, %72 : vector<16x256xf32>
      %c0_33 = arith.constant 0 : index
      %c0_34 = arith.constant 0 : index
      %74 = vector.load %arg36[%c0_33, %c0_34] : memref<1x256xf32, #tpu.memory_space<vmem>>, vector<1x256xf32>
      %75 = vector.broadcast %74 : vector<1x256xf32> to vector<16x256xf32>
      %76 = arith.addf %73, %75 : vector<16x256xf32>
      %cst_35 = arith.constant 0.000000e+00 : f32
      %77 = vector.broadcast %cst_35 : f32 to vector<16x256xf32>
      %78 = arith.maximumf %76, %77 : vector<16x256xf32>
      %79 = arith.truncf %78 : vector<16x256xf32> to vector<16x256xbf16>
      %c0_36 = arith.constant 0 : index
      %c0_37 = arith.constant 0 : index
      %80 = vector.load %arg12[%c0_36, %c0_37] : memref<256x1024xbf16, #tpu.memory_space<vmem>>, vector<256x1024xbf16>
      %cst_38 = arith.constant dense<0.000000e+00> : vector<16x1024xf32>
      %81 = tpu.matmul %79, %80, %cst_38 {dimension_numbers = #tpu.dot_dimension_numbers<[1], [0], [0], [1], [0, 0, 1, 1], [], []>} : vector<16x256xbf16>, vector<256x1024xbf16>, vector<16x1024xf32> -> vector<16x1024xf32>
      %c0_39 = arith.constant 0 : index
      %c0_40 = arith.constant 0 : index
      %82 = vector.load %arg13[%c0_39, %c0_40] : memref<1x1024xf32, #tpu.memory_space<vmem>>, vector<1x1024xf32>
      %83 = vector.broadcast %82 : vector<1x1024xf32> to vector<16x1024xf32>
      %84 = arith.addf %81, %83 : vector<16x1024xf32>
      %cst_41 = arith.constant dense<0.000000e+00> : vector<1024xf32>
      %85 = vector.multi_reduction <add>, %84, %cst_41 [0] : vector<16x1024xf32> to vector<1024xf32>
      %86 = vector.shape_cast %85 : vector<1024xf32> to vector<1x1024xf32>
      %87 = arith.mulf %84, %84 : vector<16x1024xf32>
      %cst_42 = arith.constant dense<0.000000e+00> : vector<1024xf32>
      %88 = vector.multi_reduction <add>, %87, %cst_42 [0] : vector<16x1024xf32> to vector<1024xf32>
      %89 = vector.shape_cast %88 : vector<1024xf32> to vector<1x1024xf32>
      %c0_43 = arith.constant 0 : index
      %c0_44 = arith.constant 0 : index
      %90 = vector.load %arg31[%c0_43, %c0_44] : memref<1x1024xf32, #tpu.memory_space<vmem>>, vector<1x1024xf32>
      %91 = arith.addf %90, %86 : vector<1x1024xf32>
      %c0_45 = arith.constant 0 : index
      %c0_46 = arith.constant 0 : index
      %92 = vector.load %arg31[%c0_45, %c0_46] : memref<1x1024xf32, #tpu.memory_space<vmem>>, vector<1x1024xf32>
      tpu.vector_store %arg31[%c0_45, %c0_46], %91 {strides = array<i32>} : memref<1x1024xf32, #tpu.memory_space<vmem>>, vector<1x1024xf32>,
      %c0_47 = arith.constant 0 : index
      %c0_48 = arith.constant 0 : index
      %93 = vector.load %arg32[%c0_47, %c0_48] : memref<1x1024xf32, #tpu.memory_space<vmem>>, vector<1x1024xf32>
      %94 = arith.addf %93, %89 : vector<1x1024xf32>
      %c0_49 = arith.constant 0 : index
      %c0_50 = arith.constant 0 : index
      %95 = vector.load %arg32[%c0_49, %c0_50] : memref<1x1024xf32, #tpu.memory_space<vmem>>, vector<1x1024xf32>
      tpu.vector_store %arg32[%c0_49, %c0_50], %94 {strides = array<i32>} : memref<1x1024xf32, #tpu.memory_space<vmem>>, vector<1x1024xf32>,
      %cst_51 = arith.constant dense<0xFF800000> : vector<1024xf32>
      %96 = vector.multi_reduction <maximumf>, %84, %cst_51 [0] : vector<16x1024xf32> to vector<1024xf32>
      %97 = vector.shape_cast %96 : vector<1024xf32> to vector<1x1024xf32>
      %cst_52 = arith.constant dense<0x7F800000> : vector<1024xf32>
      %98 = vector.multi_reduction <minimumf>, %84, %cst_52 [0] : vector<16x1024xf32> to vector<1024xf32>
      %99 = vector.shape_cast %98 : vector<1024xf32> to vector<1x1024xf32>
      %100 = arith.index_cast %arg1 : i32 to index
      %c0_53 = arith.constant 0 : index
      %101 = vector.load %arg37[%100, %c0_53] : memref<2x1024xf32, #tpu.memory_space<vmem>>, vector<1x1024xf32>
      %102 = arith.maximumf %101, %97 : vector<1x1024xf32>
      %103 = arith.index_cast %arg1 : i32 to index
      %c0_54 = arith.constant 0 : index
      %104 = vector.load %arg37[%103, %c0_54] : memref<2x1024xf32, #tpu.memory_space<vmem>>, vector<1x1024xf32>
      tpu.vector_store %arg37[%103, %c0_54], %102 {strides = array<i32>} : memref<2x1024xf32, #tpu.memory_space<vmem>>, vector<1x1024xf32>,
      %105 = arith.index_cast %arg1 : i32 to index
      %c0_55 = arith.constant 0 : index
      %106 = vector.load %arg38[%105, %c0_55] : memref<2x1024xf32, #tpu.memory_space<vmem>>, vector<1x1024xf32>
      %107 = arith.minimumf %106, %99 : vector<1x1024xf32>
      %108 = arith.index_cast %arg1 : i32 to index
      %c0_56 = arith.constant 0 : index
      %109 = vector.load %arg38[%108, %c0_56] : memref<2x1024xf32, #tpu.memory_space<vmem>>, vector<1x1024xf32>
      tpu.vector_store %arg38[%108, %c0_56], %107 {strides = array<i32>} : memref<2x1024xf32, #tpu.memory_space<vmem>>, vector<1x1024xf32>,
    } else {
    }
    %c2_i32_13 = arith.constant 2 : i32
    %27 = arith.cmpi eq, %arg0, %c2_i32_13 : i32
    %28 = arith.andi %27, %7 : i1
    %29 = arith.extui %28 : i1 to i32
    %c0_i32_14 = arith.constant 0 : i32
    %30 = arith.cmpi ne, %29, %c0_i32_14 : i32
    scf.if %30 {
      %c0 = arith.constant 0 : index
      %c0_16 = arith.constant 0 : index
      %34 = vector.load %arg31[%c0, %c0_16] : memref<1x1024xf32, #tpu.memory_space<vmem>>, vector<1x1024xf32>
      %cst = arith.constant 1.562500e-02 : f32
      %35 = vector.broadcast %cst : f32 to vector<1x1024xf32>
      %36 = arith.mulf %34, %35 : vector<1x1024xf32>
      %c0_17 = arith.constant 0 : index
      %c0_18 = arith.constant 0 : index
      %37 = vector.load %arg32[%c0_17, %c0_18] : memref<1x1024xf32, #tpu.memory_space<vmem>>, vector<1x1024xf32>
      %cst_19 = arith.constant 1.562500e-02 : f32
      %38 = vector.broadcast %cst_19 : f32 to vector<1x1024xf32>
      %39 = arith.mulf %37, %38 : vector<1x1024xf32>
      %40 = arith.mulf %36, %36 : vector<1x1024xf32>
      %41 = arith.subf %39, %40 : vector<1x1024xf32>
      %cst_20 = arith.constant 0.000000e+00 : f32
      %42 = vector.broadcast %cst_20 : f32 to vector<1x1024xf32>
      %43 = arith.maximumf %41, %42 : vector<1x1024xf32>
      %c0_21 = arith.constant 0 : index
      %c0_22 = arith.constant 0 : index
      %44 = vector.load %arg14[%c0_21, %c0_22] : memref<1x1024xf32, #tpu.memory_space<vmem>>, vector<1x1024xf32>
      %cst_23 = arith.constant 9.99999974E-6 : f32
      %45 = vector.broadcast %cst_23 : f32 to vector<1x1024xf32>
      %46 = arith.addf %43, %45 : vector<1x1024xf32>
      %47 = math.rsqrt %46 : vector<1x1024xf32>
      %48 = arith.mulf %44, %47 : vector<1x1024xf32>
      %c0_24 = arith.constant 0 : index
      %c0_25 = arith.constant 0 : index
      %49 = vector.load %arg15[%c0_24, %c0_25] : memref<1x1024xf32, #tpu.memory_space<vmem>>, vector<1x1024xf32>
      %50 = arith.mulf %36, %48 : vector<1x1024xf32>
      %51 = arith.subf %49, %50 : vector<1x1024xf32>
      %cst_26 = arith.constant 0.000000e+00 : f32
      %52 = vector.broadcast %cst_26 : f32 to vector<1x1024xf32>
      %53 = arith.cmpf oge, %48, %52 : vector<1x1024xf32>
      %c0_27 = arith.constant 0 : index
      %c0_28 = arith.constant 0 : index
      %54 = vector.load %arg37[%c0_27, %c0_28] : memref<2x1024xf32, #tpu.memory_space<vmem>>, vector<2x1024xf32>
      %c0_29 = arith.constant 0 : index
      %c0_30 = arith.constant 0 : index
      %55 = vector.load %arg38[%c0_29, %c0_30] : memref<2x1024xf32, #tpu.memory_space<vmem>>, vector<2x1024xf32>
      %56 = vector.shape_cast %53 : vector<1x1024xi1> to vector<1x1024xi1>
      %57 = vector.broadcast %56 : vector<1x1024xi1> to vector<2x1024xi1>
      %58 = arith.select %57, %54, %55 : vector<2x1024xi1>, vector<2x1024xf32>
      %59 = vector.broadcast %48 : vector<1x1024xf32> to vector<2x1024xf32>
      %60 = arith.mulf %58, %59 : vector<2x1024xf32>
      %61 = vector.broadcast %51 : vector<1x1024xf32> to vector<2x1024xf32>
      %62 = arith.addf %60, %61 : vector<2x1024xf32>
      %63 = arith.truncf %62 : vector<2x1024xf32> to vector<2x1024xbf16>
      %c0_31 = arith.constant 0 : index
      %c0_32 = arith.constant 0 : index
      %64 = vector.load %arg16[%c0_31, %c0_32] : memref<1024x512xbf16, #tpu.memory_space<vmem>>, vector<1024x512xbf16>
      %cst_33 = arith.constant dense<0.000000e+00> : vector<2x512xf32>
      %65 = tpu.matmul %63, %64, %cst_33 {dimension_numbers = #tpu.dot_dimension_numbers<[1], [0], [0], [1], [0, 0, 1, 1], [], []>} : vector<2x1024xbf16>, vector<1024x512xbf16>, vector<2x512xf32> -> vector<2x512xf32>
      %c0_34 = arith.constant 0 : index
      %c0_35 = arith.constant 0 : index
      %66 = vector.load %arg17[%c0_34, %c0_35] : memref<1x512xf32, #tpu.memory_space<vmem>>, vector<1x512xf32>
      %67 = vector.broadcast %66 : vector<1x512xf32> to vector<2x512xf32>
      %68 = arith.addf %65, %67 : vector<2x512xf32>
      %c0_36 = arith.constant 0 : index
      %c0_37 = arith.constant 0 : index
      %69 = vector.load %arg18[%c0_36, %c0_37] : memref<1x512xf32, #tpu.memory_space<vmem>>, vector<1x512xf32>
      %c0_38 = arith.constant 0 : index
      %c0_39 = arith.constant 0 : index
      %70 = vector.load %arg19[%c0_38, %c0_39] : memref<1x512xf32, #tpu.memory_space<vmem>>, vector<1x512xf32>
      %cst_40 = arith.constant dense<0.000000e+00> : vector<512xf32>
      %71 = vector.multi_reduction <add>, %68, %cst_40 [0] : vector<2x512xf32> to vector<512xf32>
      %72 = vector.shape_cast %71 : vector<512xf32> to vector<1x512xf32>
      %cst_41 = arith.constant 5.000000e-01 : f32
      %73 = vector.broadcast %cst_41 : f32 to vector<1x512xf32>
      %74 = arith.mulf %72, %73 : vector<1x512xf32>
      %75 = arith.mulf %68, %68 : vector<2x512xf32>
      %cst_42 = arith.constant dense<0.000000e+00> : vector<512xf32>
      %76 = vector.multi_reduction <add>, %75, %cst_42 [0] : vector<2x512xf32> to vector<512xf32>
      %77 = vector.shape_cast %76 : vector<512xf32> to vector<1x512xf32>
      %cst_43 = arith.constant 5.000000e-01 : f32
      %78 = vector.broadcast %cst_43 : f32 to vector<1x512xf32>
      %79 = arith.mulf %77, %78 : vector<1x512xf32>
      %80 = arith.mulf %74, %74 : vector<1x512xf32>
      %81 = arith.subf %79, %80 : vector<1x512xf32>
      %cst_44 = arith.constant 0.000000e+00 : f32
      %82 = vector.broadcast %cst_44 : f32 to vector<1x512xf32>
      %83 = arith.maximumf %81, %82 : vector<1x512xf32>
      %84 = vector.broadcast %74 : vector<1x512xf32> to vector<2x512xf32>
      %85 = arith.subf %68, %84 : vector<2x512xf32>
      %cst_45 = arith.constant 9.99999974E-6 : f32
      %86 = vector.broadcast %cst_45 : f32 to vector<1x512xf32>
      %87 = arith.addf %83, %86 : vector<1x512xf32>
      %88 = math.rsqrt %87 : vector<1x512xf32>
      %89 = vector.broadcast %88 : vector<1x512xf32> to vector<2x512xf32>
      %90 = arith.mulf %85, %89 : vector<2x512xf32>
      %91 = vector.broadcast %69 : vector<1x512xf32> to vector<2x512xf32>
      %92 = arith.mulf %90, %91 : vector<2x512xf32>
      %93 = vector.broadcast %70 : vector<1x512xf32> to vector<2x512xf32>
      %94 = arith.addf %92, %93 : vector<2x512xf32>
      %cst_46 = arith.constant 0.000000e+00 : f32
      %95 = vector.broadcast %cst_46 : f32 to vector<2x512xf32>
      %96 = arith.maximumf %94, %95 : vector<2x512xf32>
      %97 = arith.truncf %96 : vector<2x512xf32> to vector<2x512xbf16>
      %c0_47 = arith.constant 0 : index
      %c0_48 = arith.constant 0 : index
      %98 = vector.load %arg20[%c0_47, %c0_48] : memref<512x256xbf16, #tpu.memory_space<vmem>>, vector<512x256xbf16>
      %cst_49 = arith.constant dense<0.000000e+00> : vector<2x256xf32>
      %99 = tpu.matmul %97, %98, %cst_49 {dimension_numbers = #tpu.dot_dimension_numbers<[1], [0], [0], [1], [0, 0, 1, 1], [], []>} : vector<2x512xbf16>, vector<512x256xbf16>, vector<2x256xf32> -> vector<2x256xf32>
      %c0_50 = arith.constant 0 : index
      %c0_51 = arith.constant 0 : index
      %100 = vector.load %arg21[%c0_50, %c0_51] : memref<1x256xf32, #tpu.memory_space<vmem>>, vector<1x256xf32>
      %101 = vector.broadcast %100 : vector<1x256xf32> to vector<2x256xf32>
      %102 = arith.addf %99, %101 : vector<2x256xf32>
      %c0_52 = arith.constant 0 : index
      %c0_53 = arith.constant 0 : index
      %103 = vector.load %arg22[%c0_52, %c0_53] : memref<1x256xf32, #tpu.memory_space<vmem>>, vector<1x256xf32>
      %c0_54 = arith.constant 0 : index
      %c0_55 = arith.constant 0 : index
      %104 = vector.load %arg23[%c0_54, %c0_55] : memref<1x256xf32, #tpu.memory_space<vmem>>, vector<1x256xf32>
      %cst_56 = arith.constant dense<0.000000e+00> : vector<256xf32>
      %105 = vector.multi_reduction <add>, %102, %cst_56 [0] : vector<2x256xf32> to vector<256xf32>
      %106 = vector.shape_cast %105 : vector<256xf32> to vector<1x256xf32>
      %cst_57 = arith.constant 5.000000e-01 : f32
      %107 = vector.broadcast %cst_57 : f32 to vector<1x256xf32>
      %108 = arith.mulf %106, %107 : vector<1x256xf32>
      %109 = arith.mulf %102, %102 : vector<2x256xf32>
      %cst_58 = arith.constant dense<0.000000e+00> : vector<256xf32>
      %110 = vector.multi_reduction <add>, %109, %cst_58 [0] : vector<2x256xf32> to vector<256xf32>
      %111 = vector.shape_cast %110 : vector<256xf32> to vector<1x256xf32>
      %cst_59 = arith.constant 5.000000e-01 : f32
      %112 = vector.broadcast %cst_59 : f32 to vector<1x256xf32>
      %113 = arith.mulf %111, %112 : vector<1x256xf32>
      %114 = arith.mulf %108, %108 : vector<1x256xf32>
      %115 = arith.subf %113, %114 : vector<1x256xf32>
      %cst_60 = arith.constant 0.000000e+00 : f32
      %116 = vector.broadcast %cst_60 : f32 to vector<1x256xf32>
      %117 = arith.maximumf %115, %116 : vector<1x256xf32>
      %118 = vector.broadcast %108 : vector<1x256xf32> to vector<2x256xf32>
      %119 = arith.subf %102, %118 : vector<2x256xf32>
      %cst_61 = arith.constant 9.99999974E-6 : f32
      %120 = vector.broadcast %cst_61 : f32 to vector<1x256xf32>
      %121 = arith.addf %117, %120 : vector<1x256xf32>
      %122 = math.rsqrt %121 : vector<1x256xf32>
      %123 = vector.broadcast %122 : vector<1x256xf32> to vector<2x256xf32>
      %124 = arith.mulf %119, %123 : vector<2x256xf32>
      %125 = vector.broadcast %103 : vector<1x256xf32> to vector<2x256xf32>
      %126 = arith.mulf %124, %125 : vector<2x256xf32>
      %127 = vector.broadcast %104 : vector<1x256xf32> to vector<2x256xf32>
      %128 = arith.addf %126, %127 : vector<2x256xf32>
      %cst_62 = arith.constant 0.000000e+00 : f32
      %129 = vector.broadcast %cst_62 : f32 to vector<2x256xf32>
      %130 = arith.maximumf %128, %129 : vector<2x256xf32>
      %c0_63 = arith.constant 0 : index
      %c0_64 = arith.constant 0 : index
      %131 = vector.load %arg24[%c0_63, %c0_64] : memref<256x9xf32, #tpu.memory_space<vmem>>, vector<256x9xf32>
      %cst_65 = arith.constant dense<0.000000e+00> : vector<2x9xf32>
      %132 = tpu.matmul %130, %131, %cst_65 {dimension_numbers = #tpu.dot_dimension_numbers<[1], [0], [0], [1], [0, 0, 1, 1], [], []>} : vector<2x256xf32>, vector<256x9xf32>, vector<2x9xf32> -> vector<2x9xf32>
      %c0_66 = arith.constant 0 : index
      %c0_67 = arith.constant 0 : index
      %133 = vector.load %arg25[%c0_66, %c0_67] : memref<1x9xf32, #tpu.memory_space<vmem>>, vector<1x9xf32>
      %134 = vector.broadcast %133 : vector<1x9xf32> to vector<2x9xf32>
      %135 = arith.addf %132, %134 : vector<2x9xf32>
      %c0_68 = arith.constant 0 : index
      %c0_69 = arith.constant 0 : index
      %136 = vector.load %arg39[%c0_68, %c0_69] : memref<2x9xf32, #tpu.memory_space<vmem>>, vector<2x9xf32>
      tpu.vector_store %arg39[%c0_68, %c0_69], %135 {strides = array<i32>} : memref<2x9xf32, #tpu.memory_space<vmem>>, vector<2x9xf32>,
    } else {
    }
    %c3_i32 = arith.constant 3 : i32
    %31 = arith.cmpi eq, %arg0, %c3_i32 : i32
    %32 = arith.extui %31 : i1 to i32
    %c0_i32_15 = arith.constant 0 : i32
    %33 = arith.cmpi ne, %32, %c0_i32_15 : i32
    scf.if %33 {
      %c0 = arith.constant 0 : index
      %c0_16 = arith.constant 0 : index
      %c0_17 = arith.constant 0 : index
      %34 = vector.load %arg3[%c0, %c0_16, %c0_17] : memref<1x16x3xf32, #tpu.memory_space<vmem>>, vector<1x16x3xf32>
      %35 = vector.shape_cast %34 : vector<1x16x3xf32> to vector<16x3xf32>
      %36 = arith.index_cast %arg1 : i32 to index
      %c0_18 = arith.constant 0 : index
      %37 = vector.load %arg39[%36, %c0_18] : memref<2x9xf32, #tpu.memory_space<vmem>>, vector<1x3xf32>
      %38 = vector.extract_strided_slice %35 {offsets = [0, 0], sizes = [16, 1], strides = [1, 1]} : vector<16x3xf32> to vector<16x1xf32>
      %39 = vector.broadcast %38 : vector<16x1xf32> to vector<16x3xf32>
      %40 = vector.broadcast %37 : vector<1x3xf32> to vector<16x3xf32>
      %41 = arith.mulf %39, %40 : vector<16x3xf32>
      %42 = arith.addf %35, %41 : vector<16x3xf32>
      %43 = arith.index_cast %arg1 : i32 to index
      %c3 = arith.constant 3 : index
      %44 = vector.load %arg39[%43, %c3] : memref<2x9xf32, #tpu.memory_space<vmem>>, vector<1x3xf32>
      %45 = vector.extract_strided_slice %35 {offsets = [0, 1], sizes = [16, 1], strides = [1, 1]} : vector<16x3xf32> to vector<16x1xf32>
      %46 = vector.broadcast %45 : vector<16x1xf32> to vector<16x3xf32>
      %47 = vector.broadcast %44 : vector<1x3xf32> to vector<16x3xf32>
      %48 = arith.mulf %46, %47 : vector<16x3xf32>
      %49 = arith.addf %42, %48 : vector<16x3xf32>
      %50 = arith.index_cast %arg1 : i32 to index
      %c6 = arith.constant 6 : index
      %51 = vector.load %arg39[%50, %c6] : memref<2x9xf32, #tpu.memory_space<vmem>>, vector<1x3xf32>
      %52 = vector.extract_strided_slice %35 {offsets = [0, 2], sizes = [16, 1], strides = [1, 1]} : vector<16x3xf32> to vector<16x1xf32>
      %53 = vector.broadcast %52 : vector<16x1xf32> to vector<16x3xf32>
      %54 = vector.broadcast %51 : vector<1x3xf32> to vector<16x3xf32>
      %55 = arith.mulf %53, %54 : vector<16x3xf32>
      %56 = arith.addf %49, %55 : vector<16x3xf32>
      %c0_19 = arith.constant 0 : index
      %c0_20 = arith.constant 0 : index
      %c0_21 = arith.constant 0 : index
      %57 = vector.load %arg26[%c0_19, %c0_20, %c0_21] : memref<1x16x3xf32, #tpu.memory_space<vmem>>, vector<1x16x3xf32>
      %58 = vector.shape_cast %57 : vector<1x16x3xf32> to vector<16x3xf32>
      %59 = vector.shape_cast %56 : vector<16x3xf32> to vector<1x16x3xf32>
      tpu.vector_store %arg26[%c0_19, %c0_20, %c0_21], %59 {strides = array<i32>} : memref<1x16x3xf32, #tpu.memory_space<vmem>>, vector<1x16x3xf32>,
    } else {
    }
    return
  }
  func.func @transform_0(%arg0: i32, %arg1: i32, %arg2: i32) -> (i32, i32, i32) {
    %c0_i32 = arith.constant 0 : i32
    %c0_i32_0 = arith.constant 0 : i32
    return %arg1, %arg2, %c0_i32 : i32, i32, i32
  }
  func.func @transform_1(%arg0: i32, %arg1: i32, %arg2: i32) -> (i32, i32) {
    %c0_i32 = arith.constant 0 : i32
    %c0_i32_0 = arith.constant 0 : i32
    %c0_i32_1 = arith.constant 0 : i32
    return %c0_i32, %c0_i32_0 : i32, i32
  }
  func.func @transform_2(%arg0: i32, %arg1: i32, %arg2: i32) -> (i32, i32) {
    %c0_i32 = arith.constant 0 : i32
    %c0_i32_0 = arith.constant 0 : i32
    %c0_i32_1 = arith.constant 0 : i32
    return %c0_i32, %c0_i32_0 : i32, i32
  }
  func.func @transform_3(%arg0: i32, %arg1: i32, %arg2: i32) -> (i32, i32) {
    %c0_i32 = arith.constant 0 : i32
    %c0_i32_0 = arith.constant 0 : i32
    %c0_i32_1 = arith.constant 0 : i32
    return %c0_i32, %c0_i32_0 : i32, i32
  }
  func.func @transform_4(%arg0: i32, %arg1: i32, %arg2: i32) -> (i32, i32) {
    %c0_i32 = arith.constant 0 : i32
    %c0_i32_0 = arith.constant 0 : i32
    %c0_i32_1 = arith.constant 0 : i32
    return %c0_i32, %c0_i32_0 : i32, i32
  }
  func.func @transform_5(%arg0: i32, %arg1: i32, %arg2: i32) -> (i32, i32) {
    %c0_i32 = arith.constant 0 : i32
    %c0_i32_0 = arith.constant 0 : i32
    %c0_i32_1 = arith.constant 0 : i32
    return %c0_i32, %c0_i32_0 : i32, i32
  }
  func.func @transform_6(%arg0: i32, %arg1: i32, %arg2: i32) -> (i32, i32) {
    %c0_i32 = arith.constant 0 : i32
    %c0_i32_0 = arith.constant 0 : i32
    %c0_i32_1 = arith.constant 0 : i32
    return %c0_i32, %c0_i32_0 : i32, i32
  }
  func.func @transform_7(%arg0: i32, %arg1: i32, %arg2: i32) -> (i32, i32) {
    %c0_i32 = arith.constant 0 : i32
    %c0_i32_0 = arith.constant 0 : i32
    %c0_i32_1 = arith.constant 0 : i32
    return %c0_i32, %c0_i32_0 : i32, i32
  }
  func.func @transform_8(%arg0: i32, %arg1: i32, %arg2: i32) -> (i32, i32) {
    %c0_i32 = arith.constant 0 : i32
    %c0_i32_0 = arith.constant 0 : i32
    %c0_i32_1 = arith.constant 0 : i32
    return %c0_i32, %c0_i32_0 : i32, i32
  }
  func.func @transform_9(%arg0: i32, %arg1: i32, %arg2: i32) -> (i32, i32) {
    %c0_i32 = arith.constant 0 : i32
    %c0_i32_0 = arith.constant 0 : i32
    %c0_i32_1 = arith.constant 0 : i32
    return %c0_i32, %c0_i32_0 : i32, i32
  }
  func.func @transform_10(%arg0: i32, %arg1: i32, %arg2: i32) -> (i32, i32) {
    %c0_i32 = arith.constant 0 : i32
    %c0_i32_0 = arith.constant 0 : i32
    %c0_i32_1 = arith.constant 0 : i32
    return %c0_i32, %c0_i32_0 : i32, i32
  }
  func.func @transform_11(%arg0: i32, %arg1: i32, %arg2: i32) -> (i32, i32) {
    %c0_i32 = arith.constant 0 : i32
    %c0_i32_0 = arith.constant 0 : i32
    %c0_i32_1 = arith.constant 0 : i32
    return %c0_i32, %c0_i32_0 : i32, i32
  }
  func.func @transform_12(%arg0: i32, %arg1: i32, %arg2: i32) -> (i32, i32) {
    %c0_i32 = arith.constant 0 : i32
    %c0_i32_0 = arith.constant 0 : i32
    %c0_i32_1 = arith.constant 0 : i32
    return %c0_i32, %c0_i32_0 : i32, i32
  }
  func.func @transform_13(%arg0: i32, %arg1: i32, %arg2: i32) -> (i32, i32) {
    %c0_i32 = arith.constant 0 : i32
    %c0_i32_0 = arith.constant 0 : i32
    %c0_i32_1 = arith.constant 0 : i32
    return %c0_i32, %c0_i32_0 : i32, i32
  }
  func.func @transform_14(%arg0: i32, %arg1: i32, %arg2: i32) -> (i32, i32) {
    %c0_i32 = arith.constant 0 : i32
    %c0_i32_0 = arith.constant 0 : i32
    %c0_i32_1 = arith.constant 0 : i32
    return %c0_i32, %c0_i32_0 : i32, i32
  }
  func.func @transform_15(%arg0: i32, %arg1: i32, %arg2: i32) -> (i32, i32) {
    %c0_i32 = arith.constant 0 : i32
    %c0_i32_0 = arith.constant 0 : i32
    %c0_i32_1 = arith.constant 0 : i32
    return %c0_i32, %c0_i32_0 : i32, i32
  }
  func.func @transform_16(%arg0: i32, %arg1: i32, %arg2: i32) -> (i32, i32) {
    %c0_i32 = arith.constant 0 : i32
    %c0_i32_0 = arith.constant 0 : i32
    %c0_i32_1 = arith.constant 0 : i32
    return %c0_i32, %c0_i32_0 : i32, i32
  }
  func.func @transform_17(%arg0: i32, %arg1: i32, %arg2: i32) -> (i32, i32) {
    %c0_i32 = arith.constant 0 : i32
    %c0_i32_0 = arith.constant 0 : i32
    %c0_i32_1 = arith.constant 0 : i32
    return %c0_i32, %c0_i32_0 : i32, i32
  }
  func.func @transform_18(%arg0: i32, %arg1: i32, %arg2: i32) -> (i32, i32) {
    %c0_i32 = arith.constant 0 : i32
    %c0_i32_0 = arith.constant 0 : i32
    %c0_i32_1 = arith.constant 0 : i32
    return %c0_i32, %c0_i32_0 : i32, i32
  }
  func.func @transform_19(%arg0: i32, %arg1: i32, %arg2: i32) -> (i32, i32) {
    %c0_i32 = arith.constant 0 : i32
    %c0_i32_0 = arith.constant 0 : i32
    %c0_i32_1 = arith.constant 0 : i32
    return %c0_i32, %c0_i32_0 : i32, i32
  }
  func.func @transform_20(%arg0: i32, %arg1: i32, %arg2: i32) -> (i32, i32) {
    %c0_i32 = arith.constant 0 : i32
    %c0_i32_0 = arith.constant 0 : i32
    %c0_i32_1 = arith.constant 0 : i32
    return %c0_i32, %c0_i32_0 : i32, i32
  }
  func.func @transform_21(%arg0: i32, %arg1: i32, %arg2: i32) -> (i32, i32) {
    %c0_i32 = arith.constant 0 : i32
    %c0_i32_0 = arith.constant 0 : i32
    %c0_i32_1 = arith.constant 0 : i32
    return %c0_i32, %c0_i32_0 : i32, i32
  }
  func.func @transform_22(%arg0: i32, %arg1: i32, %arg2: i32) -> (i32, i32) {
    %c0_i32 = arith.constant 0 : i32
    %c0_i32_0 = arith.constant 0 : i32
    %c0_i32_1 = arith.constant 0 : i32
    return %c0_i32, %c0_i32_0 : i32, i32
  }
  func.func @transform_23(%arg0: i32, %arg1: i32, %arg2: i32) -> (i32, i32, i32) {
    %c0_i32 = arith.constant 0 : i32
    %c0_i32_0 = arith.constant 0 : i32
    return %arg1, %arg2, %c0_i32 : i32, i32, i32
  }
}

</mosaic_0001>

<bundles_post_ra>
// kernel: alignment_forward.1
= control target key start
LH: loop header
LB: loop body
LE: loop exit
PB: predicated region body
PF: predicated region fallthrough
CT: control target
= control target key end

     0   :  { %s8727_s0 = inlined_call_operand.vmem [shape: f32[2,32,3], index: 0, kind: input, shape index: {}]   ;;  %s8728_s1 = inlined_call_operand.vmem [shape: f32[3,128], index: 1, kind: input, shape index: {}]   ;;  %s8729_s2 = inlined_call_operand.vmem [shape: f32[1,128], index: 2, kind: input, shape index: {}]   ;;  %s8730_s3 = inlined_call_operand.vmem [shape: f32[1,128], index: 3, kind: input, shape index: {}]   ;;  %s8731_s4 = inlined_call_operand.vmem [shape: f32[1,128], index: 4, kind: input, shape index: {}]   ;;  %s8732_s5 = inlined_call_operand.vmem [shape: bf16[128,256], index: 5, kind: input, shape index: {}]   ;;  %s8733_s6 = inlined_call_operand.vmem [shape: f32[1,256], index: 6, kind: input, shape index: {}]   ;;  %s8734_s7 = inlined_call_operand.vmem [shape: f32[1,256], index: 7, kind: input, shape index: {}]   ;;  %s8735_s8 = inlined_call_operand.vmem [shape: f32[1,256], index: 8, kind: input, shape index: {}]   ;;  %s8736_s9 = inlined_call_operand.hbm [shape: bf16[256,1024], index: 9, kind: input, shape index: {}]   ;;  %s8737_s10 = inlined_call_operand.vmem [shape: f32[1,1024], index: 10, kind: input, shape index: {}]   ;;  %s8738_s11 = inlined_call_operand.vmem [shape: f32[1,1024], index: 11, kind: input, shape index: {}]   ;;  %s8739_s12 = inlined_call_operand.vmem [shape: f32[1,1024], index: 12, kind: input, shape index: {}]   ;;  %s8740_s13 = inlined_call_operand.hbm [shape: bf16[1024,512], index: 13, kind: input, shape index: {}]   ;;  %s8741_s14 = inlined_call_operand.vmem [shape: f32[1,512], index: 14, kind: input, shape index: {}]   ;;  %s8742_s15 = inlined_call_operand.vmem [shape: f32[1,512], index: 15, kind: input, shape index: {}]   ;;  %s8743_s16 = inlined_call_operand.vmem [shape: f32[1,512], index: 16, kind: input, shape index: {}]   ;;  %s8744_s17 = inlined_call_operand.hbm [shape: bf16[512,256], index: 17, kind: input, shape index: {}]   ;;  %s8745_s18 = inlined_call_operand.vmem [shape: f32[1,256], index: 18, kind: input, shape index: {}]   ;;  %s8746_s19 = inlined_call_operand.vmem [shape: f32[1,256], index: 19, kind: input, shape index: {}]   ;;  %s8747_s20 = inlined_call_operand.vmem [shape: f32[1,256], index: 20, kind: input, shape index: {}]   ;;  %s8748_s21 = inlined_call_operand.vmem [shape: f32[256,9], index: 21, kind: input, shape index: {}]   ;;  %s8749_s22 = inlined_call_operand.vmem [shape: f32[1,9], index: 22, kind: input, shape index: {}]   ;;  %s8750_s23 = inlined_call_operand.vmem [shape: f32[2,32,3], index: 23, kind: output, shape index: {}]  }
   0x1   :  { %8758 = sst [smem:[#allocation23_spill]] %s8727_s0 }
   0x2   :  { %8759 = sst [smem:[#allocation24_spill]] %s8728_s1 }
   0x3   :  { %8760 = sst [smem:[#allocation25_spill]] %s8729_s2 }
   0x4   :  { %8761 = sst [smem:[#allocation26_spill]] %s8730_s3 }
   0x5   :  { %8762 = sst [smem:[#allocation27_spill]] %s8731_s4 }
   0x6   :  { %8763 = sst [smem:[#allocation28_spill]] %s8732_s5 }
   0x7   :  { %8764 = sst [smem:[#allocation29_spill]] %s8733_s6 }
   0x8   :  { %8765 = sst [smem:[#allocation30_spill]] %s8734_s7 }
   0x9   :  { %8766 = sst [smem:[#allocation31_spill]] %s8738_s11 }
   0xa   :  { %8767 = sst [smem:[#allocation32_spill]] %s8739_s12 }
   0xb   :  { %8768 = sst [smem:[#allocation33_spill]] %s8740_s13 }
   0xc   :  { %8769 = sst [smem:[#allocation34_spill]] %s8741_s14 }
   0xd   :  { %8770 = sst [smem:[#allocation35_spill]] %s8742_s15 }
   0xe   :  { %8771 = sst [smem:[#allocation36_spill]] %s8743_s16 }
   0xf   :  { %8772 = sst [smem:[#allocation37_spill]] %s8745_s18 }
  0x10   :  { %8773 = sst [smem:[#allocation38_spill]] %s8746_s19 }
  0x11   :  { %8774 = sst [smem:[#allocation39_spill]] %s8747_s20 }
  0x12   :  { %8775 = sst [smem:[#allocation40_spill]] %s8748_s21 }
  0x13   :  { %8776 = sst [smem:[#allocation41_spill]] %s8749_s22 }
  0x14   :  { %28 = vsyncpa [#allocation16], 0 }
  0x15   :  { %29 = vsyncpa [#allocation18], 0  ;;  %s7793_s4 = smov 0   ;;  %s7795_s30 = smov 0  }
  0x16   :  { %s7797_s24 = smov 0   ;;  %s7799_s25 = smov 0  }
  0x17   :  { %s7801_s5 = smov 0   ;;  %s7803_s1 = smov 0  }
  0x18   :  { %s7805_s26 = smov 0  }
  0x19 LB: > { %8777 = sst [smem:[#allocation22_spill]] %s7641_s26  ;;  %s7643_s2 = smov [#allocation17]   ;;  %s7641_s26 = sphi %s7805_s26, %s35_s26   ;;  %s7637_s1 = sphi %s7803_s1, %s8824_s1   ;;  %s7633_s5 = sphi %s7801_s5, %s8823_s5   ;;  %s7629_s25 = sphi %s7799_s25, %s8822_s25   ;;  %s7625_s24 = sphi %s7797_s24, %s8821_s24   ;;  %s7621_s30 = sphi %s7795_s30, %s8820_s30   ;;  %s7617_s4 = sphi %s7793_s4, %s8819_s4  }
  0x1a   : > { %s635_s6 = sshll.u32 %s7643_s2, 4  ;;  %s6200_s27 = sadd.s32 4294967295, %s7641_s26   ;;  %s636_s6 = int_to_ptr.vmem [resolvable:$true] %s635_s6 }
  0x1b   : > { %p6202_p0 = scmp.ge.s32.totalorder %s7641_s26, 1  ;;  %p577_p1 = scmp.lt.s32.totalorder %s7641_s26, 17 }
  0x1c   : > { %p7831_p2 = scmp.eq.s32.totalorder %s6200_s27, 0  ;;  %s8781_s13 = sld [smem:[#allocation33_spill]] }
  0x1d   : > { %p7835_p3 = pnand %p6202_p0, %p577_p1 }
  0x1e   : > { %s8778_s7 = scalar_select %p7831_p2, 1, 0 }
  0x1f   : > { %s8779_s28 = scalar_select %p7835_p3, 1, 0 }
  0x20   : > { %p6826_p4 = pneg %p7835_p3 }
  0x22   : > { %p7843_p5 = pnand %p7831_p2, %p6826_p4  ;;  %s7495_s2 = scalar_lea.hbm %s8781_s13, 32768 }
  0x23   : > { %p7496_p6 = scmp.ne.s32.totalorder %s8781_s13, %s7495_s2  ;;  %p7502_p10 = scmp.lt.u32.totalorder %s7495_s2, %s8781_s13 }
  0x24   : > { %p7855_p7 = pneg %p7843_p5 }
  0x26   : > { %p7498_p8 = pnand %p7855_p7, %p7496_p6 }
  0x28   : > { %p7499_p9 = pneg %p7498_p8 }
  0x2a   : > { %p7504_p11 = pnand %p7502_p10, %p7499_p9 }
  0x2c   : > { %7507 = shalt.err (!%p7504_p11)
}
  0x2d   : > { %s7508_s3 = scalar_lea.vmem %s636_s6, 32768  ;;  %p7516_p1 = scmp.lt.s32.totalorder %s636_s6, %s636_s6 }
  0x2e   : > { %p7509_p12 = scmp.ne.s32.totalorder %s636_s6, %s7508_s3  ;;  %p7517_p4 = scmp.lt.s32.totalorder %s7508_s3, %s7508_s3 }
  0x30   : > { %p7511_p13 = pnand %p7509_p12, %p7855_p7  ;;  %p7518_p2 = por %p7517_p4, %p7516_p1 }
  0x32   : > { %p7512_p0 = pneg %p7511_p13 }
  0x34   : > { %p7519_p3 = pnand %p7518_p2, %p7512_p0 }
  0x36   : > { %7522 = shalt.err (!%p7519_p3)
}
  0x37   : > { %s7644_s26 = smov 256   ;;  %s7645_s19 = smov 16  }
  0x38   : > { %6832 = dma.hbm_to_vmem [thread:$0]  (!%p7843_p5), %s8781_s13, 32768, %s636_s6, [#allocation18], %s7644_s26, %s7644_s26, %s7645_s19  }
  0x39   : > { %s47_s2 = sadd.s32 1, %s7629_s25  ;;  %s50_s27 = sadd.s32 1, %s7633_s5 }
  0x3a   : > { %p48_p6 = scmp.ge.s32.totalorder %s47_s2, 2  ;;  %s54_s3 = sadd.s32 1, %s7637_s1 }
  0x3b   : > { %s7646_s18 = smov [#allocation15]   ;;  %s7523_s14 = scalar_lea.hbm %s8736_s9, 16384 }
  0x3c   : > { %s8826_s2 = smov (%p48_p6, %s47_s2), 0  ;;  %s8828_s27 = smov (!%p48_p6, %s50_s27), %s7633_s5 }
  0x3d   : > { %s613_s21 = sshll.u32 %s7646_s18, 4  ;;  %p7524_p3 = scmp.ne.s32.totalorder %s8736_s9, %s7523_s14  ;;  %s614_s21 = int_to_ptr.vmem [resolvable:$true] %s613_s21 }
  0x3e   : > { %p7530_p10 = scmp.lt.u32.totalorder %s7523_s14, %s8736_s9 }
  0x3f   : > { %p7526_p8 = pnand %p7524_p3, %p7855_p7 }
  0x41   : > { %p7527_p9 = pneg %p7526_p8 }
  0x43   : > { %p7532_p11 = pnand %p7530_p10, %p7527_p9 }
  0x45   : > { %7535 = shalt.err (!%p7532_p11)
}
  0x46   : > { %s7536_s18 = scalar_lea.vmem %s614_s21, 16384  ;;  %p7544_p1 = scmp.lt.s32.totalorder %s614_s21, %s614_s21 }
  0x47   : > { %p7537_p12 = scmp.ne.s32.totalorder %s614_s21, %s7536_s18  ;;  %p7545_p4 = scmp.lt.s32.totalorder %s7536_s18, %s7536_s18 }
  0x49   : > { %p7539_p13 = pnand %p7537_p12, %p7855_p7  ;;  %p7546_p6 = por %p7545_p4, %p7544_p1 }
  0x4b   : > { %p7540_p0 = pneg %p7539_p13 }
  0x4d   : > { %p7547_p2 = pnand %p7546_p6, %p7540_p0 }
  0x4f   : > { %7550 = shalt.err (!%p7547_p2)
}
  0x50   : > { %s7647_s11 = smov 512   ;;  %s7648_s12 = smov 32  }
  0x51   : > { %6829 = dma.hbm_to_vmem [thread:$0]  (!%p7843_p5), %s8736_s9, 16384, %s614_s21, [#allocation16], %s7647_s11, %s7647_s11, %s7648_s12  }
  0x52   : > { %p8783_p3 = scmp.ge.s32.totalorder %s8828_s27, 2  ;;  %s7649_s19 = smov [#allocation19]  }
  0x53   : > { %s657_s20 = sshll.u32 %s7649_s19, 4  ;;  %s7551_s26 = scalar_lea.hbm %s8744_s17, 8192  ;;  %s658_s20 = int_to_ptr.vmem [resolvable:$true] %s657_s20 }
  0x54   : > { %s7896_s16 = scalar_select %p8783_p3, 0, %s8828_s27  }
  0x55   : > { %p8784_p8 = pmov %p8783_p3  ;;  %p7552_p2 = scmp.ne.s32.totalorder %s8744_s17, %s7551_s26 }
  0x56   : > { %p7558_p12 = scmp.lt.u32.totalorder %s7551_s26, %s8744_s17 }
  0x57   : > { %s8830_s3 = smov (!%p8784_p8, %s54_s3), %s7637_s1  ;;  %p7554_p10 = pnand %p7552_p2, %p7855_p7 }
  0x58   : > { %p56_p9 = scmp.ge.s32.totalorder %s8830_s3, 4 }
  0x59   : > { %p7555_p11 = pneg %p7554_p10 }
  0x5a   : > { %s8832_s3 = smov (%p56_p9, %s8830_s3), 0 }
  0x5b   : > { %p7560_p13 = pnand %p7558_p12, %p7555_p11 }
  0x5d   : > { %7563 = shalt.err (!%p7560_p13)
}
  0x5e   : > { %s7564_s11 = scalar_lea.vmem %s658_s20, 8192  ;;  %p7572_p6 = scmp.lt.s32.totalorder %s658_s20, %s658_s20 }
  0x5f   : > { %p7565_p0 = scmp.ne.s32.totalorder %s658_s20, %s7564_s11  ;;  %p7573_p3 = scmp.lt.s32.totalorder %s7564_s11, %s7564_s11 }
  0x61   : > { %p7567_p1 = pnand %p7565_p0, %p7855_p7  ;;  %p7574_p8 = por %p7573_p3, %p7572_p6 }
  0x63   : > { %p7568_p4 = pneg %p7567_p1 }
  0x65   : > { %p7575_p9 = pnand %p7574_p8, %p7568_p4 }
  0x67   : > { %7578 = shalt.err (!%p7575_p9)
}
  0x68   : > { %s7650_s13 = smov 128   ;;  %s7651_s12 = smov 8  }
  0x69   : > { %6835 = dma.hbm_to_vmem [thread:$0]  (!%p7843_p5), %s8744_s17, 8192, %s658_s20, [#allocation18], %s7650_s13, %s7650_s13, %s7651_s12  }
  0x6a   : > { %p8785_p2 = scmp.ne.s32.totalorder %s8779_s28, 0 }
  0x6b   : > { %p8786_p10 = scmp.ne.s32.totalorder (!%p8785_p2), %s8778_s7, 0 }
  0x6c   : > { %701 = sbr.rel (%p8785_p2) target bundleno = 2784 (0xae0), region = 112 }
  0x73   : > { %7608 = dma.done.wait (%p8786_p10), [#allocation16], 16384  }
  0x74   : > { %7610 = vsyncadd (%p8786_p10), [#allocation16], 4294950912 }
  0x75   : > { %7612 = dma.done.wait (%p8786_p10), [#allocation18], 40960  }
  0x76   : > { %7614 = vsyncadd (%p8786_p10), [#allocation18], 4294926336  ;;  %s6211_s22 = sshll.u32 %s7617_s4, 1  ;;  %p782_p5 = scmp.lt.s32.totalorder %s7621_s30, 1 }
  0x77   : > { %p784_p7 = scmp.lt.s32.totalorder %s6211_s22, 3  ;;  %p802_p11 = scmp.eq.s32.totalorder %s7625_s24, 0 }
  0x78   : > { %s783_s28 = scalar_select %p782_p5, %s7621_s30, 1 }
  0x79   : > { %s8834_s22 = smov (!%p784_p7, %s6211_s22), 3  ;;  %p803_p12 = scmp.eq.s32.totalorder %s7621_s30, 0 }
  0x7a   : > { %s6212_s29 = sshll.u32 %s783_s28, 2  ;;  %p806_p13 = scmp.eq.s32.totalorder %s7617_s4, 0 }
  0x7b   : > { %s787_s19 = sadd.s32 %s6212_s29, %s8834_s22  ;;  %p804_p0 = pnand %p803_p12, %p802_p11 }
  0x7c   : > { %s6213_s7 = sshll.u32 %s787_s19, 3  ;;  %s8787_s6 = sld [smem:[#allocation23_spill]] }
  0x7d   : > { %s7948_s27 = scalar_lea.vmem %s8750_s23, %s6213_s7  ;;  %p805_p1 = pneg %p804_p0 }
  0x7e   : > { %p809_p4 = scmp.eq.s32.totalorder %s7621_s30, 1  ;;  %p810_p6 = scmp.eq.s32.totalorder %s7617_s4, 1 }
  0x7f   : > { %p807_p3 = pnand %p806_p13, %p805_p1 }
  0x80   : > { %p7952_p8 = pnand %p810_p6, %p809_p4  ;;  %v817_v0 = vlaneseq (!%p807_p3)  ;;  %v7652_v1 = vmov (!%p807_p3), 0.0   ;;  %v7653_v2 = vmov (!%p807_p3), -inf   ;;  %v7654_v3 = vmov (!%p807_p3), inf  }
  0x81   : > { %814 = sbr.rel (%p807_p3) target bundleno = 136 (0x88), region = 128  ;;  %815 = vst [vmem:[#allocation2] sm:$0x1] (!%p807_p3), %v7652_v1  ;;  %816 = vst [vmem:[#allocation3] sm:$0x1] (!%p807_p3), %v7652_v1 }
  0x82   : > { %s7943_s26 = scalar_lea.vmem %s8787_s6, %s6213_s7  ;;  %p812_p9 = pneg %p7952_p8  ;;  %823 = vst [vmem:[#allocation6] sm:$0xff] (!%p807_p3), %v7652_v1  ;;  %824 = vst [vmem:[#allocation7] sm:$0xff] (!%p807_p3), %v7652_v1  ;;  %vm819_vm0 = vcmp.lt.s32.totalorder (!%p807_p3), %v817_v0, 256 }
  0x83   : > { %825 = vst [vmem:[#allocation12] sm:$0xff] (!%p807_p3), %v7653_v2  ;;  %826 = vst [vmem:[#allocation12 + $0x8] sm:$0xff] (!%p807_p3), %v7653_v2 }
  0x84   : > { %827 = vst [vmem:[#allocation13] sm:$0xff] (!%p807_p3), %v7654_v3  ;;  %828 = vst [vmem:[#allocation13 + $0x8] sm:$0xff] (!%p807_p3), %v7654_v3 }
  0x85   : > { %821 = vst.msk [vmem:[#allocation4] sm:$0x3] (!%p807_p3), %vm819_vm0, %v7652_v1  ;;  %822 = vst.msk [vmem:[#allocation5] sm:$0x3] (!%p807_p3), %vm819_vm0, %v7652_v1 }
  0x88 PF: > { %p6217_p2 = scmp.ne.s32.totalorder %s7625_s24, 0 }
  0x89   : > { %v832_v4 = vld [vmem:[%s7943_s26] sm:$0xff] (!%p6217_p2)  ;;  %v7655_v5 = vmov (!%p6217_p2), 1   ;;  %v7656_v6 = vmov (!%p6217_p2), 0   ;;  %v833_v7 = vld [vmem:[%s7943_s26 + $0x8] sm:$0xff] (!%p6217_p2)  ;;  %v7657_v8 = vmov (!%p6217_p2), 2   ;;  %v845_v9 = vlaneseq (!%p6217_p2)  ;;  %s8789_s12 = sld [smem:[#allocation24_spill]] (!%p6217_p2) }
  0x8a   : > { %831 = sbr.rel (%p6217_p2) target bundleno = 301 (0x12d), region = 132  ;;  %6929 = vset.pattern.permute.xlu1 (!%p6217_p2), %v7655_v5  ;;  %6928 = vset.pattern.permute.xlu0 (!%p6217_p2), %v7656_v6  ;;  %s8790_s22 = sld [smem:[#allocation25_spill]] (!%p6217_p2)  ;;  %v908_v50 = vld [vmem:[#allocation2] sm:$0x1] (!%p6217_p2)  ;;  %v911_v53 = vld [vmem:[#allocation3] sm:$0x1] (!%p6217_p2) }
  0x8b   : > { %852 = vperm.xlu1 (!%p6217_p2), %6929, %v832_v4   ;;  %837 = vperm.xlu0 (!%p6217_p2), %6928, %v832_v4   ;;  %v846_v10 = vshrl.u32 (!%p6217_p2), %v845_v9, 7 }
  0x8d   : > { %v861_v11 = vsub.s32 (!%p6217_p2), 1, %v846_v10  ;;  %v847_v12 = vsub.s32 (!%p6217_p2), 0, %v846_v10  ;;  %v877_v16 = vsub.s32 (!%p6217_p2), 2, %v846_v10 }
  0x8f   : > { %856 = vperm.xlu1 (!%p6217_p2), %6929, %v833_v7   ;;  %842 = vperm.xlu0 (!%p6217_p2), %6928, %v833_v7   ;;  %v834_v13 = vld [vmem:[%s8789_s12] sm:$0x7] (!%p6217_p2) }
  0x90   : > { %v862_v17 = vrot.slane (!%p6217_p2), %v834_v13, %v861_v11  ;;  %v848_v18 = vrot.slane (!%p6217_p2), %v834_v13, %v847_v12  ;;  %v878_v21 = vrot.slane (!%p6217_p2), %v834_v13, %v877_v16  ;;  %v6218_v32 = vld [vmem:[%s8790_s22] ss:$0 sm:$0xff] (!%p6217_p2) }
  0x93   : > { %6931 = vset.pattern.permute.xlu1 %v7657_v8  ;;  %6930 = vset.pattern.permute.xlu0 %v7657_v8 }
  0x94   : > { %872 = vperm.xlu1 %6931, %v833_v7   ;;  %868 = vperm.xlu0 %6930, %v832_v4  }
 0x10a   : > { %v853_v14 = vpop.permute.xlu1 %852  ;;  %v838_v15 = vpop.permute.xlu0 %837 }
 0x10b   : > { %v863_v22 = vmul.f32 %v862_v17, %v853_v14  ;;  %v849_v23 = vmul.f32 %v848_v18, %v838_v15 }
 0x10d   : > { %v865_v28 = vadd.f32 %v863_v22, %v849_v23 }
 0x10e   : > { %v857_v19 = vpop.permute.xlu1 %856  ;;  %v843_v20 = vpop.permute.xlu0 %842 }
 0x10f   : > { %v864_v24 = vmul.f32 %v862_v17, %v857_v19  ;;  %v850_v25 = vmul.f32 %v848_v18, %v843_v20 }
 0x111   : > { %v866_v29 = vadd.f32 %v864_v24, %v850_v25 }
 0x113   : > { %v873_v26 = vpop.permute.xlu1 %872  ;;  %v869_v27 = vpop.permute.xlu0 %868 }
 0x114   : > { %v880_v30 = vmul.f32 %v878_v21, %v873_v26  ;;  %v879_v31 = vmul.f32 %v878_v21, %v869_v27 }
 0x116   : > { %v882_v33 = vadd.f32 %v880_v30, %v866_v29  ;;  %v881_v34 = vadd.f32 %v879_v31, %v865_v28 }
 0x118   : > { %v891_v35 = vadd.f32 %v6218_v32, %v882_v33  ;;  %v890_v36 = vadd.f32 %v6218_v32, %v881_v34 }
 0x11a   : > { %v900_v37 = vmul.f32 %v891_v35, %v891_v35  ;;  %v892_v38 = vadd.f32 %v891_v35, %v890_v36  ;;  %v899_v39 = vmul.f32 %v890_v36, %v890_v36 }
 0x11c   : > { %v893_v40 = vrot.slane %v892_v38, 4  ;;  %v901_v41 = vadd.f32 %v900_v37, %v899_v39 }
 0x11e   : > { %v894_v42 = vadd.f32 %v893_v40, %v892_v38  ;;  %v902_v43 = vrot.slane %v901_v41, 4 }
 0x120   : > { %v895_v44 = vrot.slane %v894_v42, 2  ;;  %v903_v45 = vadd.f32 %v902_v43, %v901_v41 }
 0x122   : > { %v896_v46 = vadd.f32 %v895_v44, %v894_v42  ;;  %v904_v47 = vrot.slane %v903_v45, 2 }
 0x124   : > { %v897_v48 = vrot.slane %v896_v46, 1  ;;  %v905_v49 = vadd.f32 %v904_v47, %v903_v45 }
 0x126   : > { %v898_v51 = vadd.f32 %v897_v48, %v896_v46  ;;  %v906_v52 = vrot.slane %v905_v49, 1 }
 0x128   : > { %v907_v54 = vadd.f32 %v906_v52, %v905_v49  ;;  %v909_v55 = vadd.f32 %v908_v50, %v898_v51 }
 0x12a   : > { %910 = vst [vmem:[#allocation2] sm:$0x1] %v909_v55  ;;  %v912_v56 = vadd.f32 %v911_v53, %v907_v54 }
 0x12c   : > { %913 = vst [vmem:[#allocation3] sm:$0x1] %v912_v56 }
 0x12d PF: > { %p914_p10 = pnand %p812_p9, %p802_p11 }
 0x12e   : > { %s8791_s19 = sld [smem:[#allocation26_spill]] (!%p914_p10)  ;;  %s8792_s0 = sld [smem:[#allocation27_spill]] (!%p914_p10) }
 0x12f   : > { %917 = sbr.rel (%p914_p10) target bundleno = 334 (0x14e), region = 136 }
 0x131   : > { %v918_v57 = vld [vmem:[#allocation2] sm:$0x1] (!%p914_p10) }
 0x132   : > { %v919_v59 = vmul.f32 (!%p914_p10), 0.015625, %v918_v57 }
 0x133   : > { %v920_v58 = vld [vmem:[#allocation3] sm:$0x1] (!%p914_p10) }
 0x134   : > { %v921_v60 = vmul.f32 (!%p914_p10), 0.015625, %v920_v58  ;;  %v922_v61 = vmul.f32 (!%p914_p10), %v919_v59, %v919_v59  ;;  %v925_v1 = vld [vmem:[%s8791_s19] sm:$0x1] (!%p914_p10) }
 0x135   : > { %v930_v4 = vld [vmem:[%s8792_s0] sm:$0x1] (!%p914_p10) }
 0x136   : > { %v923_v62 = vsub.f32 %v921_v60, %v922_v61 }
 0x138   : > { %v924_v63 = vmax.f32 %v923_v62, 0.0 }
 0x13a   : > { %v926_v0 = vadd.f32 1e-05, %v924_v63 }
 0x13c   : > { %6932 = vrsqrt.f32 %v926_v0 }
 0x146   : > { %v6933_v2 = vpop.eup %6932 }
 0x147   : > { %v928_v3 = vmul.f32 %v6933_v2, %v925_v1 }
 0x149   : > { %929 = vst [vmem:[#allocation8] sm:$0x1] %v928_v3  ;;  %v931_v5 = vmul.f32 %v928_v3, %v919_v59 }
 0x14b   : > { %v932_v6 = vsub.f32 %v930_v4, %v931_v5 }
 0x14d   : > { %933 = vst [vmem:[#allocation9] sm:$0x1] %v932_v6 }
 0x14e PF: > { %p934_p5 = scmp.eq.s32.totalorder %s7625_s24, 1  ;;  %p6219_p7 = scmp.ne.s32.totalorder %s7625_s24, 1 }
 0x14f   : > { %v938_v7 = vld [vmem:[%s7943_s26] sm:$0xff] (!%p6219_p7)  ;;  %v7658_v8 = vmov (!%p6219_p7), 1   ;;  %v7659_v9 = vmov (!%p6219_p7), 0   ;;  %s8793_s21 = sld [smem:[#allocation28_spill]] (!%p6219_p7)  ;;  %v939_v13 = vld [vmem:[%s7943_s26 + $0x8] sm:$0xff] (!%p6219_p7)  ;;  %v7660_v18 = vmov (!%p6219_p7), 2   ;;  %v951_v28 = vlaneseq (!%p6219_p7) }
 0x150   : > { %937 = sbr.rel (%p6219_p7) target bundleno = 730 (0x2da), region = 140  ;;  %6935 = vset.pattern.permute.xlu1 (!%p6219_p7), %v7658_v8  ;;  %6934 = vset.pattern.permute.xlu0 (!%p6219_p7), %v7659_v9  ;;  %s8794_s15 = sld [smem:[#allocation24_spill]] (!%p6219_p7)  ;;  %v6221_v54 = vld [vmem:[#allocation8] ss:$0 sm:$0xff] (!%p6219_p7) }
 0x151   : > { %958 = vperm.xlu1 (!%p6219_p7), %6935, %v938_v7   ;;  %943 = vperm.xlu0 (!%p6219_p7), %6934, %v938_v7   ;;  %v8031_v29 = vshrl.u32 (!%p6219_p7), %v951_v28, 7  ;;  %s8795_s28 = sld [smem:[#allocation25_spill]] (!%p6219_p7)  ;;  %s8796_s7 = sld [smem:[#allocation29_spill]] (!%p6219_p7)  ;;  %vm1224_vm1 = vcmp.lt.s32.totalorder (!%p6219_p7), %v951_v28, 256 }
 0x152   : > { %1159 = vmatprep.mubr.bf16.mxu0 (!%p6219_p7), %v7659_v9 }
 0x153   : > { %v967_v30 = vsub.s32 (!%p6219_p7), 1, %v8031_v29  ;;  %v953_v31 = vsub.s32 (!%p6219_p7), 0, %v8031_v29  ;;  %v983_v35 = vsub.s32 (!%p6219_p7), 2, %v8031_v29 }
 0x154   : > { %v6222_v57 = vld [vmem:[#allocation9] ss:$0 sm:$0xff] (!%p6219_p7) }
 0x155   : > { %v6938_v10 = vld [vmem:[%s8793_s21 + $0x4] ss:$8 sps:$4 sm:$0xff] (!%p6219_p7)   ;;  %v6940_v11 = vld [vmem:[%s8793_s21] ss:$8 sps:$4 sm:$0xff] (!%p6219_p7)   ;;  %v6941_v12 = vld [vmem:[%s8793_s21 + $0x14] ss:$8 sps:$4 sm:$0xff] (!%p6219_p7)   ;;  %962 = vperm.xlu1 (!%p6219_p7), %6935, %v939_v13   ;;  %948 = vperm.xlu0 (!%p6219_p7), %6934, %v939_v13  }
 0x156   : > { %1127 = vmatprep.subr.bf16.mxu0 (!%p6219_p7), %v6938_v10  ;;  %v6943_v14 = vld [vmem:[%s8793_s21 + $0x10] ss:$8 sps:$4 sm:$0xff] (!%p6219_p7)   ;;  %v6944_v15 = vld [vmem:[%s8793_s21 + $0x24] ss:$8 sps:$4 sm:$0xff] (!%p6219_p7)   ;;  %v6946_v16 = vld [vmem:[%s8793_s21 + $0x20] ss:$8 sps:$4 sm:$0xff] (!%p6219_p7)  }
 0x157   : > { %1128 = vmatpush1.bf16.msra.mxu0 %v6940_v11  ;;  %v6947_v17 = vld [vmem:[%s8793_s21 + $0x34] ss:$8 sps:$4 sm:$0xff]   ;;  %v6949_v19 = vld [vmem:[%s8793_s21 + $0x30] ss:$8 sps:$4 sm:$0xff]   ;;  %v6950_v20 = vld [vmem:[%s8793_s21 + $0x44] ss:$8 sps:$4 sm:$0xff]  }
 0x158   : > { %1129 = vmatprep.subr.bf16.mxu0 %v6941_v12  ;;  %v6952_v21 = vld [vmem:[%s8793_s21 + $0x40] ss:$8 sps:$4 sm:$0xff]   ;;  %v6953_v22 = vld [vmem:[%s8793_s21 + $0x54] ss:$8 sps:$4 sm:$0xff]   ;;  %v6955_v23 = vld [vmem:[%s8793_s21 + $0x50] ss:$8 sps:$4 sm:$0xff]  }
 0x159   : > { %6937 = vset.pattern.permute.xlu1 %v7660_v18  ;;  %6936 = vset.pattern.permute.xlu0 %v7660_v18  ;;  %v6956_v24 = vld [vmem:[%s8793_s21 + $0x64] ss:$8 sps:$4 sm:$0xff]   ;;  %v6958_v25 = vld [vmem:[%s8793_s21 + $0x60] ss:$8 sps:$4 sm:$0xff]   ;;  %v6959_v26 = vld [vmem:[%s8793_s21 + $0x74] ss:$8 sps:$4 sm:$0xff]  }
 0x15a   : > { %978 = vperm.xlu1 %6937, %v939_v13   ;;  %974 = vperm.xlu0 %6936, %v938_v7   ;;  %v6961_v27 = vld [vmem:[%s8793_s21 + $0x70] ss:$8 sps:$4 sm:$0xff]   ;;  %v940_v32 = vld [vmem:[%s8794_s15] sm:$0x7] }
 0x15b   : > { %1130 = vmatpush1.bf16.msra.mxu0 %v6943_v14  ;;  %v968_v36 = vrot.slane %v940_v32, %v967_v30  ;;  %v954_v37 = vrot.slane %v940_v32, %v953_v31  ;;  %v984_v40 = vrot.slane %v940_v32, %v983_v35  ;;  %v6220_v51 = vld [vmem:[%s8795_s28] ss:$0 sm:$0xff] }
 0x15c   : > { %1131 = vmatprep.subr.bf16.mxu0 %v6944_v15  ;;  %v1035_v1 = vld [vmem:[%s8796_s7] sm:$0x3] }
 0x15d   : > { %v1040_v2 = vrot.slane %v1035_v1, %v953_v31  ;;  %v1044_v3 = vrot.slane %v1035_v1, %v967_v30 }
 0x15f   : > { %1132 = vmatpush1.bf16.msra.mxu0 %v6946_v16 }
 0x160   : > { %1133 = vmatprep.subr.bf16.mxu0 %v6947_v17 }
 0x163   : > { %1134 = vmatpush1.bf16.msra.mxu0 %v6949_v19 }
 0x164   : > { %1135 = vmatprep.subr.bf16.mxu0 %v6950_v20 }
 0x167   : > { %1136 = vmatpush1.bf16.msra.mxu0 %v6952_v21 }
 0x168   : > { %1137 = vmatprep.subr.bf16.mxu0 %v6953_v22 }
 0x16b   : > { %1138 = vmatpush1.bf16.msra.mxu0 %v6955_v23 }
 0x16c   : > { %1139 = vmatprep.subr.bf16.mxu0 %v6956_v24 }
 0x16f   : > { %1140 = vmatpush1.bf16.msra.mxu0 %v6958_v25 }
 0x170   : > { %1141 = vmatprep.subr.bf16.mxu0 %v6959_v26  ;;  %v7661_v26 = vmov 1966171168  }
 0x173   : > { %1142 = vmatpush1.bf16.msra.mxu0 %v6961_v27  ;;  %v1207_v27 = vunpack.c.l.s4 %v7661_v26 }
 0x1d0   : > { %v959_v33 = vpop.permute.xlu1 %958  ;;  %v944_v34 = vpop.permute.xlu0 %943 }
 0x1d1   : > { %v969_v41 = vmul.f32 %v968_v36, %v959_v33  ;;  %v955_v42 = vmul.f32 %v954_v37, %v944_v34 }
 0x1d3   : > { %v971_v47 = vadd.f32 %v969_v41, %v955_v42 }
 0x1d4   : > { %v963_v38 = vpop.permute.xlu1 %962  ;;  %v949_v39 = vpop.permute.xlu0 %948 }
 0x1d5   : > { %v970_v43 = vmul.f32 %v968_v36, %v963_v38  ;;  %v956_v44 = vmul.f32 %v954_v37, %v949_v39  ;;  %v1208_v38 = vunpack.c.0.s8 %v1207_v27 }
 0x1d7   : > { %v972_v48 = vadd.f32 %v970_v43, %v956_v44 }
 0x1d9   : > { %v979_v45 = vpop.permute.xlu1 %978  ;;  %v975_v46 = vpop.permute.xlu0 %974 }
 0x1da   : > { %v986_v49 = vmul.f32 %v984_v40, %v979_v45  ;;  %v985_v50 = vmul.f32 %v984_v40, %v975_v46 }
 0x1dc   : > { %v988_v52 = vadd.f32 %v986_v49, %v972_v48  ;;  %v987_v53 = vadd.f32 %v985_v50, %v971_v47  ;;  %v1211_v47 = vsub.s32 %v1208_v38, %v8031_v29 }
 0x1de   : > { %v997_v55 = vadd.f32 %v6220_v51, %v988_v52  ;;  %v996_v56 = vadd.f32 %v6220_v51, %v987_v53  ;;  %v1202_v53 = vld [vmem:[#allocation4] sm:$0x3] }
 0x1e0   : > { %v1006_v58 = vmul.f32 %v6221_v54, %v997_v55  ;;  %v1005_v59 = vmul.f32 %v6221_v54, %v996_v56  ;;  %v1227_v56 = vld [vmem:[#allocation5] sm:$0x3] }
 0x1e2   : > { %v1014_v60 = vadd.f32 %v6222_v57, %v1005_v59  ;;  %v1015_v61 = vadd.f32 %v6222_v57, %v1006_v58 }
 0x1e4   : > { %v1016_v62 = vmax.f32 %v1014_v60, 0.0  ;;  %v1017_v63 = vmax.f32 %v1015_v61, 0.0 }
 0x1e6   : > { %v1018_v0 = vpack.c.bf16 %v1017_v63, %v1016_v62 }
 0x1e8   : > { %1160 = vmatmul.mubr.bf16.vlgmr.msra.gmra.mrb[0].mxu0 %v1018_v0 }
 0x2bb   : > { %v1161_v4 = vpop.f32.mrb[0].mxu0 }
 0x2bc   : > { %v1162_v5 = vadd.f32 %v1161_v4, %v1040_v2  ;;  %v1163_v6 = vpop.f32.mrb[1].mxu0 }
 0x2bd   : > { %v1164_v7 = vadd.f32 %v1163_v6, %v1044_v3  ;;  %v1165_v8 = vpop.f32.mrb[2].mxu0 }
 0x2be   : > { %v1166_v9 = vadd.f32 %v1165_v8, %v1040_v2  ;;  %v1167_v10 = vpop.f32.mrb[3].mxu0  ;;  %v1184_v12 = vmul.f32 %v1162_v5, %v1162_v5 }
 0x2bf   : > { %v1168_v11 = vadd.f32 %v1167_v10, %v1044_v3  ;;  %v1185_v15 = vmul.f32 %v1164_v7, %v1164_v7 }
 0x2c0   : > { %v1170_v13 = vadd.f32 %v1166_v9, %v1162_v5  ;;  %v1186_v14 = vmul.f32 %v1166_v9, %v1166_v9 }
 0x2c1   : > { %v1177_v16 = vadd.f32 %v1168_v11, %v1164_v7  ;;  %v1187_v17 = vmul.f32 %v1168_v11, %v1168_v11 }
 0x2c2   : > { %v1171_v18 = vrot.slane %v1170_v13, 4  ;;  %v1188_v19 = vadd.f32 %v1186_v14, %v1184_v12 }
 0x2c3   : > { %v1178_v20 = vrot.slane %v1177_v16, 4  ;;  %v1195_v21 = vadd.f32 %v1187_v17, %v1185_v15 }
 0x2c4   : > { %v1172_v22 = vadd.f32 %v1171_v18, %v1170_v13  ;;  %v1189_v23 = vrot.slane %v1188_v19, 4 }
 0x2c5   : > { %v1179_v24 = vadd.f32 %v1178_v20, %v1177_v16  ;;  %v1196_v25 = vrot.slane %v1195_v21, 4 }
 0x2c6   : > { %v1173_v30 = vrot.slane %v1172_v22, 2  ;;  %v1190_v31 = vadd.f32 %v1189_v23, %v1188_v19 }
 0x2c7   : > { %v1180_v32 = vrot.slane %v1179_v24, 2  ;;  %v1197_v33 = vadd.f32 %v1196_v25, %v1195_v21 }
 0x2c8   : > { %v1174_v34 = vadd.f32 %v1173_v30, %v1172_v22  ;;  %v1191_v35 = vrot.slane %v1190_v31, 2 }
 0x2c9   : > { %v1181_v36 = vadd.f32 %v1180_v32, %v1179_v24  ;;  %v1198_v37 = vrot.slane %v1197_v33, 2 }
 0x2ca   : > { %v1175_v39 = vrot.slane %v1174_v34, 1  ;;  %v1192_v40 = vadd.f32 %v1191_v35, %v1190_v31 }
 0x2cb   : > { %v1182_v41 = vrot.slane %v1181_v36, 1  ;;  %v1199_v42 = vadd.f32 %v1198_v37, %v1197_v33 }
 0x2cc   : > { %v1176_v43 = vadd.f32 %v1175_v39, %v1174_v34  ;;  %v1193_v44 = vrot.slane %v1192_v40, 1 }
 0x2cd   : > { %v1183_v45 = vadd.f32 %v1182_v41, %v1181_v36  ;;  %v1200_v46 = vrot.slane %v1199_v42, 1 }
 0x2ce   : > { %v1194_v48 = vadd.f32 %v1193_v44, %v1192_v40 }
 0x2cf   : > { %v1201_v49 = vadd.f32 %v1200_v46, %v1199_v42  ;;  %v1205_v50 = vcombine.low %v1176_v43, %v1183_v45 }
 0x2d1   : > { %v1212_v51 = vrot.slane %v1205_v50, %v1211_v47  ;;  %v1230_v52 = vcombine.low %v1194_v48, %v1201_v49 }
 0x2d3   : > { %v1219_v54 = vrot.slane %v1212_v51, %v1211_v47  ;;  %v1237_v55 = vrot.slane %v1230_v52, %v1211_v47 }
 0x2d5   : > { %v1221_v57 = vadd.f32 %v1219_v54, %v1202_v53  ;;  %v1244_v58 = vrot.slane %v1237_v55, %v1211_v47 }
 0x2d7   : > { %1226 = vst.msk [vmem:[#allocation4] sm:$0x3] %vm1224_vm1, %v1221_v57  ;;  %v1246_v59 = vadd.f32 %v1244_v58, %v1227_v56 }
 0x2d9   : > { %1247 = vst.msk [vmem:[#allocation5] sm:$0x3] %vm1224_vm1, %v1246_v59 }
 0x2da PF: > { %p1248_p11 = pnand %p934_p5, %p812_p9 }
 0x2db   : > { %v1263_v2 = vlaneseq (!%p1248_p11)  ;;  %s8797_s6 = sld [smem:[#allocation30_spill]] (!%p1248_p11)  ;;  %v1268_v6 = vld [vmem:[%s8735_s8] sm:$0x3] (!%p1248_p11) }
 0x2dc   : > { %1251 = sbr.rel (%p1248_p11) target bundleno = 763 (0x2fb), region = 144 }
 0x2dd   : > { %vm1265_vm2 = vcmp.lt.s32.totalorder (!%p1248_p11), %v1263_v2, 256 }
 0x2de   : > { %v1252_v29 = vld [vmem:[#allocation4] sm:$0x3] (!%p1248_p11) }
 0x2df   : > { %v1253_v61 = vmul.f32 (!%p1248_p11), 0.015625, %v1252_v29 }
 0x2e0   : > { %v1254_v60 = vld [vmem:[#allocation5] sm:$0x3] (!%p1248_p11) }
 0x2e1   : > { %v1255_v62 = vmul.f32 (!%p1248_p11), 0.015625, %v1254_v60  ;;  %v1256_v63 = vmul.f32 (!%p1248_p11), %v1253_v61, %v1253_v61  ;;  %v1259_v3 = vld [vmem:[%s8797_s6] sm:$0x3] (!%p1248_p11) }
 0x2e3   : > { %v1257_v28 = vsub.f32 %v1255_v62, %v1256_v63 }
 0x2e5   : > { %v1258_v0 = vmax.f32 %v1257_v28, 0.0 }
 0x2e7   : > { %v1260_v1 = vadd.f32 1e-05, %v1258_v0 }
 0x2e9   : > { %6962 = vrsqrt.f32 %v1260_v1 }
 0x2f3   : > { %v6963_v4 = vpop.eup %6962 }
 0x2f4   : > { %v1262_v5 = vmul.f32 %v6963_v4, %v1259_v3 }
 0x2f6   : > { %1267 = vst.msk [vmem:[#allocation10] sm:$0x3] %vm1265_vm2, %v1262_v5  ;;  %v1269_v7 = vmul.f32 %v1262_v5, %v1253_v61 }
 0x2f8   : > { %v1270_v8 = vsub.f32 %v1268_v6, %v1269_v7 }
 0x2fa   : > { %1271 = vst.msk [vmem:[#allocation11] sm:$0x3] %vm1265_vm2, %v1270_v8 }
 0x2fb PF: > { %p1272_p12 = scmp.eq.s32.totalorder %s7625_s24, 2  ;;  %p6239_p13 = scmp.ne.s32.totalorder %s7625_s24, 2 }
 0x2fc   : > { %v1276_v9 = vld [vmem:[%s7943_s26] sm:$0xff] (!%p6239_p13)  ;;  %v7662_v10 = vmov (!%p6239_p13), 1   ;;  %v7663_v11 = vmov (!%p6239_p13), 0   ;;  %s8798_s14 = sld [smem:[#allocation28_spill]] (!%p6239_p13)  ;;  %v1277_v15 = vld [vmem:[%s7943_s26 + $0x8] sm:$0xff] (!%p6239_p13)  ;;  %v7664_v20 = vmov (!%p6239_p13), 2  }
 0x2fd   : > { %1275 = sbr.rel (%p6239_p13) target bundleno = 1467 (0x5bb), region = 148  ;;  %6965 = vset.pattern.permute.xlu1 (!%p6239_p13), %v7662_v10  ;;  %6964 = vset.pattern.permute.xlu0 (!%p6239_p13), %v7663_v11  ;;  %v1546_v31 = vld [vmem:[#allocation15] sm:$0xff] (!%p6239_p13)  ;;  %v8107_v33 = vld [vmem:[#allocation15 + $0x8] sm:$0xff] (!%p6239_p13)  ;;  %s8799_s28 = sld [smem:[#allocation24_spill]] (!%p6239_p13) }
 0x2fe   : > { %1296 = vperm.xlu1 (!%p6239_p13), %6965, %v1276_v9   ;;  %1281 = vperm.xlu0 (!%p6239_p13), %6964, %v1276_v9   ;;  %v1550_v32 = vld [vmem:[#allocation15 + $0x20] sm:$0xff] (!%p6239_p13)  ;;  %v8109_v35 = vld [vmem:[#allocation15 + $0x28] sm:$0xff] (!%p6239_p13)  ;;  %s8800_s7 = sld [smem:[#allocation25_spill]] (!%p6239_p13)  ;;  %s8801_s6 = sld [smem:[#allocation29_spill]] (!%p6239_p13) }
 0x2ff   : > { %1497 = vmatprep.mubr.bf16.mxu0 (!%p6239_p13), %v7663_v11  ;;  %v6260_v34 = vcombine.high (!%p6239_p13), %v1546_v31, %v1550_v32  ;;  %v6259_v36 = vcombine.low (!%p6239_p13), %v1546_v31, %v1550_v32  ;;  %v1554_v37 = vld [vmem:[#allocation15 + $0x40] sm:$0xff] (!%p6239_p13)  ;;  %v6261_v39 = vcombine.low (!%p6239_p13), %v8107_v33, %v8109_v35  ;;  %v6262_v42 = vcombine.high (!%p6239_p13), %v8107_v33, %v8109_v35  ;;  %s2890_s13 = sshra.s32 (!%p6239_p13), %s7621_s30, 1  ;;  %s2893_s12 = sand.u32 (!%p6239_p13), 1, %s7621_s30 }
 0x300   : > { %v1558_v38 = vld [vmem:[#allocation15 + $0x60] sm:$0xff] (!%p6239_p13)  ;;  %s6714_s15 = sshll.u32 (!%p6239_p13), %s2890_s13, 4 }
 0x301   : > { %v6268_v40 = vcombine.high (!%p6239_p13), %v1554_v37, %v1558_v38  ;;  %2356 = vmatprep.subr.bf16.mxu1 (!%p6239_p13), %v6260_v34  ;;  %v6267_v43 = vcombine.low (!%p6239_p13), %v1554_v37, %v1558_v38  ;;  %v1562_v44 = vld [vmem:[#allocation15 + $0x80] sm:$0xff] (!%p6239_p13)  ;;  %s8333_s21 = sadd.s32 (!%p6239_p13), %s6714_s15, %s2893_s12 }
 0x302   : > { %v6968_v12 = vld [vmem:[%s8798_s14 + $0x4] ss:$8 sps:$4 sm:$0xff] (!%p6239_p13)   ;;  %v6970_v13 = vld [vmem:[%s8798_s14] ss:$8 sps:$4 sm:$0xff] (!%p6239_p13)   ;;  %v6971_v14 = vld [vmem:[%s8798_s14 + $0x14] ss:$8 sps:$4 sm:$0xff] (!%p6239_p13)   ;;  %1300 = vperm.xlu1 (!%p6239_p13), %6965, %v1277_v15   ;;  %1286 = vperm.xlu0 (!%p6239_p13), %6964, %v1277_v15  }
 0x303   : > { %1465 = vmatprep.subr.bf16.mxu0 (!%p6239_p13), %v6968_v12  ;;  %v6973_v16 = vld [vmem:[%s8798_s14 + $0x10] ss:$8 sps:$4 sm:$0xff] (!%p6239_p13)   ;;  %v6974_v17 = vld [vmem:[%s8798_s14 + $0x24] ss:$8 sps:$4 sm:$0xff] (!%p6239_p13)   ;;  %v6976_v18 = vld [vmem:[%s8798_s14 + $0x20] ss:$8 sps:$4 sm:$0xff] (!%p6239_p13)   ;;  %2357 = vmatpush1.bf16.msra.mxu1 (!%p6239_p13), %v6259_v36 }
 0x304   : > { %1466 = vmatpush1.bf16.msra.mxu0 %v6970_v13  ;;  %v6977_v19 = vld [vmem:[%s8798_s14 + $0x34] ss:$8 sps:$4 sm:$0xff]   ;;  %v6979_v21 = vld [vmem:[%s8798_s14 + $0x30] ss:$8 sps:$4 sm:$0xff]   ;;  %v6980_v22 = vld [vmem:[%s8798_s14 + $0x44] ss:$8 sps:$4 sm:$0xff]   ;;  %2358 = vmatprep.subr.bf16.mxu1 %v6268_v40 }
 0x305   : > { %1467 = vmatprep.subr.bf16.mxu0 %v6971_v14  ;;  %v6982_v23 = vld [vmem:[%s8798_s14 + $0x40] ss:$8 sps:$4 sm:$0xff]   ;;  %v6983_v24 = vld [vmem:[%s8798_s14 + $0x54] ss:$8 sps:$4 sm:$0xff]   ;;  %v6985_v25 = vld [vmem:[%s8798_s14 + $0x50] ss:$8 sps:$4 sm:$0xff]  }
 0x306   : > { %6967 = vset.pattern.permute.xlu1 %v7664_v20  ;;  %6966 = vset.pattern.permute.xlu0 %v7664_v20  ;;  %v6986_v26 = vld [vmem:[%s8798_s14 + $0x64] ss:$8 sps:$4 sm:$0xff]   ;;  %v6988_v27 = vld [vmem:[%s8798_s14 + $0x60] ss:$8 sps:$4 sm:$0xff]   ;;  %v6989_v30 = vld [vmem:[%s8798_s14 + $0x74] ss:$8 sps:$4 sm:$0xff]  }
 0x307   : > { %1316 = vperm.xlu1 %6967, %v1277_v15   ;;  %1312 = vperm.xlu0 %6966, %v1276_v9   ;;  %v6991_v41 = vld [vmem:[%s8798_s14 + $0x70] ss:$8 sps:$4 sm:$0xff]   ;;  %v1566_v45 = vld [vmem:[#allocation15 + $0xa0] sm:$0xff]  ;;  %s2897_s14 = scalar_lea.vmem [#allocation12], %s8333_s21  ;;  %s2959_s22 = scalar_lea.vmem [#allocation13], %s8333_s21 }
 0x308   : > { %1468 = vmatpush1.bf16.msra.mxu0 %v6973_v16  ;;  %v6276_v46 = vcombine.high %v1562_v44, %v1566_v45  ;;  %2359 = vmatpush1.bf16.msra.mxu1 %v6267_v43  ;;  %v6275_v47 = vcombine.low %v1562_v44, %v1566_v45  ;;  %v1570_v48 = vld [vmem:[#allocation15 + $0xc0] sm:$0xff] }
 0x309   : > { %1469 = vmatprep.subr.bf16.mxu0 %v6974_v17  ;;  %v1574_v49 = vld [vmem:[#allocation15 + $0xe0] sm:$0xff] }
 0x30a   : > { %2360 = vmatprep.subr.bf16.mxu1 %v6276_v46  ;;  %v6284_v50 = vcombine.high %v1570_v48, %v1574_v49  ;;  %v6283_v51 = vcombine.low %v1570_v48, %v1574_v49  ;;  %v1578_v52 = vld [vmem:[#allocation15 + $0x100] sm:$0xff] }
 0x30b   : > { %v1582_v53 = vld [vmem:[#allocation15 + $0x120] sm:$0xff] }
 0x30c   : > { %1470 = vmatpush1.bf16.msra.mxu0 %v6976_v18  ;;  %2361 = vmatpush1.bf16.msra.mxu1 %v6275_v47  ;;  %v6292_v54 = vcombine.high %v1578_v52, %v1582_v53  ;;  %v6291_v55 = vcombine.low %v1578_v52, %v1582_v53  ;;  %v1586_v56 = vld [vmem:[#allocation15 + $0x140] sm:$0xff]  ;;  %v6241_v53 = vld [vmem:[#allocation8] ss:$0 sm:$0xff] }
 0x30d   : > { %1471 = vmatprep.subr.bf16.mxu0 %v6977_v19  ;;  %2362 = vmatprep.subr.bf16.mxu1 %v6284_v50  ;;  %v1590_v57 = vld [vmem:[#allocation15 + $0x160] sm:$0xff] }
 0x30e   : > { %v6300_v58 = vcombine.high %v1586_v56, %v1590_v57  ;;  %v6299_v59 = vcombine.low %v1586_v56, %v1590_v57  ;;  %v1594_v29 = vld [vmem:[#allocation15 + $0x180] sm:$0xff]  ;;  %v6242_v56 = vld [vmem:[#allocation9] ss:$0 sm:$0xff] }
 0x30f   : > { %v1598_v60 = vld [vmem:[#allocation15 + $0x1a0] sm:$0xff] }
 0x310   : > { %1472 = vmatpush1.bf16.msra.mxu0 %v6979_v21  ;;  %2363 = vmatpush1.bf16.msra.mxu1 %v6283_v51  ;;  %v6308_v61 = vcombine.high %v1594_v29, %v1598_v60  ;;  %v6307_v62 = vcombine.low %v1594_v29, %v1598_v60  ;;  %v1602_v63 = vld [vmem:[#allocation15 + $0x1c0] sm:$0xff]  ;;  %v1555_v60 = vld [vmem:[#allocation15 + $0x48] sm:$0xff] }
 0x311   : > { %1473 = vmatprep.subr.bf16.mxu0 %v6980_v22  ;;  %2364 = vmatprep.subr.bf16.mxu1 %v6292_v54  ;;  %v1606_v28 = vld [vmem:[#allocation15 + $0x1e0] sm:$0xff]  ;;  %v1289_v22 = vlaneseq }
 0x312   : > { %v6316_v0 = vcombine.high %v1602_v63, %v1606_v28  ;;  %v6315_v1 = vcombine.low %v1602_v63, %v1606_v28  ;;  %v1610_v2 = vld [vmem:[#allocation15 + $0x200] sm:$0xff] }
 0x313   : > { %v1614_v3 = vld [vmem:[#allocation15 + $0x220] sm:$0xff] }
 0x314   : > { %1474 = vmatpush1.bf16.msra.mxu0 %v6982_v23  ;;  %2365 = vmatpush1.bf16.msra.mxu1 %v6291_v55  ;;  %v6324_v4 = vcombine.high %v1610_v2, %v1614_v3  ;;  %v6323_v5 = vcombine.low %v1610_v2, %v1614_v3  ;;  %v1618_v6 = vld [vmem:[#allocation15 + $0x240] sm:$0xff]  ;;  %v8118_v23 = vshrl.u32 %v1289_v22, 7  ;;  %v1567_v2 = vld [vmem:[#allocation15 + $0xa8] sm:$0xff] }
 0x315   : > { %1475 = vmatprep.subr.bf16.mxu0 %v6983_v24  ;;  %2366 = vmatprep.subr.bf16.mxu1 %v6300_v58  ;;  %v1622_v7 = vld [vmem:[#allocation15 + $0x260] sm:$0xff]  ;;  %v1611_v22 = vld [vmem:[#allocation15 + $0x208] sm:$0xff] }
 0x316   : > { %v6332_v8 = vcombine.high %v1618_v6, %v1622_v7  ;;  %v6331_v9 = vcombine.low %v1618_v6, %v1622_v7  ;;  %v1626_v10 = vld [vmem:[#allocation15 + $0x280] sm:$0xff]  ;;  %v8121_v24 = vsub.s32 1, %v8118_v23  ;;  %v1321_v31 = vsub.s32 2, %v8118_v23  ;;  %v1575_v6 = vld [vmem:[#allocation15 + $0xe8] sm:$0xff] }
 0x317   : > { %v1630_v11 = vld [vmem:[#allocation15 + $0x2a0] sm:$0xff] }
 0x318   : > { %1476 = vmatpush1.bf16.msra.mxu0 %v6985_v25  ;;  %2367 = vmatpush1.bf16.msra.mxu1 %v6299_v59  ;;  %v6340_v12 = vcombine.high %v1626_v10, %v1630_v11  ;;  %v6339_v13 = vcombine.low %v1626_v10, %v1630_v11  ;;  %v1634_v14 = vld [vmem:[#allocation15 + $0x2c0] sm:$0xff]  ;;  %v8124_v25 = vsub.s32 0, %v8118_v23  ;;  %v1583_v10 = vld [vmem:[#allocation15 + $0x128] sm:$0xff] }
 0x319   : > { %1477 = vmatprep.subr.bf16.mxu0 %v6986_v26  ;;  %2368 = vmatprep.subr.bf16.mxu1 %v6308_v61  ;;  %v1638_v15 = vld [vmem:[#allocation15 + $0x2e0] sm:$0xff]  ;;  %v1559_v61 = vld [vmem:[#allocation15 + $0x68] sm:$0xff] }
 0x31a   : > { %v6348_v16 = vcombine.high %v1634_v14, %v1638_v15  ;;  %v6347_v17 = vcombine.low %v1634_v14, %v1638_v15  ;;  %v1642_v18 = vld [vmem:[#allocation15 + $0x300] sm:$0xff]  ;;  %v6269_v3 = vcombine.low %v1555_v60, %v1559_v61  ;;  %v1591_v14 = vld [vmem:[#allocation15 + $0x168] sm:$0xff] }
 0x31b   : > { %v1646_v19 = vld [vmem:[#allocation15 + $0x320] sm:$0xff]  ;;  %v1599_v15 = vld [vmem:[#allocation15 + $0x1a8] sm:$0xff] }
 0x31c   : > { %1478 = vmatpush1.bf16.msra.mxu0 %v6988_v27  ;;  %2369 = vmatpush1.bf16.msra.mxu1 %v6307_v62  ;;  %v6356_v20 = vcombine.high %v1642_v18, %v1646_v19  ;;  %v6355_v21 = vcombine.low %v1642_v18, %v1646_v19  ;;  %v1278_v26 = vld [vmem:[%s8799_s28] sm:$0x7]  ;;  %v1603_v18 = vld [vmem:[#allocation15 + $0x1c8] sm:$0xff] }
 0x31d   : > { %1479 = vmatprep.subr.bf16.mxu0 %v6989_v30  ;;  %2370 = vmatprep.subr.bf16.mxu1 %v6316_v0  ;;  %v1306_v32 = vrot.slane %v1278_v26, %v8121_v24  ;;  %v1292_v34 = vrot.slane %v1278_v26, %v8124_v25  ;;  %v1322_v38 = vrot.slane %v1278_v26, %v1321_v31  ;;  %v6240_v50 = vld [vmem:[%s8800_s7] ss:$0 sm:$0xff]  ;;  %v1607_v19 = vld [vmem:[#allocation15 + $0x1e8] sm:$0xff] }
 0x31e   : > { %v6270_v0 = vcombine.high %v1555_v60, %v1559_v61  ;;  %v1615_v26 = vld [vmem:[#allocation15 + $0x228] sm:$0xff]  ;;  %v1662_v60 = vld [vmem:[#allocation15 + $0x3a0] sm:$0xff] }
 0x31f   : > { %v1659_v61 = vld [vmem:[#allocation15 + $0x388] sm:$0xff] }
 0x320   : > { %1480 = vmatpush1.bf16.msra.mxu0 %v6991_v41  ;;  %2371 = vmatpush1.bf16.msra.mxu1 %v6315_v1  ;;  %v1563_v1 = vld [vmem:[#allocation15 + $0x88] sm:$0xff] }
 0x321   : > { %2399 = vmatprep.subr.bf16.mxu0 %v6262_v42  ;;  %2372 = vmatprep.subr.bf16.mxu1 %v6324_v4  ;;  %v6278_v4 = vcombine.high %v1563_v1, %v1567_v2  ;;  %v6277_v7 = vcombine.low %v1563_v1, %v1567_v2  ;;  %v1666_v2 = vld [vmem:[#allocation15 + $0x3c0] sm:$0xff] }
 0x324   : > { %2373 = vmatpush1.bf16.msra.mxu1 %v6323_v5  ;;  %v1571_v5 = vld [vmem:[#allocation15 + $0xc8] sm:$0xff] }
 0x325   : > { %2374 = vmatprep.subr.bf16.mxu1 %v6332_v8  ;;  %v6286_v8 = vcombine.high %v1571_v5, %v1575_v6  ;;  %v6285_v11 = vcombine.low %v1571_v5, %v1575_v6  ;;  %v1671_v6 = vld [vmem:[#allocation15 + $0x3e8] sm:$0xff] }
 0x328   : > { %2375 = vmatpush1.bf16.msra.mxu1 %v6331_v9  ;;  %v1579_v9 = vld [vmem:[#allocation15 + $0x108] sm:$0xff] }
 0x329   : > { %2376 = vmatprep.subr.bf16.mxu1 %v6340_v12  ;;  %v6294_v12 = vcombine.high %v1579_v9, %v1583_v10  ;;  %v6293_v33 = vcombine.low %v1579_v9, %v1583_v10  ;;  %v1548_v10 = vld [vmem:[#allocation15 + $0x10] sm:$0xff] }
 0x32c   : > { %2377 = vmatpush1.bf16.msra.mxu1 %v6339_v13  ;;  %v1587_v13 = vld [vmem:[#allocation15 + $0x148] sm:$0xff] }
 0x32d   : > { %2378 = vmatprep.subr.bf16.mxu1 %v6348_v16  ;;  %v6302_v35 = vcombine.high %v1587_v13, %v1591_v14  ;;  %v6301_v16 = vcombine.low %v1587_v13, %v1591_v14  ;;  %v1553_v14 = vld [vmem:[#allocation15 + $0x38] sm:$0xff] }
 0x330   : > { %2379 = vmatpush1.bf16.msra.mxu1 %v6347_v17 }
 0x331   : > { %2380 = vmatprep.subr.bf16.mxu1 %v6356_v20 }
 0x334   : > { %2381 = vmatpush1.bf16.msra.mxu1 %v6355_v21  ;;  %v6318_v21 = vcombine.high %v1603_v18, %v1607_v19 }
 0x37d   : > { %v1297_v27 = vpop.permute.xlu1 %1296  ;;  %v1282_v30 = vpop.permute.xlu0 %1281 }
 0x37e   : > { %v1307_v40 = vmul.f32 %v1306_v32, %v1297_v27  ;;  %v1293_v41 = vmul.f32 %v1292_v34, %v1282_v30  ;;  %v6317_v27 = vcombine.low %v1603_v18, %v1607_v19  ;;  %v6326_v30 = vcombine.high %v1611_v22, %v1615_v26  ;;  %v1524_v18 = vld [vmem:[#allocation11] sm:$0x3] }
 0x380   : > { %v1309_v46 = vadd.f32 %v1307_v40, %v1293_v41  ;;  %v1631_v40 = vld [vmem:[#allocation15 + $0x2a8] sm:$0xff] }
 0x381   : > { %v1301_v36 = vpop.permute.xlu1 %1300  ;;  %v1287_v37 = vpop.permute.xlu0 %1286 }
 0x382   : > { %v1308_v42 = vmul.f32 %v1306_v32, %v1301_v36  ;;  %v1294_v43 = vmul.f32 %v1292_v34, %v1287_v37  ;;  %v1619_v32 = vld [vmem:[#allocation15 + $0x248] sm:$0xff]  ;;  %v6325_v36 = vcombine.low %v1611_v22, %v1615_v26 }
 0x383   : > { %v1623_v34 = vld [vmem:[#allocation15 + $0x268] sm:$0xff] }
 0x384   : > { %v1310_v47 = vadd.f32 %v1308_v42, %v1294_v43  ;;  %v6334_v37 = vcombine.high %v1619_v32, %v1623_v34  ;;  %v6333_v41 = vcombine.low %v1619_v32, %v1623_v34  ;;  %v1635_v43 = vld [vmem:[#allocation15 + $0x2c8] sm:$0xff]  ;;  %v1533_v34 = vrot.slane %v1524_v18, %v8121_v24 }
 0x386   : > { %v1317_v44 = vpop.permute.xlu1 %1316  ;;  %v1313_v45 = vpop.permute.xlu0 %1312 }
 0x387   : > { %v1324_v48 = vmul.f32 %v1322_v38, %v1317_v44  ;;  %v1323_v49 = vmul.f32 %v1322_v38, %v1313_v45  ;;  %v1627_v38 = vld [vmem:[#allocation15 + $0x288] sm:$0xff] }
 0x388   : > { %v6342_v42 = vcombine.high %v1627_v38, %v1631_v40  ;;  %v1639_v44 = vld [vmem:[#allocation15 + $0x2e8] sm:$0xff]  ;;  %v6341_v45 = vcombine.low %v1627_v38, %v1631_v40 }
 0x389   : > { %v1326_v51 = vadd.f32 %v1324_v48, %v1310_v47  ;;  %v1325_v52 = vadd.f32 %v1323_v49, %v1309_v46  ;;  %v6350_v46 = vcombine.high %v1635_v43, %v1639_v44  ;;  %v1643_v47 = vld [vmem:[#allocation15 + $0x308] sm:$0xff]  ;;  %v6349_v49 = vcombine.low %v1635_v43, %v1639_v44 }
 0x38a   : > { %v1647_v48 = vld [vmem:[#allocation15 + $0x328] sm:$0xff] }
 0x38b   : > { %v1335_v54 = vadd.f32 %v6240_v50, %v1326_v51  ;;  %v1334_v55 = vadd.f32 %v6240_v50, %v1325_v52  ;;  %v6358_v50 = vcombine.high %v1643_v47, %v1647_v48  ;;  %v6357_v51 = vcombine.low %v1643_v47, %v1647_v48  ;;  %v1650_v52 = vld [vmem:[#allocation15 + $0x340] sm:$0xff] }
 0x38d   : > { %v1344_v57 = vmul.f32 %v6241_v53, %v1335_v54  ;;  %v1343_v58 = vmul.f32 %v6241_v53, %v1334_v55  ;;  %v1654_v53 = vld [vmem:[#allocation15 + $0x360] sm:$0xff]  ;;  %v1651_v54 = vld [vmem:[#allocation15 + $0x348] sm:$0xff] }
 0x38e   : > { %v6364_v55 = vcombine.high %v1650_v52, %v1654_v53 }
 0x38f   : > { %v1352_v59 = vadd.f32 %v6242_v56, %v1343_v58  ;;  %v1353_v29 = vadd.f32 %v6242_v56, %v1344_v57  ;;  %v1655_v56 = vld [vmem:[#allocation15 + $0x368] sm:$0xff] }
 0x390   : > { %v6365_v57 = vcombine.low %v1651_v54, %v1655_v56  ;;  %v6366_v58 = vcombine.high %v1651_v54, %v1655_v56  ;;  %2382 = vmatprep.subr.bf16.mxu1 %v6364_v55  ;;  %v1560_v55 = vld [vmem:[#allocation15 + $0x70] sm:$0xff]  ;;  %v1557_v56 = vld [vmem:[#allocation15 + $0x58] sm:$0xff] }
 0x391   : > { %v1354_v62 = vmax.f32 %v1352_v59, 0.0  ;;  %v1355_v63 = vmax.f32 %v1353_v29, 0.0  ;;  %v6363_v59 = vcombine.low %v1650_v52, %v1654_v53  ;;  %v1658_v29 = vld [vmem:[#allocation15 + $0x380] sm:$0xff]  ;;  %v1556_v53 = vld [vmem:[#allocation15 + $0x50] sm:$0xff] }
 0x392   : > { %v6371_v1 = vcombine.low %v1658_v29, %v1662_v60 }
 0x393   : > { %v1356_v28 = vpack.c.bf16 %v1355_v63, %v1354_v62  ;;  %2383 = vmatpush1.bf16.msra.mxu1 %v6363_v59  ;;  %v6372_v62 = vcombine.high %v1658_v29, %v1662_v60  ;;  %v1663_v63 = vld [vmem:[#allocation15 + $0x3a8] sm:$0xff]  ;;  %v1564_v59 = vld [vmem:[#allocation15 + $0x90] sm:$0xff]  ;;  %v6272_v29 = vcombine.high %v1556_v53, %v1560_v55 }
 0x395   : > { %1498 = vmatmul.mubr.bf16.vlgmr.msra.gmra.mrb[0].mxu0 %v1356_v28  ;;  %v6373_v28 = vcombine.low %v1659_v61, %v1663_v63  ;;  %2384 = vmatprep.subr.bf16.mxu1 %v6372_v62  ;;  %v1565_v62 = vld [vmem:[#allocation15 + $0x98] sm:$0xff] }
 0x396   : > { %2400 = vmatpush1.bf16.msra.mxu0 %v6261_v39  ;;  %v1595_v39 = vld [vmem:[#allocation15 + $0x188] sm:$0xff] }
 0x397   : > { %2401 = vmatprep.subr.bf16.mxu0 %v6270_v0  ;;  %v6310_v17 = vcombine.high %v1595_v39, %v1599_v15  ;;  %v6309_v20 = vcombine.low %v1595_v39, %v1599_v15  ;;  %v6374_v0 = vcombine.high %v1659_v61, %v1663_v63  ;;  %2385 = vmatpush1.bf16.msra.mxu1 %v6371_v1  ;;  %v1373_v15 = vld [vmem:[%s8801_s6] sm:$0x3]  ;;  %v1568_v61 = vld [vmem:[#allocation15 + $0xb0] sm:$0xff]  ;;  %v1569_v63 = vld [vmem:[#allocation15 + $0xb8] sm:$0xff] }
 0x398   : > { %v1382_v19 = vrot.slane %v1373_v15, %v8121_v24  ;;  %v6280_v1 = vcombine.high %v1564_v59, %v1568_v61 }
 0x39a   : > { %2402 = vmatpush1.bf16.msra.mxu0 %v6269_v3  ;;  %v1670_v3 = vld [vmem:[#allocation15 + $0x3e0] sm:$0xff] }
 0x39b   : > { %2403 = vmatprep.subr.bf16.mxu0 %v6278_v4  ;;  %v1667_v4 = vld [vmem:[#allocation15 + $0x3c8] sm:$0xff]  ;;  %v6380_v5 = vcombine.high %v1666_v2, %v1670_v3  ;;  %v6379_v9 = vcombine.low %v1666_v2, %v1670_v3  ;;  %v6282_v2 = vcombine.high %v1565_v62, %v1569_v63  ;;  %v1572_v3 = vld [vmem:[#allocation15 + $0xd0] sm:$0xff] }
 0x39d   : > { %2386 = vmatprep.subr.bf16.mxu1 %v6380_v5  ;;  %v1573_v5 = vld [vmem:[#allocation15 + $0xd8] sm:$0xff] }
 0x39e   : > { %2404 = vmatpush1.bf16.msra.mxu0 %v6277_v7  ;;  %v6381_v7 = vcombine.low %v1667_v4, %v1671_v6  ;;  %2387 = vmatpush1.bf16.msra.mxu1 %v6379_v9 }
 0x39f   : > { %2405 = vmatprep.subr.bf16.mxu0 %v6286_v8  ;;  %v6382_v8 = vcombine.high %v1667_v4, %v1671_v6  ;;  %v1576_v4 = vld [vmem:[#allocation15 + $0xf0] sm:$0xff]  ;;  %v1577_v6 = vld [vmem:[#allocation15 + $0xf8] sm:$0xff] }
 0x3a0   : > { %v6288_v9 = vcombine.high %v1572_v3, %v1576_v4 }
 0x3a2   : > { %2406 = vmatpush1.bf16.msra.mxu0 %v6285_v11  ;;  %v1552_v11 = vld [vmem:[#allocation15 + $0x30] sm:$0xff] }
 0x3a3   : > { %2407 = vmatprep.subr.bf16.mxu0 %v6294_v12  ;;  %v1549_v12 = vld [vmem:[#allocation15 + $0x18] sm:$0xff]  ;;  %v6264_v13 = vcombine.high %v1548_v10, %v1552_v11 }
 0x3a4   : > { %v6266_v39 = vcombine.high %v1549_v12, %v1553_v14 }
 0x3a5   : > { %2442 = vmatprep.subr.bf16.mxu1 %v6264_v13  ;;  %v1581_v13 = vld [vmem:[#allocation15 + $0x118] sm:$0xff] }
 0x3a6   : > { %2408 = vmatpush1.bf16.msra.mxu0 %v6293_v33  ;;  %v6263_v33 = vcombine.low %v1548_v10, %v1552_v11  ;;  %v6290_v10 = vcombine.high %v1573_v5, %v1577_v6  ;;  %v1580_v11 = vld [vmem:[#allocation15 + $0x110] sm:$0xff] }
 0x3a7   : > { %2409 = vmatprep.subr.bf16.mxu0 %v6302_v35  ;;  %v6265_v35 = vcombine.low %v1549_v12, %v1553_v14  ;;  %v1584_v12 = vld [vmem:[#allocation15 + $0x130] sm:$0xff]  ;;  %v1585_v14 = vld [vmem:[#allocation15 + $0x138] sm:$0xff] }
 0x3aa   : > { %2410 = vmatpush1.bf16.msra.mxu0 %v6301_v16  ;;  %v1508_v16 = vld [vmem:[#allocation10] sm:$0x3] }
 0x3ab   : > { %2411 = vmatprep.subr.bf16.mxu0 %v6310_v17  ;;  %v1378_v17 = vrot.slane %v1373_v15, %v8124_v25  ;;  %v1517_v22 = vrot.slane %v1508_v16, %v8121_v24  ;;  %v6298_v15 = vcombine.high %v1581_v13, %v1585_v14 }
 0x3ae   : > { %2412 = vmatpush1.bf16.msra.mxu0 %v6309_v20  ;;  %v1513_v20 = vrot.slane %v1508_v16, %v8124_v25  ;;  %v1588_v16 = vld [vmem:[#allocation15 + $0x150] sm:$0xff] }
 0x3af   : > { %2413 = vmatprep.subr.bf16.mxu0 %v6318_v21 }
 0x3b2   : > { %2414 = vmatpush1.bf16.msra.mxu0 %v6317_v27  ;;  %v1529_v27 = vrot.slane %v1524_v18, %v8124_v25  ;;  %v1589_v18 = vld [vmem:[#allocation15 + $0x158] sm:$0xff] }
 0x3b3   : > { %2415 = vmatprep.subr.bf16.mxu0 %v6326_v30 }
 0x3b6   : > { %2416 = vmatpush1.bf16.msra.mxu0 %v6325_v36 }
 0x3b7   : > { %2417 = vmatprep.subr.bf16.mxu0 %v6334_v37 }
 0x3ba   : > { %2418 = vmatpush1.bf16.msra.mxu0 %v6333_v41 }
 0x3bb   : > { %2419 = vmatprep.subr.bf16.mxu0 %v6342_v42 }
 0x3be   : > { %2420 = vmatpush1.bf16.msra.mxu0 %v6341_v45 }
 0x3bf   : > { %2421 = vmatprep.subr.bf16.mxu0 %v6350_v46 }
 0x3c2   : > { %2422 = vmatpush1.bf16.msra.mxu0 %v6349_v49 }
 0x3c3   : > { %2423 = vmatprep.subr.bf16.mxu0 %v6358_v50 }
 0x3c6   : > { %2424 = vmatpush1.bf16.msra.mxu0 %v6357_v51 }
 0x3c7   : > { %2425 = vmatprep.subr.bf16.mxu0 %v6366_v58 }
 0x3ca   : > { %2426 = vmatpush1.bf16.msra.mxu0 %v6365_v57  ;;  %v1561_v57 = vld [vmem:[#allocation15 + $0x78] sm:$0xff] }
 0x3cb   : > { %2427 = vmatprep.subr.bf16.mxu0 %v6374_v0  ;;  %v6274_v60 = vcombine.high %v1557_v56, %v1561_v57  ;;  %v6273_v0 = vcombine.low %v1557_v56, %v1561_v57 }
 0x3ce   : > { %2428 = vmatpush1.bf16.msra.mxu0 %v6373_v28  ;;  %v6271_v28 = vcombine.low %v1556_v53, %v1560_v55 }
 0x3cf   : > { %2429 = vmatprep.subr.bf16.mxu0 %v6382_v8  ;;  %v6281_v8 = vcombine.low %v1565_v62, %v1569_v63 }
 0x3d2   : > { %2430 = vmatpush1.bf16.msra.mxu0 %v6381_v7  ;;  %v6279_v7 = vcombine.low %v1564_v59, %v1568_v61  ;;  %v1624_v59 = vld [vmem:[#allocation15 + $0x270] sm:$0xff] }
 0x3d3   : > { %2485 = vmatprep.subr.bf16.mxu0 %v6266_v39  ;;  %v6296_v39 = vcombine.high %v1580_v11, %v1584_v12 }
 0x468   : > { %v1499_v21 = vpop.f32.mrb[0].mxu0 }
 0x469   : > { %v1500_v26 = vadd.f32 %v1499_v21, %v1378_v17  ;;  %v1501_v30 = vpop.f32.mrb[1].mxu0  ;;  %v6297_v21 = vcombine.low %v1581_v13, %v1585_v14 }
 0x46a   : > { %v1502_v32 = vadd.f32 %v1501_v30, %v1382_v19  ;;  %v1503_v36 = vpop.f32.mrb[2].mxu0  ;;  %v1600_v30 = vld [vmem:[#allocation15 + $0x1b0] sm:$0xff] }
 0x46b   : > { %v1520_v37 = vmul.f32 %v1513_v20, %v1500_v26  ;;  %v1504_v38 = vadd.f32 %v1503_v36, %v1378_v17  ;;  %v1505_v40 = vpop.f32.mrb[3].mxu0  ;;  %v1592_v17 = vld [vmem:[#allocation15 + $0x170] sm:$0xff] }
 0x46c   : > { %v1521_v41 = vmul.f32 %v1517_v22, %v1502_v32  ;;  %v1506_v42 = vadd.f32 %v1505_v40, %v1382_v19  ;;  %v1593_v19 = vld [vmem:[#allocation15 + $0x178] sm:$0xff]  ;;  %v6303_v36 = vcombine.low %v1588_v16, %v1592_v17 }
 0x46d   : > { %v1536_v43 = vadd.f32 %v1529_v27, %v1520_v37  ;;  %v1522_v44 = vmul.f32 %v1513_v20, %v1504_v38  ;;  %v6295_v20 = vcombine.low %v1580_v11, %v1584_v12  ;;  %v6306_v26 = vcombine.high %v1589_v18, %v1593_v19  ;;  %v1597_v32 = vld [vmem:[#allocation15 + $0x198] sm:$0xff] }
 0x46e   : > { %v1537_v45 = vadd.f32 %v1533_v34, %v1521_v41  ;;  %v1523_v46 = vmul.f32 %v1517_v22, %v1506_v42  ;;  %v6304_v22 = vcombine.high %v1588_v16, %v1592_v17  ;;  %v6305_v37 = vcombine.low %v1589_v18, %v1593_v19  ;;  %v1604_v41 = vld [vmem:[#allocation15 + $0x1d0] sm:$0xff]  ;;  %v1641_v11 = vld [vmem:[#allocation15 + $0x2f8] sm:$0xff] }
 0x46f   : > { %v1538_v47 = vadd.f32 %v1529_v27, %v1522_v44  ;;  %v1540_v49 = vmax.f32 %v1536_v43, 0.0  ;;  %v1596_v27 = vld [vmem:[#allocation15 + $0x190] sm:$0xff]  ;;  %v1605_v43 = vld [vmem:[#allocation15 + $0x1d8] sm:$0xff] }
 0x470   : > { %v1539_v48 = vadd.f32 %v1533_v34, %v1523_v46  ;;  %v1541_v51 = vmax.f32 %v1537_v45, 0.0  ;;  %v1601_v34 = vld [vmem:[#allocation15 + $0x1b8] sm:$0xff]  ;;  %v6312_v38 = vcombine.high %v1596_v27, %v1600_v30  ;;  %v1608_v42 = vld [vmem:[#allocation15 + $0x1f0] sm:$0xff]  ;;  %v6311_v45 = vcombine.low %v1596_v27, %v1600_v30 }
 0x471   : > { %v1542_v50 = vmax.f32 %v1538_v47, 0.0  ;;  %v6314_v40 = vcombine.high %v1597_v32, %v1601_v34  ;;  %v1609_v44 = vld [vmem:[#allocation15 + $0x1f8] sm:$0xff]  ;;  %v6313_v46 = vcombine.low %v1597_v32, %v1601_v34  ;;  %v6320_v47 = vcombine.high %v1604_v41, %v1608_v42 }
 0x472   : > { %v1543_v52 = vmax.f32 %v1539_v48, 0.0  ;;  %v6322_v48 = vcombine.high %v1605_v43, %v1609_v44  ;;  %v6319_v53 = vcombine.low %v1604_v41, %v1608_v42  ;;  %v6321_v55 = vcombine.low %v1605_v43, %v1609_v44  ;;  %v1649_v16 = vld [vmem:[#allocation15 + $0x338] sm:$0xff] }
 0x473   : > { %v8149_v54 = vpack.c.bf16 %v1542_v50, %v1540_v49  ;;  %v1612_v49 = vld [vmem:[#allocation15 + $0x210] sm:$0xff]  ;;  %v1657_v27 = vld [vmem:[#allocation15 + $0x378] sm:$0xff] }
 0x474   : > { %v1545_v58 = vpack.c.bf16 %v1543_v52, %v1541_v51  ;;  %v1616_v50 = vld [vmem:[#allocation15 + $0x230] sm:$0xff]  ;;  %v1613_v51 = vld [vmem:[#allocation15 + $0x218] sm:$0xff] }
 0x475   : > { %v1617_v52 = vld [vmem:[#allocation15 + $0x238] sm:$0xff]  ;;  %v6328_v56 = vcombine.high %v1612_v49, %v1616_v50  ;;  %v6327_v61 = vcombine.low %v1612_v49, %v1616_v50 }
 0x476   : > { %2388 = vmatprep.mubr.bf16.mxu1 %v1545_v58  ;;  %2431 = vmatprep.mubr.bf16.mxu0 %v1545_v58  ;;  %v6330_v57 = vcombine.high %v1613_v51, %v1617_v52  ;;  %v6329_v62 = vcombine.low %v1613_v51, %v1617_v52  ;;  %v1665_v41 = vld [vmem:[#allocation15 + $0x3b8] sm:$0xff] }
 0x477   : > { %2389 = vmatmul.mubr.bf16.vlgmr.msra.gmra.mrb[0].mxu1 %v8149_v54  ;;  %2432 = vmatmul.mubr.bf16.vlgmr.msra.gmra.mrb[4].mxu0 %v8149_v54  ;;  %v1673_v49 = vld [vmem:[#allocation15 + $0x3f8] sm:$0xff] }
 0x478   : > { %2443 = vmatpush1.bf16.msra.mxu1 %v6263_v33  ;;  %2486 = vmatpush1.bf16.msra.mxu0 %v6265_v35  ;;  %v6287_v33 = vcombine.low %v1572_v3, %v1576_v4  ;;  %v6289_v35 = vcombine.low %v1573_v5, %v1577_v6  ;;  %v1633_v3 = vld [vmem:[#allocation15 + $0x2b8] sm:$0xff] }
 0x479   : > { %2474 = vmatprep.mubr.bf16.mxu1 %v1545_v58  ;;  %2517 = vmatprep.mubr.bf16.mxu0 %v1545_v58  ;;  %v1620_v58 = vld [vmem:[#allocation15 + $0x250] sm:$0xff] }
 0x47a   : > { %2444 = vmatprep.subr.bf16.mxu1 %v6272_v29  ;;  %2487 = vmatprep.subr.bf16.mxu0 %v6274_v60  ;;  %v1621_v29 = vld [vmem:[#allocation15 + $0x258] sm:$0xff]  ;;  %v6336_v63 = vcombine.high %v1620_v58, %v1624_v59  ;;  %v6335_v4 = vcombine.low %v1620_v58, %v1624_v59  ;;  %v8158_v59 = vld [vmem:[%s8737_s10] sm:$0xff] }
 0x47b   : > { %v1625_v60 = vld [vmem:[#allocation15 + $0x278] sm:$0xff] }
 0x47c   : > { %2445 = vmatpush1.bf16.msra.mxu1 %v6271_v28  ;;  %2488 = vmatpush1.bf16.msra.mxu0 %v6273_v0  ;;  %v6338_v28 = vcombine.high %v1621_v29, %v1625_v60  ;;  %v1628_v0 = vld [vmem:[#allocation15 + $0x290] sm:$0xff]  ;;  %v6337_v5 = vcombine.low %v1621_v29, %v1625_v60  ;;  %v1690_v29 = vsub.s32 3, %v8118_v23  ;;  %v1679_v60 = vrot.slane %v8158_v59, %v8124_v25 }
 0x47d   : > { %2446 = vmatprep.subr.bf16.mxu1 %v6280_v1  ;;  %2489 = vmatprep.subr.bf16.mxu0 %v6282_v2  ;;  %v1632_v1 = vld [vmem:[#allocation15 + $0x2b0] sm:$0xff]  ;;  %v1629_v2 = vld [vmem:[#allocation15 + $0x298] sm:$0xff] }
 0x47e   : > { %v6344_v6 = vcombine.high %v1628_v0, %v1632_v1  ;;  %v6343_v12 = vcombine.low %v1628_v0, %v1632_v1  ;;  %v6345_v13 = vcombine.low %v1629_v2, %v1633_v3 }
 0x480   : > { %2447 = vmatpush1.bf16.msra.mxu1 %v6279_v7  ;;  %2490 = vmatpush1.bf16.msra.mxu0 %v6281_v8  ;;  %v6346_v7 = vcombine.high %v1629_v2, %v1633_v3  ;;  %v1636_v8 = vld [vmem:[#allocation15 + $0x2d0] sm:$0xff] }
 0x481   : > { %2448 = vmatprep.subr.bf16.mxu1 %v6288_v9  ;;  %2491 = vmatprep.subr.bf16.mxu0 %v6290_v10  ;;  %v1640_v9 = vld [vmem:[#allocation15 + $0x2f0] sm:$0xff]  ;;  %v1637_v10 = vld [vmem:[#allocation15 + $0x2d8] sm:$0xff] }
 0x482   : > { %v6352_v14 = vcombine.high %v1636_v8, %v1640_v9  ;;  %v6351_v17 = vcombine.low %v1636_v8, %v1640_v9  ;;  %v6353_v18 = vcombine.low %v1637_v10, %v1641_v11 }
 0x484   : > { %2449 = vmatpush1.bf16.msra.mxu1 %v6287_v33  ;;  %2492 = vmatpush1.bf16.msra.mxu0 %v6289_v35  ;;  %v6354_v33 = vcombine.high %v1637_v10, %v1641_v11  ;;  %v1644_v35 = vld [vmem:[#allocation15 + $0x310] sm:$0xff] }
 0x485   : > { %2450 = vmatprep.subr.bf16.mxu1 %v6296_v39  ;;  %2493 = vmatprep.subr.bf16.mxu0 %v6298_v15  ;;  %v1648_v39 = vld [vmem:[#allocation15 + $0x330] sm:$0xff]  ;;  %v1645_v15 = vld [vmem:[#allocation15 + $0x318] sm:$0xff] }
 0x486   : > { %v6360_v19 = vcombine.high %v1644_v35, %v1648_v39  ;;  %v6359_v30 = vcombine.low %v1644_v35, %v1648_v39  ;;  %v6361_v32 = vcombine.low %v1645_v15, %v1649_v16 }
 0x488   : > { %2451 = vmatpush1.bf16.msra.mxu1 %v6295_v20  ;;  %2494 = vmatpush1.bf16.msra.mxu0 %v6297_v21  ;;  %v6362_v20 = vcombine.high %v1645_v15, %v1649_v16  ;;  %v1652_v21 = vld [vmem:[#allocation15 + $0x350] sm:$0xff] }
 0x489   : > { %2452 = vmatprep.subr.bf16.mxu1 %v6304_v22  ;;  %2495 = vmatprep.subr.bf16.mxu0 %v6306_v26  ;;  %v1656_v22 = vld [vmem:[#allocation15 + $0x370] sm:$0xff]  ;;  %v1653_v26 = vld [vmem:[#allocation15 + $0x358] sm:$0xff] }
 0x48a   : > { %v6368_v34 = vcombine.high %v1652_v21, %v1656_v22  ;;  %v6367_v42 = vcombine.low %v1652_v21, %v1656_v22  ;;  %v6369_v43 = vcombine.low %v1653_v26, %v1657_v27 }
 0x48c   : > { %2453 = vmatpush1.bf16.msra.mxu1 %v6303_v36  ;;  %2496 = vmatpush1.bf16.msra.mxu0 %v6305_v37  ;;  %v6370_v36 = vcombine.high %v1653_v26, %v1657_v27  ;;  %v1660_v37 = vld [vmem:[#allocation15 + $0x390] sm:$0xff] }
 0x48d   : > { %2454 = vmatprep.subr.bf16.mxu1 %v6312_v38  ;;  %2497 = vmatprep.subr.bf16.mxu0 %v6314_v40  ;;  %v1664_v38 = vld [vmem:[#allocation15 + $0x3b0] sm:$0xff]  ;;  %v1661_v40 = vld [vmem:[#allocation15 + $0x398] sm:$0xff] }
 0x48e   : > { %v6376_v44 = vcombine.high %v1660_v37, %v1664_v38  ;;  %v6375_v50 = vcombine.low %v1660_v37, %v1664_v38  ;;  %v6377_v51 = vcombine.low %v1661_v40, %v1665_v41 }
 0x490   : > { %2455 = vmatpush1.bf16.msra.mxu1 %v6311_v45  ;;  %2498 = vmatpush1.bf16.msra.mxu0 %v6313_v46  ;;  %v6378_v45 = vcombine.high %v1661_v40, %v1665_v41  ;;  %v1668_v46 = vld [vmem:[#allocation15 + $0x3d0] sm:$0xff] }
 0x491   : > { %2456 = vmatprep.subr.bf16.mxu1 %v6320_v47  ;;  %2499 = vmatprep.subr.bf16.mxu0 %v6322_v48  ;;  %v1672_v47 = vld [vmem:[#allocation15 + $0x3f0] sm:$0xff]  ;;  %v1669_v48 = vld [vmem:[#allocation15 + $0x3d8] sm:$0xff] }
 0x492   : > { %v6384_v52 = vcombine.high %v1668_v46, %v1672_v47 }
 0x494   : > { %2457 = vmatpush1.bf16.msra.mxu1 %v6319_v53  ;;  %2500 = vmatpush1.bf16.msra.mxu0 %v6321_v55  ;;  %v6386_v53 = vcombine.high %v1669_v48, %v1673_v49  ;;  %v6383_v55 = vcombine.low %v1668_v46, %v1672_v47 }
 0x495   : > { %2458 = vmatprep.subr.bf16.mxu1 %v6328_v56  ;;  %2501 = vmatprep.subr.bf16.mxu0 %v6330_v57  ;;  %v6385_v56 = vcombine.low %v1669_v48, %v1673_v49  ;;  %v7665_v57 = vmov 1966171168  }
 0x496   : > { %v2670_v58 = vunpack.c.l.s4 %v7665_v57 }
 0x498   : > { %2459 = vmatpush1.bf16.msra.mxu1 %v6327_v61  ;;  %2502 = vmatpush1.bf16.msra.mxu0 %v6329_v62  ;;  %v1687_v61 = vrot.slane %v8158_v59, %v1321_v31  ;;  %v2671_v62 = vunpack.c.0.s8 %v2670_v58 }
 0x499   : > { %2460 = vmatprep.subr.bf16.mxu1 %v6336_v63  ;;  %2503 = vmatprep.subr.bf16.mxu0 %v6338_v28  ;;  %v1691_v63 = vrot.slane %v8158_v59, %v1690_v29 }
 0x49c   : > { %2461 = vmatpush1.bf16.msra.mxu1 %v6335_v4  ;;  %2504 = vmatpush1.bf16.msra.mxu0 %v6337_v5  ;;  %v8170_v5 = vsub.s32 %v2671_v62, %v8118_v23 }
 0x49d   : > { %2462 = vmatprep.subr.bf16.mxu1 %v6344_v6  ;;  %2505 = vmatprep.subr.bf16.mxu0 %v6346_v7 }
 0x4a0   : > { %2463 = vmatpush1.bf16.msra.mxu1 %v6343_v12  ;;  %2506 = vmatpush1.bf16.msra.mxu0 %v6345_v13 }
 0x4a1   : > { %2464 = vmatprep.subr.bf16.mxu1 %v6352_v14  ;;  %2507 = vmatprep.subr.bf16.mxu0 %v6354_v33 }
 0x4a4   : > { %2465 = vmatpush1.bf16.msra.mxu1 %v6351_v17  ;;  %2508 = vmatpush1.bf16.msra.mxu0 %v6353_v18 }
 0x4a5   : > { %2466 = vmatprep.subr.bf16.mxu1 %v6360_v19  ;;  %2509 = vmatprep.subr.bf16.mxu0 %v6362_v20 }
 0x4a8   : > { %2467 = vmatpush1.bf16.msra.mxu1 %v6359_v30  ;;  %2510 = vmatpush1.bf16.msra.mxu0 %v6361_v32 }
 0x4a9   : > { %2468 = vmatprep.subr.bf16.mxu1 %v6368_v34  ;;  %2511 = vmatprep.subr.bf16.mxu0 %v6370_v36 }
 0x4ac   : > { %2469 = vmatpush1.bf16.msra.mxu1 %v6367_v42  ;;  %2512 = vmatpush1.bf16.msra.mxu0 %v6369_v43 }
 0x4ad   : > { %2470 = vmatprep.subr.bf16.mxu1 %v6376_v44  ;;  %2513 = vmatprep.subr.bf16.mxu0 %v6378_v45 }
 0x4b0   : > { %2471 = vmatpush1.bf16.msra.mxu1 %v6375_v50  ;;  %2514 = vmatpush1.bf16.msra.mxu0 %v6377_v51 }
 0x4b1   : > { %2472 = vmatprep.subr.bf16.mxu1 %v6384_v52  ;;  %2515 = vmatprep.subr.bf16.mxu0 %v6386_v53 }
 0x4b4   : > { %2473 = vmatpush1.bf16.msra.mxu1 %v6383_v55  ;;  %2516 = vmatpush1.bf16.msra.mxu0 %v6385_v56 }
 0x4b7   : > { %2475 = vmatmul.mubr.bf16.vlgmr.msra.gmra.mrb[4].mxu1 %v8149_v54  ;;  %2518 = vmatmul.mubr.bf16.vlgmr.msra.gmra.mrb[8].mxu0 %v8149_v54  ;;  %v1683_v54 = vrot.slane %v8158_v59, %v8121_v24 }
 0x54a   : > { %v2390_v28 = vpop.f32.mrb[0].mxu1  ;;  %v2433_v0 = vpop.f32.mrb[4].mxu0 }
 0x54b   : > { %v2391_v1 = vadd.f32 %v2390_v28, %v1679_v60  ;;  %v2434_v2 = vadd.f32 %v2433_v0, %v1687_v61  ;;  %v2392_v3 = vpop.f32.mrb[1].mxu1  ;;  %v2435_v4 = vpop.f32.mrb[5].mxu0 }
 0x54c   : > { %v8172_v25 = vadd.f32 %v2392_v3, %v1683_v54  ;;  %v8174_v6 = vadd.f32 %v2435_v4, %v1691_v63  ;;  %v2394_v31 = vpop.f32.mrb[2].mxu1  ;;  %v2437_v7 = vpop.f32.mrb[6].mxu0 }
 0x54d   : > { %v2584_v8 = vmul.f32 %v2391_v1, %v2391_v1  ;;  %v2586_v9 = vmul.f32 %v2434_v2, %v2434_v2  ;;  %v2395_v24 = vadd.f32 %v2394_v31, %v1679_v60  ;;  %v2438_v10 = vadd.f32 %v2437_v7, %v1687_v61  ;;  %v2396_v11 = vpop.f32.mrb[3].mxu1  ;;  %v2439_v12 = vpop.f32.mrb[7].mxu0 }
 0x54e   : > { %v8178_v13 = vmul.f32 %v8172_v25, %v8172_v25  ;;  %v8182_v14 = vmul.f32 %v8174_v6, %v8174_v6  ;;  %v8184_v33 = vadd.f32 %v2396_v11, %v1683_v54  ;;  %v8186_v35 = vadd.f32 %v2439_v12, %v1691_v63 }
 0x54f   : > { %v2528_v39 = vadd.f32 %v2395_v24, %v2391_v1  ;;  %v2592_v15 = vmul.f32 %v2395_v24, %v2395_v24  ;;  %v2778_v16 = vmax.f32 %v2391_v1, %v2395_v24  ;;  %v2834_v17 = vmin.f32 %v2391_v1, %v2395_v24 }
 0x550   : > { %v2542_v18 = vadd.f32 %v2438_v10, %v2434_v2  ;;  %v2594_v19 = vmul.f32 %v2438_v10, %v2438_v10  ;;  %v2792_v20 = vmax.f32 %v2434_v2, %v2438_v10  ;;  %v2848_v21 = vmin.f32 %v2434_v2, %v2438_v10 }
 0x551   : > { %v2529_v22 = vrot.slane %v2528_v39, 4  ;;  %v2600_v26 = vadd.f32 %v2592_v15, %v2584_v8  ;;  %v2779_v27 = vrot.slane %v2778_v16, 4  ;;  %v2835_v30 = vrot.slane %v2834_v17, 4 }
 0x552   : > { %v2543_v32 = vrot.slane %v2542_v18, 4  ;;  %v2614_v34 = vadd.f32 %v2594_v19, %v2586_v9  ;;  %v2793_v36 = vrot.slane %v2792_v20, 4  ;;  %v2849_v37 = vrot.slane %v2848_v21, 4 }
 0x553   : > { %v2530_v38 = vadd.f32 %v2529_v22, %v2528_v39  ;;  %v2601_v40 = vrot.slane %v2600_v26, 4  ;;  %v2780_v41 = vmax.f32 %v2778_v16, %v2779_v27  ;;  %v2836_v42 = vmin.f32 %v2834_v17, %v2835_v30 }
 0x554   : > { %v2544_v43 = vadd.f32 %v2543_v32, %v2542_v18  ;;  %v2615_v44 = vrot.slane %v2614_v34, 4  ;;  %v2794_v45 = vmax.f32 %v2792_v20, %v2793_v36  ;;  %v2850_v46 = vmin.f32 %v2848_v21, %v2849_v37 }
 0x555   : > { %v2531_v47 = vrot.slane %v2530_v38, 2  ;;  %v2602_v48 = vadd.f32 %v2601_v40, %v2600_v26  ;;  %v2781_v49 = vrot.slane %v2780_v41, 2  ;;  %v2837_v50 = vrot.slane %v2836_v42, 2 }
 0x556   : > { %v2545_v51 = vrot.slane %v2544_v43, 2  ;;  %v2616_v52 = vadd.f32 %v2615_v44, %v2614_v34  ;;  %v2795_v53 = vrot.slane %v2794_v45, 2  ;;  %v2851_v55 = vrot.slane %v2850_v46, 2 }
 0x557   : > { %v2532_v56 = vadd.f32 %v2531_v47, %v2530_v38  ;;  %v2603_v57 = vrot.slane %v2602_v48, 2  ;;  %v2782_v58 = vmax.f32 %v2780_v41, %v2781_v49  ;;  %v2838_v29 = vmin.f32 %v2836_v42, %v2837_v50 }
 0x558   : > { %v2546_v60 = vadd.f32 %v2545_v51, %v2544_v43  ;;  %v2617_v61 = vrot.slane %v2616_v52, 2  ;;  %v2796_v62 = vmax.f32 %v2794_v45, %v2795_v53  ;;  %v2852_v54 = vmin.f32 %v2850_v46, %v2851_v55 }
 0x559   : > { %v2533_v63 = vrot.slane %v2532_v56, 1  ;;  %v2604_v28 = vadd.f32 %v2603_v57, %v2602_v48  ;;  %v2783_v0 = vrot.slane %v2782_v58, 1  ;;  %v2839_v1 = vrot.slane %v2838_v29, 1 }
 0x55a   : > { %v2547_v2 = vrot.slane %v2546_v60, 1  ;;  %v2618_v3 = vadd.f32 %v2617_v61, %v2616_v52  ;;  %v2797_v4 = vrot.slane %v2796_v62, 1  ;;  %v2853_v31 = vrot.slane %v2852_v54, 1 }
 0x55b   : > { %v8188_v7 = vadd.f32 %v2533_v63, %v2532_v56  ;;  %v2605_v8 = vrot.slane %v2604_v28, 1  ;;  %v8190_v9 = vmax.f32 %v2782_v58, %v2783_v0  ;;  %v8192_v24 = vmin.f32 %v2838_v29, %v2839_v1 }
 0x55c   : > { %v8194_v10 = vadd.f32 %v2547_v2, %v2546_v60  ;;  %v2619_v11 = vrot.slane %v2618_v3, 1  ;;  %v8196_v12 = vmax.f32 %v2796_v62, %v2797_v4  ;;  %v8198_v39 = vmin.f32 %v2852_v54, %v2853_v31 }
 0x55d   : > { %v8200_v15 = vadd.f32 %v2605_v8, %v2604_v28  ;;  %v2535_v16 = vadd.f32 %v8184_v33, %v8172_v25  ;;  %v2593_v17 = vmul.f32 %v8184_v33, %v8184_v33  ;;  %v2785_v18 = vmax.f32 %v8172_v25, %v8184_v33 }
 0x55e   : > { %v8208_v19 = vadd.f32 %v2619_v11, %v2618_v3  ;;  %v2841_v20 = vmin.f32 %v8172_v25, %v8184_v33  ;;  %v2549_v21 = vadd.f32 %v8186_v35, %v8174_v6  ;;  %v2595_v22 = vmul.f32 %v8186_v35, %v8186_v35 }
 0x55f   : > { %v2536_v26 = vrot.slane %v2535_v16, 4  ;;  %v2607_v27 = vadd.f32 %v2593_v17, %v8178_v13  ;;  %v2786_v30 = vrot.slane %v2785_v18, 4  ;;  %v2799_v32 = vmax.f32 %v8174_v6, %v8186_v35 }
 0x560   : > { %v2842_v34 = vrot.slane %v2841_v20, 4  ;;  %v2550_v36 = vrot.slane %v2549_v21, 4  ;;  %v2621_v37 = vadd.f32 %v2595_v22, %v8182_v14  ;;  %v2855_v25 = vmin.f32 %v8174_v6, %v8186_v35 }
 0x561   : > { %v2537_v33 = vadd.f32 %v2536_v26, %v2535_v16  ;;  %v2608_v38 = vrot.slane %v2607_v27, 4  ;;  %v2787_v40 = vmax.f32 %v2785_v18, %v2786_v30  ;;  %v2800_v41 = vrot.slane %v2799_v32, 4 }
 0x562   : > { %v2843_v42 = vmin.f32 %v2841_v20, %v2842_v34  ;;  %v2551_v43 = vadd.f32 %v2550_v36, %v2549_v21  ;;  %v2622_v44 = vrot.slane %v2621_v37, 4  ;;  %v2856_v45 = vrot.slane %v2855_v25, 4 }
 0x563   : > { %v2538_v13 = vrot.slane %v2537_v33, 2  ;;  %v2609_v46 = vadd.f32 %v2608_v38, %v2607_v27  ;;  %v2788_v47 = vrot.slane %v2787_v40, 2  ;;  %v2801_v48 = vmax.f32 %v2799_v32, %v2800_v41 }
 0x564   : > { %v2844_v49 = vrot.slane %v2843_v42, 2  ;;  %v2552_v50 = vrot.slane %v2551_v43, 2  ;;  %v2623_v51 = vadd.f32 %v2622_v44, %v2621_v37  ;;  %v2857_v52 = vmin.f32 %v2855_v25, %v2856_v45 }
 0x565   : > { %v2539_v14 = vadd.f32 %v2538_v13, %v2537_v33  ;;  %v2610_v53 = vrot.slane %v2609_v46, 2  ;;  %v2789_v55 = vmax.f32 %v2787_v40, %v2788_v47  ;;  %v2802_v6 = vrot.slane %v2801_v48, 2 }
 0x566   : > { %v2845_v35 = vmin.f32 %v2843_v42, %v2844_v49  ;;  %v2553_v56 = vadd.f32 %v2552_v50, %v2551_v43  ;;  %v2624_v57 = vrot.slane %v2623_v51, 2  ;;  %v2858_v58 = vrot.slane %v2857_v52, 2 }
 0x567   : > { %v2540_v29 = vrot.slane %v2539_v14, 1  ;;  %v2611_v60 = vadd.f32 %v2610_v53, %v2609_v46  ;;  %v2790_v61 = vrot.slane %v2789_v55, 1  ;;  %v2803_v62 = vmax.f32 %v2801_v48, %v2802_v6 }
 0x568   : > { %v2846_v54 = vrot.slane %v2845_v35, 1  ;;  %v2554_v63 = vrot.slane %v2553_v56, 1  ;;  %v2625_v28 = vadd.f32 %v2624_v57, %v2623_v51  ;;  %v2859_v0 = vmin.f32 %v2857_v52, %v2858_v58 }
 0x569   : > { %v2541_v1 = vadd.f32 %v2540_v29, %v2539_v14  ;;  %v2612_v2 = vrot.slane %v2611_v60, 1  ;;  %v2791_v3 = vmax.f32 %v2789_v55, %v2790_v61  ;;  %v2804_v4 = vrot.slane %v2803_v62, 1 }
 0x56a   : > { %v2847_v31 = vmin.f32 %v2845_v35, %v2846_v54  ;;  %v2555_v8 = vadd.f32 %v2554_v63, %v2553_v56  ;;  %v2626_v11 = vrot.slane %v2625_v28, 1  ;;  %v2860_v16 = vrot.slane %v2859_v0, 1 }
 0x56b   : > { %v2613_v17 = vadd.f32 %v2612_v2, %v2611_v60  ;;  %v2665_v18 = vcombine.low %v8188_v7, %v2541_v1  ;;  %v2907_v20 = vcombine.low %v8190_v9, %v2791_v3  ;;  %v2805_v21 = vmax.f32 %v2803_v62, %v2804_v4 }
 0x56c   : > { %v2969_v22 = vcombine.low %v8192_v24, %v2847_v31  ;;  %v2627_v26 = vadd.f32 %v2626_v11, %v2625_v28  ;;  %v2666_v27 = vcombine.low %v8194_v10, %v2555_v8  ;;  %v2861_v30 = vmin.f32 %v2859_v0, %v2860_v16 }
 0x56d   : > { %v8227_v32 = vrot.slane %v2665_v18, %v8170_v5  ;;  %v2726_v34 = vcombine.low %v8200_v15, %v2613_v17  ;;  %v8231_v36 = vrot.slane %v2907_v20, %v8170_v5  ;;  %v2908_v37 = vcombine.low %v8196_v12, %v2805_v21 }
 0x56e   : > { %v8235_v7 = vrot.slane %v2969_v22, %v8170_v5  ;;  %v8238_v9 = vrot.slane %v2666_v27, %v8170_v5  ;;  %v2727_v24 = vcombine.low %v8208_v19, %v2627_v26  ;;  %v2970_v10 = vcombine.low %v8198_v39, %v2861_v30 }
 0x56f   : > { %v8243_v25 = vrot.slane %v2726_v34, %v8170_v5  ;;  %v8246_v15 = vrot.slane %v2908_v37, %v8170_v5  ;;  %v1694_v41 = vsub.s32 4, %v8118_v23  ;;  %v1702_v42 = vsub.s32 6, %v8118_v23 }
 0x570   : > { %v2697_v33 = vcombine.low %v8227_v32, %v8238_v9  ;;  %v8251_v12 = vrot.slane %v2727_v24, %v8170_v5  ;;  %v8254_v38 = vrot.slane %v2970_v10, %v8170_v5  ;;  %v1698_v43 = vsub.s32 5, %v8118_v23 }
 0x571   : > { %v2939_v19 = vcombine.low %v8231_v36, %v8246_v15  ;;  %v1706_v44 = vsub.s32 7, %v8118_v23  ;;  %v1695_v45 = vrot.slane %v8158_v59, %v1694_v41  ;;  %v1703_v13 = vrot.slane %v8158_v59, %v1702_v42  ;;  %v2960_v36 = vld [vmem:[%s2959_s22] ss:$2 sm:$0xff] }
 0x572   : > { %v2758_v39 = vcombine.low %v8243_v25, %v8251_v12  ;;  %v3001_v40 = vcombine.low %v8235_v7, %v8254_v38  ;;  %v1699_v46 = vrot.slane %v8158_v59, %v1698_v43  ;;  %v2717_v12 = vld [vmem:[#allocation7] sm:$0xff] }
 0x573   : > { %v1707_v47 = vrot.slane %v8158_v59, %v1706_v44 }
 0x574   : > { %v3009_v32 = vrot.slane %v3001_v40, %v8170_v5 }
 0x58a   : > { %v2476_v48 = vpop.f32.mrb[4].mxu1  ;;  %v2519_v49 = vpop.f32.mrb[8].mxu0 }
 0x58b   : > { %v2477_v50 = vadd.f32 %v2476_v48, %v1695_v45  ;;  %v2520_v51 = vadd.f32 %v2519_v49, %v1703_v13  ;;  %v2478_v52 = vpop.f32.mrb[5].mxu1  ;;  %v2521_v14 = vpop.f32.mrb[9].mxu0 }
 0x58c   : > { %v8270_v53 = vadd.f32 %v2478_v52, %v1699_v46  ;;  %v8272_v55 = vadd.f32 %v2521_v14, %v1707_v47  ;;  %v2480_v6 = vpop.f32.mrb[6].mxu1  ;;  %v2523_v23 = vpop.f32.mrb[10].mxu0 }
 0x58d   : > { %v2588_v35 = vmul.f32 %v2477_v50, %v2477_v50  ;;  %v2590_v56 = vmul.f32 %v2520_v51, %v2520_v51  ;;  %v2481_v57 = vadd.f32 %v2480_v6, %v1695_v45  ;;  %v2524_v58 = vadd.f32 %v2523_v23, %v1703_v13  ;;  %v2482_v29 = vpop.f32.mrb[7].mxu1  ;;  %v2525_v60 = vpop.f32.mrb[11].mxu0 }
 0x58e   : > { %v8276_v59 = vmul.f32 %v8270_v53, %v8270_v53  ;;  %v8280_v61 = vmul.f32 %v8272_v55, %v8272_v55  ;;  %v8282_v62 = vadd.f32 %v2482_v29, %v1699_v46  ;;  %v8284_v54 = vadd.f32 %v2525_v60, %v1707_v47 }
 0x58f   : > { %v2556_v63 = vadd.f32 %v2481_v57, %v2477_v50  ;;  %v2596_v28 = vmul.f32 %v2481_v57, %v2481_v57  ;;  %v2806_v0 = vmax.f32 %v2477_v50, %v2481_v57  ;;  %v2862_v1 = vmin.f32 %v2477_v50, %v2481_v57 }
 0x590   : > { %v2570_v2 = vadd.f32 %v2524_v58, %v2520_v51  ;;  %v2598_v3 = vmul.f32 %v2524_v58, %v2524_v58  ;;  %v2820_v4 = vmax.f32 %v2520_v51, %v2524_v58  ;;  %v2876_v31 = vmin.f32 %v2520_v51, %v2524_v58 }
 0x591   : > { %v2557_v8 = vrot.slane %v2556_v63, 4  ;;  %v2628_v11 = vadd.f32 %v2596_v28, %v2588_v35  ;;  %v2807_v16 = vrot.slane %v2806_v0, 4  ;;  %v2863_v17 = vrot.slane %v2862_v1, 4 }
 0x592   : > { %v2571_v18 = vrot.slane %v2570_v2, 4  ;;  %v2642_v20 = vadd.f32 %v2598_v3, %v2590_v56  ;;  %v2821_v21 = vrot.slane %v2820_v4, 4  ;;  %v2877_v22 = vrot.slane %v2876_v31, 4 }
 0x593   : > { %v2558_v26 = vadd.f32 %v2557_v8, %v2556_v63  ;;  %v2629_v27 = vrot.slane %v2628_v11, 4  ;;  %v2808_v30 = vmax.f32 %v2806_v0, %v2807_v16  ;;  %v2864_v34 = vmin.f32 %v2862_v1, %v2863_v17 }
 0x594   : > { %v2572_v37 = vadd.f32 %v2571_v18, %v2570_v2  ;;  %v2643_v24 = vrot.slane %v2642_v20, 4  ;;  %v2822_v10 = vmax.f32 %v2820_v4, %v2821_v21  ;;  %v2878_v41 = vmin.f32 %v2876_v31, %v2877_v22 }
 0x595   : > { %v2559_v42 = vrot.slane %v2558_v26, 2  ;;  %v2630_v43 = vadd.f32 %v2629_v27, %v2628_v11  ;;  %v2809_v44 = vrot.slane %v2808_v30, 2  ;;  %v2865_v45 = vrot.slane %v2864_v34, 2 }
 0x596   : > { %v2573_v13 = vrot.slane %v2572_v37, 2  ;;  %v2644_v46 = vadd.f32 %v2643_v24, %v2642_v20  ;;  %v2823_v47 = vrot.slane %v2822_v10, 2  ;;  %v2879_v48 = vrot.slane %v2878_v41, 2 }
 0x597   : > { %v2560_v49 = vadd.f32 %v2559_v42, %v2558_v26  ;;  %v2631_v50 = vrot.slane %v2630_v43, 2  ;;  %v2810_v51 = vmax.f32 %v2808_v30, %v2809_v44  ;;  %v2866_v52 = vmin.f32 %v2864_v34, %v2865_v45 }
 0x598   : > { %v2574_v14 = vadd.f32 %v2573_v13, %v2572_v37  ;;  %v2645_v6 = vrot.slane %v2644_v46, 2  ;;  %v2824_v23 = vmax.f32 %v2822_v10, %v2823_v47  ;;  %v2880_v35 = vmin.f32 %v2878_v41, %v2879_v48 }
 0x599   : > { %v2561_v56 = vrot.slane %v2560_v49, 1  ;;  %v2632_v57 = vadd.f32 %v2631_v50, %v2630_v43  ;;  %v2811_v58 = vrot.slane %v2810_v51, 1  ;;  %v2867_v29 = vrot.slane %v2866_v52, 1 }
 0x59a   : > { %v2575_v60 = vrot.slane %v2574_v14, 1  ;;  %v2646_v63 = vadd.f32 %v2645_v6, %v2644_v46  ;;  %v2825_v28 = vrot.slane %v2824_v23, 1  ;;  %v2881_v0 = vrot.slane %v2880_v35, 1 }
 0x59b   : > { %v8286_v1 = vadd.f32 %v2561_v56, %v2560_v49  ;;  %v2633_v2 = vrot.slane %v2632_v57, 1  ;;  %v8288_v3 = vmax.f32 %v2810_v51, %v2811_v58  ;;  %v8290_v4 = vmin.f32 %v2866_v52, %v2867_v29 }
 0x59c   : > { %v8292_v31 = vadd.f32 %v2575_v60, %v2574_v14  ;;  %v2647_v8 = vrot.slane %v2646_v63, 1  ;;  %v8294_v11 = vmax.f32 %v2824_v23, %v2825_v28  ;;  %v8296_v16 = vmin.f32 %v2880_v35, %v2881_v0 }
 0x59d   : > { %v8298_v17 = vadd.f32 %v2633_v2, %v2632_v57  ;;  %v2563_v18 = vadd.f32 %v8282_v62, %v8270_v53  ;;  %v2597_v20 = vmul.f32 %v8282_v62, %v8282_v62  ;;  %v2813_v21 = vmax.f32 %v8270_v53, %v8282_v62 }
 0x59e   : > { %v8306_v22 = vadd.f32 %v2647_v8, %v2646_v63  ;;  %v2869_v26 = vmin.f32 %v8270_v53, %v8282_v62  ;;  %v2577_v27 = vadd.f32 %v8284_v54, %v8272_v55  ;;  %v2599_v30 = vmul.f32 %v8284_v54, %v8284_v54 }
 0x59f   : > { %v2564_v34 = vrot.slane %v2563_v18, 4  ;;  %v2635_v37 = vadd.f32 %v2597_v20, %v8276_v59  ;;  %v2814_v24 = vrot.slane %v2813_v21, 4  ;;  %v2827_v10 = vmax.f32 %v8272_v55, %v8284_v54 }
 0x5a0   : > { %v2870_v41 = vrot.slane %v2869_v26, 4  ;;  %v2578_v42 = vrot.slane %v2577_v27, 4  ;;  %v2649_v43 = vadd.f32 %v2599_v30, %v8280_v61  ;;  %v2883_v53 = vmin.f32 %v8272_v55, %v8284_v54 }
 0x5a1   : > { %v2565_v62 = vadd.f32 %v2564_v34, %v2563_v18  ;;  %v2636_v44 = vrot.slane %v2635_v37, 4  ;;  %v2815_v45 = vmax.f32 %v2813_v21, %v2814_v24  ;;  %v2828_v13 = vrot.slane %v2827_v10, 4 }
 0x5a2   : > { %v2871_v46 = vmin.f32 %v2869_v26, %v2870_v41  ;;  %v2579_v47 = vadd.f32 %v2578_v42, %v2577_v27  ;;  %v2650_v48 = vrot.slane %v2649_v43, 4  ;;  %v2884_v49 = vrot.slane %v2883_v53, 4 }
 0x5a3   : > { %v2566_v59 = vrot.slane %v2565_v62, 2  ;;  %v2637_v50 = vadd.f32 %v2636_v44, %v2635_v37  ;;  %v2816_v51 = vrot.slane %v2815_v45, 2  ;;  %v2829_v52 = vmax.f32 %v2827_v10, %v2828_v13 }
 0x5a4   : > { %v2872_v14 = vrot.slane %v2871_v46, 2  ;;  %v2580_v6 = vrot.slane %v2579_v47, 2  ;;  %v2651_v23 = vadd.f32 %v2650_v48, %v2649_v43  ;;  %v2885_v35 = vmin.f32 %v2883_v53, %v2884_v49 }
 0x5a5   : > { %v2567_v61 = vadd.f32 %v2566_v59, %v2565_v62  ;;  %v2638_v56 = vrot.slane %v2637_v50, 2  ;;  %v2817_v55 = vmax.f32 %v2815_v45, %v2816_v51  ;;  %v2830_v54 = vrot.slane %v2829_v52, 2 }
 0x5a6   : > { %v2873_v57 = vmin.f32 %v2871_v46, %v2872_v14  ;;  %v2581_v58 = vadd.f32 %v2580_v6, %v2579_v47  ;;  %v2652_v29 = vrot.slane %v2651_v23, 2  ;;  %v2886_v60 = vrot.slane %v2885_v35, 2 }
 0x5a7   : > { %v2568_v63 = vrot.slane %v2567_v61, 1  ;;  %v2639_v28 = vadd.f32 %v2638_v56, %v2637_v50  ;;  %v2818_v0 = vrot.slane %v2817_v55, 1  ;;  %v2831_v2 = vmax.f32 %v2829_v52, %v2830_v54  ;;  %v2656_v56 = vld [vmem:[#allocation6] sm:$0xff] }
 0x5a8   : > { %v2874_v8 = vrot.slane %v2873_v57, 1  ;;  %v2582_v18 = vrot.slane %v2581_v58, 1  ;;  %v2653_v20 = vadd.f32 %v2652_v29, %v2651_v23  ;;  %v2887_v21 = vmin.f32 %v2885_v35, %v2886_v60  ;;  %v2898_v54 = vld [vmem:[%s2897_s14] ss:$2 sm:$0xff] }
 0x5a9   : > { %v2569_v26 = vadd.f32 %v2568_v63, %v2567_v61  ;;  %v2640_v27 = vrot.slane %v2639_v28, 1  ;;  %v2819_v30 = vmax.f32 %v2817_v55, %v2818_v0  ;;  %v2832_v34 = vrot.slane %v2831_v2, 1 }
 0x5aa   : > { %v2875_v37 = vmin.f32 %v2873_v57, %v2874_v8  ;;  %v2583_v24 = vadd.f32 %v2582_v18, %v2581_v58  ;;  %v2654_v10 = vrot.slane %v2653_v20, 1  ;;  %v2888_v41 = vrot.slane %v2887_v21, 1 }
 0x5ab   : > { %v2641_v42 = vadd.f32 %v2640_v27, %v2639_v28  ;;  %v2667_v43 = vcombine.low %v8286_v1, %v2569_v26  ;;  %v2909_v53 = vcombine.low %v8288_v3, %v2819_v30  ;;  %v2833_v62 = vmax.f32 %v2831_v2, %v2832_v34 }
 0x5ac   : > { %v2971_v44 = vcombine.low %v8290_v4, %v2875_v37  ;;  %v2655_v45 = vadd.f32 %v2654_v10, %v2653_v20  ;;  %v2668_v13 = vcombine.low %v8292_v31, %v2583_v24  ;;  %v2889_v46 = vmin.f32 %v2887_v21, %v2888_v41 }
 0x5ad   : > { %v2689_v47 = vrot.slane %v2667_v43, %v8170_v5  ;;  %v2728_v48 = vcombine.low %v8298_v17, %v2641_v42  ;;  %v2931_v49 = vrot.slane %v2909_v53, %v8170_v5  ;;  %v2910_v59 = vcombine.low %v8294_v11, %v2833_v62 }
 0x5ae   : > { %v2993_v1 = vrot.slane %v2971_v44, %v8170_v5  ;;  %v2696_v3 = vrot.slane %v2668_v13, %v8170_v5  ;;  %v2729_v50 = vcombine.low %v8306_v22, %v2655_v45  ;;  %v2972_v4 = vcombine.low %v8296_v16, %v2889_v46 }
 0x5af   : > { %v2750_v31 = vrot.slane %v2728_v48, %v8170_v5  ;;  %v2938_v51 = vrot.slane %v2910_v59, %v8170_v5  ;;  %v2705_v22 = vrot.slane %v2697_v33, %v8170_v5  ;;  %v2766_v35 = vrot.slane %v2758_v39, %v8170_v5 }
 0x5b0   : > { %v2698_v17 = vcombine.low %v2689_v47, %v2696_v3  ;;  %v2757_v52 = vrot.slane %v2729_v50, %v8170_v5  ;;  %v3000_v11 = vrot.slane %v2972_v4, %v8170_v5  ;;  %v2947_v61 = vrot.slane %v2939_v19, %v8170_v5 }
 0x5b1   : > { %v2940_v14 = vcombine.low %v2931_v49, %v2938_v51 }
 0x5b2   : > { %v2712_v6 = vrot.slane %v2698_v17, %v8170_v5  ;;  %v2759_v16 = vcombine.low %v2750_v31, %v2757_v52  ;;  %v3002_v23 = vcombine.low %v2993_v1, %v3000_v11 }
 0x5b3   : > { %v2954_v55 = vrot.slane %v2940_v14, %v8170_v5 }
 0x5b4   : > { %v2713_v9 = vcombine.low %v2705_v22, %v2712_v6  ;;  %v2773_v33 = vrot.slane %v2759_v16, %v8170_v5  ;;  %v3016_v25 = vrot.slane %v3002_v23, %v8170_v5 }
 0x5b5   : > { %v2955_v39 = vcombine.low %v2947_v61, %v2954_v55 }
 0x5b6   : > { %v2715_v15 = vadd.f32 %v2713_v9, %v2656_v56  ;;  %v2774_v19 = vcombine.low %v2766_v35, %v2773_v33  ;;  %v3017_v57 = vcombine.low %v3009_v32, %v3016_v25 }
 0x5b7   : > { %v2957_v58 = vmax.f32 %v2898_v54, %v2955_v39 }
 0x5b8   : > { %2716 = vst [vmem:[#allocation6] sm:$0xff] %v2715_v15  ;;  %v2776_v29 = vadd.f32 %v2774_v19, %v2717_v12  ;;  %v3019_v60 = vmin.f32 %v2960_v36, %v3017_v57 }
 0x5b9   : > { %2958 = vst [vmem:[%s2897_s14] ss:$2 sm:$0xff] %v2957_v58 }
 0x5ba   : > { %2777 = vst [vmem:[#allocation7] sm:$0xff] %v2776_v29  ;;  %3020 = vst [vmem:[%s2959_s22] ss:$2 sm:$0xff] %v3019_v60 }
 0x5bb PF: > { %p3021_p0 = pnand %p1272_p12, %p812_p9 }
 0x5bc   : > { %v6992_v5 = vld [vmem:[#allocation17 + $0x4] ss:$16 sps:$4 sm:$0xff] (!%p3021_p0)   ;;  %v6996_v38 = vld [vmem:[#allocation17] ss:$16 sps:$4 sm:$0xff] (!%p3021_p0)   ;;  %v3045_v58 = vlaneseq (!%p3021_p0)  ;;  %v7666_v29 = vmov (!%p3021_p0), 1983009808  }
 0x5bd   : > { %3024 = sbr.rel (%p3021_p0) target bundleno = 2525 (0x9dd), region = 152  ;;  %v6994_v7 = vld [vmem:[#allocation17 + $0x204] ss:$16 sps:$4 sm:$0xff] (!%p3021_p0)   ;;  %4845 = vmatprep.subr.bf16.mxu1 (!%p3021_p0), %v6992_v5  ;;  %v6997_v40 = vld [vmem:[#allocation17 + $0x200] ss:$16 sps:$4 sm:$0xff] (!%p3021_p0)   ;;  %v3089_v60 = vunpack.c.l.s4 (!%p3021_p0), %v7666_v29  ;;  %s8802_s29 = sld [smem:[#allocation31_spill]] (!%p3021_p0) }
 0x5be   : > { %4886 = vmatprep.subr.bf16.mxu0 (!%p3021_p0), %v6994_v7  ;;  %v6998_v63 = vld [vmem:[#allocation17 + $0x24] ss:$16 sps:$4 sm:$0xff] (!%p3021_p0)   ;;  %4846 = vmatpush1.bf16.msra.mxu1 (!%p3021_p0), %v6996_v38  ;;  %v7002_v0 = vld [vmem:[#allocation17 + $0x20] ss:$16 sps:$4 sm:$0xff] (!%p3021_p0)   ;;  %s8803_s20 = sld [smem:[#allocation32_spill]] (!%p3021_p0)  ;;  %s8810_s18 = sld [smem:[#allocation34_spill]] (!%p3021_p0) }
 0x5bf   : > { %4887 = vmatpush1.bf16.msra.mxu0 (!%p3021_p0), %v6997_v40  ;;  %v7000_v28 = vld [vmem:[#allocation17 + $0x224] ss:$16 sps:$4 sm:$0xff] (!%p3021_p0)   ;;  %4847 = vmatprep.subr.bf16.mxu1 (!%p3021_p0), %v6998_v63  ;;  %v7003_v2 = vld [vmem:[#allocation17 + $0x220] ss:$16 sps:$4 sm:$0xff] (!%p3021_p0)   ;;  %v3025_v35 = vld [vmem:[#allocation6] sm:$0xff] (!%p3021_p0)  ;;  %vm5175_vm12 = vcmask (!%p3021_p0), 1041408  }
 0x5c0   : > { %4888 = vmatprep.subr.bf16.mxu0 (!%p3021_p0), %v7000_v28  ;;  %v7004_v8 = vld [vmem:[#allocation17 + $0x44] ss:$16 sps:$4 sm:$0xff] (!%p3021_p0)   ;;  %v7008_v20 = vld [vmem:[#allocation17 + $0x40] ss:$16 sps:$4 sm:$0xff] (!%p3021_p0)   ;;  %v8367_v61 = vmul.f32 (!%p3021_p0), 0.015625, %v3025_v35  ;;  %v8371_v28 = vshrl.u32 (!%p3021_p0), %v3045_v58, 7 }
 0x5c1   : > { %v7006_v18 = vld [vmem:[#allocation17 + $0x244] ss:$16 sps:$4 sm:$0xff] (!%p3021_p0)   ;;  %v7009_v21 = vld [vmem:[#allocation17 + $0x240] ss:$16 sps:$4 sm:$0xff] (!%p3021_p0)   ;;  %s8811_s12 = sld [smem:[#allocation35_spill]] (!%p3021_p0)  ;;  %s8812_s14 = sld [smem:[#allocation36_spill]] (!%p3021_p0) }
 0x5c2   : > { %4848 = vmatpush1.bf16.msra.mxu1 (!%p3021_p0), %v7002_v0  ;;  %v7010_v26 = vld [vmem:[#allocation17 + $0x64] ss:$16 sps:$4 sm:$0xff] (!%p3021_p0)   ;;  %v7014_v30 = vld [vmem:[#allocation17 + $0x60] ss:$16 sps:$4 sm:$0xff] (!%p3021_p0)   ;;  %v3029_v25 = vmul.f32 (!%p3021_p0), %v8367_v61, %v8367_v61  ;;  %v3090_v0 = vunpack.c.0.s8 (!%p3021_p0), %v3089_v60  ;;  %s8813_s28 = sld [smem:[#allocation40_spill]] (!%p3021_p0)  ;;  %s8814_s0 = sld [smem:[#allocation37_spill]] (!%p3021_p0) }
 0x5c3   : > { %4889 = vmatpush1.bf16.msra.mxu0 (!%p3021_p0), %v7003_v2  ;;  %4849 = vmatprep.subr.bf16.mxu1 (!%p3021_p0), %v7004_v8  ;;  %v7012_v27 = vld [vmem:[#allocation17 + $0x264] ss:$16 sps:$4 sm:$0xff] (!%p3021_p0)   ;;  %v7015_v34 = vld [vmem:[#allocation17 + $0x260] ss:$16 sps:$4 sm:$0xff] (!%p3021_p0)   ;;  %s8815_s4 = sld [smem:[#allocation38_spill]] (!%p3021_p0)  ;;  %s8816_s15 = sld [smem:[#allocation39_spill]] (!%p3021_p0) }
 0x5c4   : > { %4890 = vmatprep.subr.bf16.mxu0 %v7006_v18  ;;  %v7016_v37 = vld [vmem:[#allocation17 + $0x84] ss:$16 sps:$4 sm:$0xff]   ;;  %v7020_v10 = vld [vmem:[#allocation17 + $0x80] ss:$16 sps:$4 sm:$0xff]   ;;  %s8817_s22 = sld [smem:[#allocation41_spill]]  ;;  %vm5995_vm13 = vcmask 66560  }
 0x5c5   : > { %v7018_v24 = vld [vmem:[#allocation17 + $0x284] ss:$16 sps:$4 sm:$0xff]   ;;  %v7021_v41 = vld [vmem:[#allocation17 + $0x280] ss:$16 sps:$4 sm:$0xff]  }
 0x5c6   : > { %4850 = vmatpush1.bf16.msra.mxu1 %v7008_v20  ;;  %v7022_v42 = vld [vmem:[#allocation17 + $0xa4] ss:$16 sps:$4 sm:$0xff]   ;;  %v7026_v53 = vld [vmem:[#allocation17 + $0xa0] ss:$16 sps:$4 sm:$0xff]  }
 0x5c7   : > { %4891 = vmatpush1.bf16.msra.mxu0 %v7009_v21  ;;  %4851 = vmatprep.subr.bf16.mxu1 %v7010_v26  ;;  %v7024_v43 = vld [vmem:[#allocation17 + $0x2a4] ss:$16 sps:$4 sm:$0xff]   ;;  %v7027_v62 = vld [vmem:[#allocation17 + $0x2a0] ss:$16 sps:$4 sm:$0xff]  }
 0x5c8   : > { %4892 = vmatprep.subr.bf16.mxu0 %v7012_v27  ;;  %v7028_v44 = vld [vmem:[#allocation17 + $0xc4] ss:$16 sps:$4 sm:$0xff]   ;;  %v7032_v13 = vld [vmem:[#allocation17 + $0xc0] ss:$16 sps:$4 sm:$0xff]   ;;  %v8374_v27 = vsub.s32 %v3090_v0, %v8371_v28  ;;  %v7101_v0 = vld [vmem:[#allocation17 + $0x2c] ss:$16 sps:$4 sm:$0xff]  }
 0x5c9   : > { %v7030_v45 = vld [vmem:[#allocation17 + $0x2c4] ss:$16 sps:$4 sm:$0xff]   ;;  %v7033_v46 = vld [vmem:[#allocation17 + $0x2c0] ss:$16 sps:$4 sm:$0xff]  }
 0x5ca   : > { %4852 = vmatpush1.bf16.msra.mxu1 %v7014_v30  ;;  %v7034_v47 = vld [vmem:[#allocation17 + $0xe4] ss:$16 sps:$4 sm:$0xff]   ;;  %v7038_v49 = vld [vmem:[#allocation17 + $0xe0] ss:$16 sps:$4 sm:$0xff]  }
 0x5cb   : > { %4893 = vmatpush1.bf16.msra.mxu0 %v7015_v34  ;;  %4853 = vmatprep.subr.bf16.mxu1 %v7016_v37  ;;  %v7036_v48 = vld [vmem:[#allocation17 + $0x2e4] ss:$16 sps:$4 sm:$0xff]   ;;  %v7039_v59 = vld [vmem:[#allocation17 + $0x2e0] ss:$16 sps:$4 sm:$0xff]  }
 0x5cc   : > { %4894 = vmatprep.subr.bf16.mxu0 %v7018_v24  ;;  %v7040_v1 = vld [vmem:[#allocation17 + $0x104] ss:$16 sps:$4 sm:$0xff]   ;;  %v7044_v50 = vld [vmem:[#allocation17 + $0x100] ss:$16 sps:$4 sm:$0xff]  }
 0x5cd   : > { %v7042_v3 = vld [vmem:[#allocation17 + $0x304] ss:$16 sps:$4 sm:$0xff]   ;;  %v7045_v4 = vld [vmem:[#allocation17 + $0x300] ss:$16 sps:$4 sm:$0xff]  }
 0x5ce   : > { %4854 = vmatpush1.bf16.msra.mxu1 %v7020_v10  ;;  %v7046_v31 = vld [vmem:[#allocation17 + $0x124] ss:$16 sps:$4 sm:$0xff]   ;;  %v7050_v17 = vld [vmem:[#allocation17 + $0x120] ss:$16 sps:$4 sm:$0xff]  }
 0x5cf   : > { %4895 = vmatpush1.bf16.msra.mxu0 %v7021_v41  ;;  %4855 = vmatprep.subr.bf16.mxu1 %v7022_v42  ;;  %v7048_v51 = vld [vmem:[#allocation17 + $0x324] ss:$16 sps:$4 sm:$0xff]   ;;  %v7051_v52 = vld [vmem:[#allocation17 + $0x320] ss:$16 sps:$4 sm:$0xff]  }
 0x5d0   : > { %4896 = vmatprep.subr.bf16.mxu0 %v7024_v43  ;;  %v7052_v11 = vld [vmem:[#allocation17 + $0x144] ss:$16 sps:$4 sm:$0xff]   ;;  %v7056_v22 = vld [vmem:[#allocation17 + $0x140] ss:$16 sps:$4 sm:$0xff]   ;;  %v7095_v43 = vld [vmem:[#allocation17 + $0xc] ss:$16 sps:$4 sm:$0xff]  }
 0x5d1   : > { %v7054_v14 = vld [vmem:[#allocation17 + $0x344] ss:$16 sps:$4 sm:$0xff]   ;;  %v7057_v6 = vld [vmem:[#allocation17 + $0x340] ss:$16 sps:$4 sm:$0xff]  }
 0x5d2   : > { %4856 = vmatpush1.bf16.msra.mxu1 %v7026_v53  ;;  %v7058_v16 = vld [vmem:[#allocation17 + $0x164] ss:$16 sps:$4 sm:$0xff]   ;;  %v7062_v55 = vld [vmem:[#allocation17 + $0x160] ss:$16 sps:$4 sm:$0xff]  }
 0x5d3   : > { %4897 = vmatpush1.bf16.msra.mxu0 %v7027_v62  ;;  %4857 = vmatprep.subr.bf16.mxu1 %v7028_v44  ;;  %v7060_v23 = vld [vmem:[#allocation17 + $0x364] ss:$16 sps:$4 sm:$0xff]   ;;  %v7063_v32 = vld [vmem:[#allocation17 + $0x360] ss:$16 sps:$4 sm:$0xff]  }
 0x5d4   : > { %4898 = vmatprep.subr.bf16.mxu0 %v7030_v45  ;;  %v3027_v56 = vld [vmem:[#allocation7] sm:$0xff]  ;;  %v3040_v8 = vld [vmem:[#allocation12] sm:$0xff] }
 0x5d5   : > { %v3028_v9 = vmul.f32 0.015625, %v3027_v56  ;;  %v7064_v33 = vld [vmem:[#allocation17 + $0x184] ss:$16 sps:$4 sm:$0xff]   ;;  %v7068_v39 = vld [vmem:[#allocation17 + $0x180] ss:$16 sps:$4 sm:$0xff]   ;;  %v3087_v30 = vcombine.high %v3040_v8, %v3040_v8  ;;  %v3094_v41 = vrot.slane %v3040_v8, %v8374_v27 }
 0x5d6   : > { %4858 = vmatpush1.bf16.msra.mxu1 %v7032_v13  ;;  %v7066_v54 = vld [vmem:[#allocation17 + $0x384] ss:$16 sps:$4 sm:$0xff]   ;;  %v7069_v36 = vld [vmem:[#allocation17 + $0x380] ss:$16 sps:$4 sm:$0xff]  }
 0x5d7   : > { %4899 = vmatpush1.bf16.msra.mxu0 %v7033_v46  ;;  %4859 = vmatprep.subr.bf16.mxu1 %v7034_v47  ;;  %v3030_v12 = vsub.f32 %v3028_v9, %v3029_v25  ;;  %v7070_v15 = vld [vmem:[#allocation17 + $0x1a4] ss:$16 sps:$4 sm:$0xff]   ;;  %v7074_v7 = vld [vmem:[#allocation17 + $0x1a0] ss:$16 sps:$4 sm:$0xff]   ;;  %v3101_v62 = vrot.slane %v3087_v30, %v8374_v27  ;;  %v8386_v46 = vsub.s32 1, %v8371_v28  ;;  %v8389_v47 = vsub.s32 0, %v8371_v28 }
 0x5d8   : > { %4900 = vmatprep.subr.bf16.mxu0 %v7036_v48  ;;  %v7072_v19 = vld [vmem:[#allocation17 + $0x3a4] ss:$16 sps:$4 sm:$0xff]   ;;  %v7075_v38 = vld [vmem:[#allocation17 + $0x3a0] ss:$16 sps:$4 sm:$0xff]   ;;  %v8392_v48 = vsub.s32 3, %v8371_v28  ;;  %v8444_v30 = vsub.s32 5, %v8371_v28 }
 0x5d9   : > { %v3031_v57 = vmax.f32 %v3030_v12, 0.0  ;;  %v7076_v40 = vld [vmem:[#allocation17 + $0x1c4] ss:$16 sps:$4 sm:$0xff]   ;;  %v7080_v2 = vld [vmem:[#allocation17 + $0x1c0] ss:$16 sps:$4 sm:$0xff]  }
 0x5da   : > { %4860 = vmatpush1.bf16.msra.mxu1 %v7038_v49  ;;  %v7078_v63 = vld [vmem:[#allocation17 + $0x3c4] ss:$16 sps:$4 sm:$0xff]   ;;  %v7081_v18 = vld [vmem:[#allocation17 + $0x3c0] ss:$16 sps:$4 sm:$0xff]  }
 0x5db   : > { %4901 = vmatpush1.bf16.msra.mxu0 %v7039_v59  ;;  %4861 = vmatprep.subr.bf16.mxu1 %v7040_v1  ;;  %v3033_v5 = vadd.f32 1e-05, %v3031_v57  ;;  %v3042_v20 = vld [vmem:[#allocation13] sm:$0xff]  ;;  %v3032_v10 = vld [vmem:[%s8802_s29] sm:$0xff]  ;;  %v3102_v59 = vcombine.high %v3094_v41, %v3094_v41  ;;  %v8398_v1 = vsub.s32 2, %v8371_v28 }
 0x5dc   : > { %4902 = vmatprep.subr.bf16.mxu0 %v7042_v3  ;;  %v7082_v21 = vld [vmem:[#allocation17 + $0x1e4] ss:$16 sps:$4 sm:$0xff]   ;;  %v7086_v34 = vld [vmem:[#allocation17 + $0x1e0] ss:$16 sps:$4 sm:$0xff]   ;;  %v3131_v37 = vcombine.high %v3042_v20, %v3042_v20  ;;  %v3138_v53 = vrot.slane %v3042_v20, %v8374_v27  ;;  %v7099_v20 = vld [vmem:[#allocation17 + $0x28] ss:$16 sps:$4 sm:$0xff]  }
 0x5dd   : > { %7476 = vrsqrt.f32 %v3033_v5  ;;  %v7084_v26 = vld [vmem:[#allocation17 + $0x3e4] ss:$16 sps:$4 sm:$0xff]   ;;  %v7087_v24 = vld [vmem:[#allocation17 + $0x3e0] ss:$16 sps:$4 sm:$0xff]  }
 0x5de   : > { %4862 = vmatpush1.bf16.msra.mxu1 %v7044_v50  ;;  %v7092_v42 = vld [vmem:[#allocation17 + $0x404] ss:$16 sps:$4 sm:$0xff]   ;;  %v3145_v45 = vrot.slane %v3131_v37, %v8374_v27  ;;  %v3146_v50 = vcombine.high %v3138_v53, %v3138_v53 }
 0x5df   : > { %4903 = vmatpush1.bf16.msra.mxu0 %v7045_v4  ;;  %4863 = vmatprep.subr.bf16.mxu1 %v7046_v31  ;;  %v3036_v49 = vld [vmem:[%s8803_s20] sm:$0xff]  ;;  %v3103_v4 = vcombine.high %v3101_v62, %v3101_v62  ;;  %v7667_v31 = vmov 0  }
 0x5e0   : > { %4904 = vmatprep.subr.bf16.mxu0 %v7048_v51  ;;  %v7098_v8 = vld [vmem:[#allocation17 + $0x424] ss:$16 sps:$4 sm:$0xff]  }
 0x5e2   : > { %4864 = vmatpush1.bf16.msra.mxu1 %v7050_v17 }
 0x5e3   : > { %4905 = vmatpush1.bf16.msra.mxu0 %v7051_v52  ;;  %4865 = vmatprep.subr.bf16.mxu1 %v7052_v11  ;;  %v3147_v11 = vcombine.high %v3145_v45, %v3145_v45 }
 0x5e4   : > { %4906 = vmatprep.subr.bf16.mxu0 %v7054_v14 }
 0x5e6   : > { %4866 = vmatpush1.bf16.msra.mxu1 %v7056_v22 }
 0x5e7   : > { %4907 = vmatpush1.bf16.msra.mxu0 %v7057_v6  ;;  %4867 = vmatprep.subr.bf16.mxu1 %v7058_v16  ;;  %v7477_v44 = vpop.eup %7476 }
 0x5e8   : > { %4908 = vmatprep.subr.bf16.mxu0 %v7060_v23  ;;  %v8383_v13 = vmul.f32 %v7477_v44, %v3032_v10  ;;  %v8452_v10 = vsub.s32 6, %v8371_v28 }
 0x5ea   : > { %4868 = vmatpush1.bf16.msra.mxu1 %v7062_v55  ;;  %v3037_v3 = vmul.f32 %v8383_v13, %v8367_v61  ;;  %vm3039_vm3 = vcmp.ge.f32.partialorder %v8383_v13, 0.0  ;;  %v3189_v17 = vrot.slane %v8383_v13, %v8386_v46  ;;  %v3185_v52 = vrot.slane %v8383_v13, %v8389_v47 }
 0x5eb   : > { %4909 = vmatpush1.bf16.msra.mxu0 %v7063_v32  ;;  %4869 = vmatprep.subr.bf16.mxu1 %v7064_v33  ;;  %v8403_v51 = vsel %vm3039_vm3, 1, %v7667_v31  ;;  %v3197_v23 = vrot.slane %v8383_v13, %v8392_v48  ;;  %v3193_v61 = vrot.slane %v8383_v13, %v8398_v1  ;;  %v3205_v44 = vrot.slane %v8383_v13, %v8444_v30  ;;  %v7111_v31 = vld [vmem:[#allocation17 + $0x68] ss:$16 sps:$4 sm:$0xff]  }
 0x5ec   : > { %4910 = vmatprep.subr.bf16.mxu0 %v7066_v54  ;;  %v8409_v14 = vsub.f32 %v3036_v49, %v3037_v3  ;;  %v3052_v22 = vrot.slane %v8403_v51, %v8386_v46  ;;  %v3048_v6 = vrot.slane %v8403_v51, %v8389_v47  ;;  %v3060_v16 = vrot.slane %v8403_v51, %v8392_v48  ;;  %v3041_v49 = vld [vmem:[#allocation12 + $0x8] sm:$0xff] }
 0x5ed   : > { %v3056_v35 = vrot.slane %v8403_v51, %v8398_v1 }
 0x5ee   : > { %4870 = vmatpush1.bf16.msra.mxu1 %v7068_v39  ;;  %vm3078_vm4 = vcmp.eq.s32.totalorder %v3052_v22, 1  ;;  %v3238_v56 = vrot.slane %v8409_v14, %v8386_v46  ;;  %vm3077_vm5 = vcmp.eq.s32.totalorder %v3048_v6, 1  ;;  %v3234_v55 = vrot.slane %v8409_v14, %v8389_v47  ;;  %v7119_v6 = vld [vmem:[#allocation17 + $0x8c] ss:$16 sps:$4 sm:$0xff]  }
 0x5ef   : > { %4911 = vmatpush1.bf16.msra.mxu0 %v7069_v36  ;;  %4871 = vmatprep.subr.bf16.mxu1 %v7070_v15  ;;  %v3174_v32 = vsel %vm3078_vm4, %v3102_v59, %v3146_v50  ;;  %v3173_v9 = vsel %vm3077_vm5, %v3094_v41, %v3138_v53  ;;  %vm3080_vm6 = vcmp.eq.s32.totalorder %v3060_v16, 1  ;;  %v3246_v33 = vrot.slane %v8409_v14, %v8392_v48  ;;  %v7105_v41 = vld [vmem:[#allocation17 + $0x48] ss:$16 sps:$4 sm:$0xff]  }
 0x5f0   : > { %4912 = vmatprep.subr.bf16.mxu0 %v7072_v19  ;;  %v3223_v54 = vmul.f32 %v3189_v17, %v3174_v32  ;;  %v3222_v25 = vmul.f32 %v3185_v52, %v3173_v9  ;;  %v3176_v12 = vsel %vm3080_vm6, %v3103_v4, %v3147_v11  ;;  %vm3079_vm7 = vcmp.eq.s32.totalorder %v3056_v35, 1  ;;  %v3043_v59 = vld [vmem:[#allocation13 + $0x8] sm:$0xff] }
 0x5f1   : > { %v3225_v39 = vmul.f32 %v3197_v23, %v3176_v12  ;;  %v3175_v36 = vsel %vm3079_vm7, %v3101_v62, %v3145_v45  ;;  %v3242_v15 = vrot.slane %v8409_v14, %v8398_v1  ;;  %v3068_v53 = vrot.slane %v8403_v51, %v8444_v30  ;;  %v7110_v62 = vld [vmem:[#allocation17 + $0x464] ss:$16 sps:$4 sm:$0xff]   ;;  %v7108_v45 = vld [vmem:[#allocation17 + $0x460] ss:$16 sps:$4 sm:$0xff]   ;;  %v7159_v16 = vld [vmem:[#allocation17 + $0x168] ss:$16 sps:$4 sm:$0xff]  }
 0x5f2   : > { %4872 = vmatpush1.bf16.msra.mxu1 %v7074_v7  ;;  %v3272_v19 = vadd.f32 %v3238_v56, %v3223_v54  ;;  %v3271_v57 = vadd.f32 %v3234_v55, %v3222_v25  ;;  %v3224_v58 = vmul.f32 %v3193_v61, %v3175_v36  ;;  %v7093_v7 = vld [vmem:[#allocation17 + $0x8] ss:$16 sps:$4 sm:$0xff]   ;;  %v3072_v4 = vrot.slane %v8403_v51, %v8452_v10  ;;  %v7116_v61 = vld [vmem:[#allocation17 + $0x484] ss:$16 sps:$4 sm:$0xff]  }
 0x5f3   : > { %4913 = vmatpush1.bf16.msra.mxu0 %v7075_v38  ;;  %4873 = vmatprep.subr.bf16.mxu1 %v7076_v40  ;;  %v3274_v29 = vadd.f32 %v3246_v33, %v3225_v39  ;;  %v3111_v17 = vrot.slane %v3041_v49, %v8374_v27  ;;  %v3155_v52 = vrot.slane %v3043_v59, %v8374_v27  ;;  %vm8470_vm9 = vcmp.eq.s32.totalorder %v3068_v53, 1  ;;  %v7114_v33 = vld [vmem:[#allocation17 + $0x480] ss:$16 sps:$4 sm:$0xff]   ;;  %v7117_v36 = vld [vmem:[#allocation17 + $0x88] ss:$16 sps:$4 sm:$0xff]  }
 0x5f4   : > { %4914 = vmatprep.subr.bf16.mxu0 %v7078_v63  ;;  %v3280_v60 = vpack.c.bf16 %v3272_v19, %v3272_v19  ;;  %v8431_v5 = vpack.c.bf16 %v3271_v57, %v3271_v57  ;;  %v3273_v38 = vadd.f32 %v3242_v15, %v3224_v58  ;;  %v7090_v63 = vld [vmem:[#allocation17 + $0x400] ss:$16 sps:$4 sm:$0xff]   ;;  %v3104_v11 = vcombine.high %v3041_v49, %v3041_v49  ;;  %v7135_v53 = vld [vmem:[#allocation17 + $0xe8] ss:$16 sps:$4 sm:$0xff]  }
 0x5f5   : > { %v8433_v40 = vpack.c.bf16 %v3274_v29, %v3274_v29  ;;  %v3148_v22 = vcombine.high %v3043_v59, %v3043_v59  ;;  %v3254_v23 = vrot.slane %v8409_v14, %v8444_v30  ;;  %v3119_v56 = vcombine.high %v3111_v17, %v3111_v17  ;;  %v7141_v49 = vld [vmem:[#allocation17 + $0x108] ss:$16 sps:$4 sm:$0xff]   ;;  %v7149_v59 = vld [vmem:[#allocation17 + $0x12c] ss:$16 sps:$4 sm:$0xff]  }
 0x5f6   : > { %4874 = vmatpush1.bf16.msra.mxu1 %v7080_v2  ;;  %4877 = vmatprep.mubr.bf16.mxu1 %v3280_v60  ;;  %v8435_v2 = vpack.c.bf16 %v3273_v38, %v3273_v38  ;;  %v3163_v55 = vcombine.high %v3155_v52, %v3155_v52  ;;  %v3118_v9 = vrot.slane %v3104_v11, %v8374_v27  ;;  %vm8484_vm10 = vcmp.eq.s32.totalorder %v3072_v4, 1  ;;  %v7155_v4 = vld [vmem:[#allocation17 + $0x14c] ss:$16 sps:$4 sm:$0xff]   ;;  %v7177_v12 = vld [vmem:[#allocation17 + $0x1c8] ss:$16 sps:$4 sm:$0xff]  }
 0x5f7   : > { %4915 = vmatpush1.bf16.msra.mxu0 %v7081_v18  ;;  %4875 = vmatprep.subr.bf16.mxu1 %v7082_v21  ;;  %v8440_v18 = vsub.s32 4, %v8371_v28  ;;  %v7096_v21 = vld [vmem:[#allocation17 + $0x420] ss:$16 sps:$4 sm:$0xff]   ;;  %v3162_v25 = vrot.slane %v3148_v22, %v8374_v27  ;;  %v3209_v39 = vrot.slane %v8383_v13, %v8452_v10  ;;  %v3258_v57 = vrot.slane %v8409_v14, %v8452_v10  ;;  %v7125_v27 = vld [vmem:[#allocation17 + $0xac] ss:$16 sps:$4 sm:$0xff]  }
 0x5f8   : > { %4916 = vmatprep.subr.bf16.mxu0 %v7084_v26  ;;  %4918 = vmatprep.mubr.bf16.mxu0 %v8433_v40  ;;  %v7107_v26 = vld [vmem:[#allocation17 + $0x4c] ss:$16 sps:$4 sm:$0xff]   ;;  %v3178_v15 = vsel %vm8470_vm9, %v3119_v56, %v3163_v55  ;;  %v3120_v19 = vcombine.high %v3118_v9, %v3118_v9  ;;  %v7129_v10 = vld [vmem:[#allocation17 + $0xc8] ss:$16 sps:$4 sm:$0xff]   ;;  %v7158_v22 = vld [vmem:[#allocation17 + $0x564] ss:$16 sps:$4 sm:$0xff]  }
 0x5f9   : > { %v3064_v37 = vrot.slane %v8403_v51, %v8440_v18  ;;  %v3201_v3 = vrot.slane %v8383_v13, %v8440_v18  ;;  %v3227_v58 = vmul.f32 %v3205_v44, %v3178_v15  ;;  %v3179_v38 = vsel %vm8484_vm10, %v3118_v9, %v3162_v25  ;;  %v7140_v44 = vld [vmem:[#allocation17 + $0x504] ss:$16 sps:$4 sm:$0xff]   ;;  %v7161_v11 = vld [vmem:[#allocation17 + $0x16c] ss:$16 sps:$4 sm:$0xff]   ;;  %v7171_v9 = vld [vmem:[#allocation17 + $0x1a8] ss:$16 sps:$4 sm:$0xff]  }
 0x5fa   : > { %4876 = vmatpush1.bf16.msra.mxu1 %v7086_v34  ;;  %v7104_v34 = vld [vmem:[#allocation17 + $0x444] ss:$16 sps:$4 sm:$0xff]   ;;  %v7173_v56 = vld [vmem:[#allocation17 + $0x1ac] ss:$16 sps:$4 sm:$0xff]   ;;  %v7180_v15 = vld [vmem:[#allocation17 + $0x5e0] ss:$16 sps:$4 sm:$0xff]  }
 0x5fb   : > { %4917 = vmatpush1.bf16.msra.mxu0 %v7087_v24  ;;  %5009 = vmatprep.subr.bf16.mxu1 %v7095_v43  ;;  %v8449_v24 = vsub.s32 7, %v8371_v28  ;;  %v7113_v43 = vld [vmem:[#allocation17 + $0x6c] ss:$16 sps:$4 sm:$0xff]   ;;  %vm8458_vm8 = vcmp.eq.s32.totalorder %v3064_v37, 1  ;;  %v7128_v37 = vld [vmem:[#allocation17 + $0x4c4] ss:$16 sps:$4 sm:$0xff]  }
 0x5fc   : > { %4927 = vmatprep.subr.bf16.mxu0 %v7092_v42  ;;  %v7102_v42 = vld [vmem:[#allocation17 + $0x440] ss:$16 sps:$4 sm:$0xff]   ;;  %v3177_v32 = vsel %vm8458_vm8, %v3111_v17, %v3155_v52  ;;  %v7146_v28 = vld [vmem:[#allocation17 + $0x524] ss:$16 sps:$4 sm:$0xff]   ;;  %v7153_v52 = vld [vmem:[#allocation17 + $0x148] ss:$16 sps:$4 sm:$0xff]  }
 0x5fd   : > { %4878 = vmatmul.mubr.bf16.vlgmr.msra.gmra.mrb[0].mxu1 %v8431_v5  ;;  %v3076_v50 = vrot.slane %v8403_v51, %v8449_v24  ;;  %v3250_v51 = vrot.slane %v8409_v14, %v8440_v18  ;;  %v3213_v35 = vrot.slane %v8383_v13, %v8449_v24  ;;  %v3226_v54 = vmul.f32 %v3201_v3, %v3177_v32  ;;  %v7144_v3 = vld [vmem:[#allocation17 + $0x520] ss:$16 sps:$4 sm:$0xff]   ;;  %v7170_v55 = vld [vmem:[#allocation17 + $0x5a4] ss:$16 sps:$4 sm:$0xff]  }
 0x5fe   : > { %4919 = vmatmul.mubr.bf16.vlgmr.msra.gmra.mrb[0].mxu0 %v8435_v2  ;;  %5010 = vmatpush1.bf16.msra.mxu1 %v7093_v7  ;;  %v7122_v7 = vld [vmem:[#allocation17 + $0x4a4] ss:$16 sps:$4 sm:$0xff]   ;;  %v3262_v13 = vrot.slane %v8409_v14, %v8449_v24  ;;  %v3228_v18 = vmul.f32 %v3209_v39, %v3179_v38  ;;  %v7126_v24 = vld [vmem:[#allocation17 + $0x4c0] ss:$16 sps:$4 sm:$0xff]   ;;  %v7185_v39 = vld [vmem:[#allocation17 + $0x1ec] ss:$16 sps:$4 sm:$0xff]  }
 0x5ff   : > { %4928 = vmatpush1.bf16.msra.mxu0 %v7090_v63  ;;  %5011 = vmatprep.subr.bf16.mxu1 %v7101_v0  ;;  %vm3084_vm11 = vcmp.eq.s32.totalorder %v3076_v50, 1  ;;  %v8494_v29 = vadd.f32 %v3250_v51, %v3226_v54  ;;  %v7120_v63 = vld [vmem:[#allocation17 + $0x4a0] ss:$16 sps:$4 sm:$0xff]   ;;  %v3276_v0 = vadd.f32 %v3254_v23, %v3227_v58  ;;  %v7147_v50 = vld [vmem:[#allocation17 + $0x128] ss:$16 sps:$4 sm:$0xff]  }
 0x600   : > { %4929 = vmatprep.subr.bf16.mxu0 %v7098_v8  ;;  %5041 = vmatprep.mubr.bf16.mxu1 %v3280_v60  ;;  %v3164_v60 = vcombine.high %v3162_v25, %v3162_v25  ;;  %v7150_v17 = vld [vmem:[#allocation17 + $0x540] ss:$16 sps:$4 sm:$0xff]   ;;  %v7167_v23 = vld [vmem:[#allocation17 + $0x18c] ss:$16 sps:$4 sm:$0xff]   ;;  %v7164_v51 = vld [vmem:[#allocation17 + $0x584] ss:$16 sps:$4 sm:$0xff]  }
 0x601   : > { %v8500_v30 = vpack.c.bf16 %v3276_v0, %v3276_v0  ;;  %v7168_v32 = vld [vmem:[#allocation17 + $0x5a0] ss:$16 sps:$4 sm:$0xff]   ;;  %v7176_v54 = vld [vmem:[#allocation17 + $0x5c4] ss:$16 sps:$4 sm:$0xff]  }
 0x602   : > { %5012 = vmatpush1.bf16.msra.mxu1 %v7099_v20  ;;  %v3180_v8 = vsel %vm3084_vm11, %v3120_v19, %v3164_v60  ;;  %v7123_v20 = vld [vmem:[#allocation17 + $0xa8] ss:$16 sps:$4 sm:$0xff]   ;;  %v7174_v25 = vld [vmem:[#allocation17 + $0x5c0] ss:$16 sps:$4 sm:$0xff]   ;;  %v7194_v38 = vld [vmem:[#allocation17 + $0x624] ss:$16 sps:$4 sm:$0xff]  }
 0x603   : > { %4930 = vmatpush1.bf16.msra.mxu0 %v7096_v21  ;;  %5013 = vmatprep.subr.bf16.mxu1 %v7107_v26  ;;  %v3229_v21 = vmul.f32 %v3213_v35, %v3180_v8  ;;  %v7131_v26 = vld [vmem:[#allocation17 + $0xcc] ss:$16 sps:$4 sm:$0xff]   ;;  %v7162_v35 = vld [vmem:[#allocation17 + $0x580] ss:$16 sps:$4 sm:$0xff]   ;;  %v7183_v19 = vld [vmem:[#allocation17 + $0x1e8] ss:$16 sps:$4 sm:$0xff]  }
 0x604   : > { %4931 = vmatprep.subr.bf16.mxu0 %v7104_v34  ;;  %v8502_v34 = vadd.f32 %v3258_v57, %v3228_v18  ;;  %4959 = vmatprep.mubr.bf16.mxu0 %v8500_v30  ;;  %v7191_v57 = vld [vmem:[#allocation17 + $0x20c] ss:$16 sps:$4 sm:$0xff]   ;;  %v7186_v58 = vld [vmem:[#allocation17 + $0x600] ss:$16 sps:$4 sm:$0xff]   ;;  %v7189_v60 = vld [vmem:[#allocation17 + $0x208] ss:$16 sps:$4 sm:$0xff]  }
 0x605   : > { %v8504_v14 = vadd.f32 %v3262_v13, %v3229_v21  ;;  %v7197_v13 = vld [vmem:[#allocation17 + $0x22c] ss:$16 sps:$4 sm:$0xff]   ;;  %v7192_v0 = vld [vmem:[#allocation17 + $0x620] ss:$16 sps:$4 sm:$0xff]   ;;  %v7195_v8 = vld [vmem:[#allocation17 + $0x228] ss:$16 sps:$4 sm:$0xff]  }
 0x606   : > { %5014 = vmatpush1.bf16.msra.mxu1 %v7105_v41  ;;  %v7137_v41 = vld [vmem:[#allocation17 + $0xec] ss:$16 sps:$4 sm:$0xff]   ;;  %v7200_v18 = vld [vmem:[#allocation17 + $0x644] ss:$16 sps:$4 sm:$0xff]   ;;  %v7201_v21 = vld [vmem:[#allocation17 + $0x248] ss:$16 sps:$4 sm:$0xff]  }
 0x607   : > { %4932 = vmatpush1.bf16.msra.mxu0 %v7102_v42  ;;  %5015 = vmatprep.subr.bf16.mxu1 %v7113_v43  ;;  %v7134_v42 = vld [vmem:[#allocation17 + $0x4e4] ss:$16 sps:$4 sm:$0xff]   ;;  %v7132_v43 = vld [vmem:[#allocation17 + $0x4e0] ss:$16 sps:$4 sm:$0xff]  }
 0x608   : > { %4933 = vmatprep.subr.bf16.mxu0 %v7110_v62  ;;  %v7143_v62 = vld [vmem:[#allocation17 + $0x10c] ss:$16 sps:$4 sm:$0xff]  }
 0x60a   : > { %5016 = vmatpush1.bf16.msra.mxu1 %v7111_v31  ;;  %v7152_v31 = vld [vmem:[#allocation17 + $0x544] ss:$16 sps:$4 sm:$0xff]  }
 0x60b   : > { %4934 = vmatpush1.bf16.msra.mxu0 %v7108_v45  ;;  %5017 = vmatprep.subr.bf16.mxu1 %v7119_v6  ;;  %v7138_v45 = vld [vmem:[#allocation17 + $0x500] ss:$16 sps:$4 sm:$0xff]  }
 0x60c   : > { %4935 = vmatprep.subr.bf16.mxu0 %v7116_v61  ;;  %v7156_v6 = vld [vmem:[#allocation17 + $0x560] ss:$16 sps:$4 sm:$0xff]   ;;  %v7165_v61 = vld [vmem:[#allocation17 + $0x188] ss:$16 sps:$4 sm:$0xff]  }
 0x60e   : > { %5018 = vmatpush1.bf16.msra.mxu1 %v7117_v36  ;;  %v7182_v36 = vld [vmem:[#allocation17 + $0x5e4] ss:$16 sps:$4 sm:$0xff]  }
 0x60f   : > { %4936 = vmatpush1.bf16.msra.mxu0 %v7114_v33  ;;  %5019 = vmatprep.subr.bf16.mxu1 %v7125_v27  ;;  %v7179_v33 = vld [vmem:[#allocation17 + $0x1cc] ss:$16 sps:$4 sm:$0xff]   ;;  %v7188_v27 = vld [vmem:[#allocation17 + $0x604] ss:$16 sps:$4 sm:$0xff]  }
 0x610   : > { %4937 = vmatprep.subr.bf16.mxu0 %v7122_v7  ;;  %v8509_v7 = vpack.c.bf16 %v8494_v29, %v8494_v29  ;;  %v7203_v29 = vld [vmem:[#allocation17 + $0x24c] ss:$16 sps:$4 sm:$0xff]  }
 0x612   : > { %5020 = vmatpush1.bf16.msra.mxu1 %v7123_v20  ;;  %v7198_v20 = vld [vmem:[#allocation17 + $0x640] ss:$16 sps:$4 sm:$0xff]  }
 0x613   : > { %4938 = vmatpush1.bf16.msra.mxu0 %v7120_v63  ;;  %5021 = vmatprep.subr.bf16.mxu1 %v7131_v26  ;;  %v8513_v63 = vpack.c.bf16 %v8504_v14, %v8504_v14  ;;  %v7206_v26 = vld [vmem:[#allocation17 + $0x664] ss:$16 sps:$4 sm:$0xff]   ;;  %v7207_v14 = vld [vmem:[#allocation17 + $0x268] ss:$16 sps:$4 sm:$0xff]  }
 0x614   : > { %4939 = vmatprep.subr.bf16.mxu0 %v7128_v37  ;;  %v7204_v37 = vld [vmem:[#allocation17 + $0x660] ss:$16 sps:$4 sm:$0xff]  }
 0x616   : > { %5022 = vmatpush1.bf16.msra.mxu1 %v7129_v10  ;;  %v7212_v10 = vld [vmem:[#allocation17 + $0x684] ss:$16 sps:$4 sm:$0xff]  }
 0x617   : > { %4940 = vmatpush1.bf16.msra.mxu0 %v7126_v24  ;;  %5023 = vmatprep.subr.bf16.mxu1 %v7137_v41  ;;  %v7215_v24 = vld [vmem:[#allocation17 + $0x28c] ss:$16 sps:$4 sm:$0xff]   ;;  %v7210_v41 = vld [vmem:[#allocation17 + $0x680] ss:$16 sps:$4 sm:$0xff]  }
 0x618   : > { %4941 = vmatprep.subr.bf16.mxu0 %v7134_v42  ;;  %v7213_v42 = vld [vmem:[#allocation17 + $0x288] ss:$16 sps:$4 sm:$0xff]  }
 0x61a   : > { %5024 = vmatpush1.bf16.msra.mxu1 %v7135_v53  ;;  %v7219_v53 = vld [vmem:[#allocation17 + $0x2a8] ss:$16 sps:$4 sm:$0xff]  }
 0x61b   : > { %4942 = vmatpush1.bf16.msra.mxu0 %v7132_v43  ;;  %5025 = vmatprep.subr.bf16.mxu1 %v7143_v62  ;;  %v7218_v43 = vld [vmem:[#allocation17 + $0x6a4] ss:$16 sps:$4 sm:$0xff]   ;;  %v7216_v62 = vld [vmem:[#allocation17 + $0x6a0] ss:$16 sps:$4 sm:$0xff]  }
 0x61c   : > { %4943 = vmatprep.subr.bf16.mxu0 %v7140_v44  ;;  %v7227_v44 = vld [vmem:[#allocation17 + $0x2cc] ss:$16 sps:$4 sm:$0xff]  }
 0x61e   : > { %5026 = vmatpush1.bf16.msra.mxu1 %v7141_v49  ;;  %v7222_v49 = vld [vmem:[#allocation17 + $0x6c0] ss:$16 sps:$4 sm:$0xff]  }
 0x61f   : > { %4944 = vmatpush1.bf16.msra.mxu0 %v7138_v45  ;;  %5027 = vmatprep.subr.bf16.mxu1 %v7149_v59  ;;  %v7224_v45 = vld [vmem:[#allocation17 + $0x6c4] ss:$16 sps:$4 sm:$0xff]   ;;  %v7225_v59 = vld [vmem:[#allocation17 + $0x2c8] ss:$16 sps:$4 sm:$0xff]  }
 0x620   : > { %4945 = vmatprep.subr.bf16.mxu0 %v7146_v28  ;;  %v7230_v28 = vld [vmem:[#allocation17 + $0x6e4] ss:$16 sps:$4 sm:$0xff]  }
 0x622   : > { %5028 = vmatpush1.bf16.msra.mxu1 %v7147_v50  ;;  %v7231_v50 = vld [vmem:[#allocation17 + $0x2e8] ss:$16 sps:$4 sm:$0xff]  }
 0x623   : > { %4946 = vmatpush1.bf16.msra.mxu0 %v7144_v3  ;;  %5029 = vmatprep.subr.bf16.mxu1 %v7155_v4  ;;  %v7233_v3 = vld [vmem:[#allocation17 + $0x2ec] ss:$16 sps:$4 sm:$0xff]   ;;  %v7228_v4 = vld [vmem:[#allocation17 + $0x6e0] ss:$16 sps:$4 sm:$0xff]  }
 0x624   : > { %4947 = vmatprep.subr.bf16.mxu0 %v7152_v31  ;;  %v7236_v31 = vld [vmem:[#allocation17 + $0x704] ss:$16 sps:$4 sm:$0xff]  }
 0x626   : > { %5030 = vmatpush1.bf16.msra.mxu1 %v7153_v52  ;;  %v7237_v52 = vld [vmem:[#allocation17 + $0x308] ss:$16 sps:$4 sm:$0xff]  }
 0x627   : > { %4948 = vmatpush1.bf16.msra.mxu0 %v7150_v17  ;;  %5031 = vmatprep.subr.bf16.mxu1 %v7161_v11  ;;  %v7239_v17 = vld [vmem:[#allocation17 + $0x30c] ss:$16 sps:$4 sm:$0xff]   ;;  %v7234_v11 = vld [vmem:[#allocation17 + $0x700] ss:$16 sps:$4 sm:$0xff]  }
 0x628   : > { %4949 = vmatprep.subr.bf16.mxu0 %v7158_v22  ;;  %v7242_v22 = vld [vmem:[#allocation17 + $0x724] ss:$16 sps:$4 sm:$0xff]  }
 0x62a   : > { %5032 = vmatpush1.bf16.msra.mxu1 %v7159_v16  ;;  %v7243_v16 = vld [vmem:[#allocation17 + $0x328] ss:$16 sps:$4 sm:$0xff]  }
 0x62b   : > { %4950 = vmatpush1.bf16.msra.mxu0 %v7156_v6  ;;  %5033 = vmatprep.subr.bf16.mxu1 %v7167_v23  ;;  %v7245_v6 = vld [vmem:[#allocation17 + $0x32c] ss:$16 sps:$4 sm:$0xff]   ;;  %v7240_v23 = vld [vmem:[#allocation17 + $0x720] ss:$16 sps:$4 sm:$0xff]  }
 0x62c   : > { %4951 = vmatprep.subr.bf16.mxu0 %v7164_v51  ;;  %v7248_v51 = vld [vmem:[#allocation17 + $0x744] ss:$16 sps:$4 sm:$0xff]  }
 0x62e   : > { %5034 = vmatpush1.bf16.msra.mxu1 %v7165_v61  ;;  %v7249_v61 = vld [vmem:[#allocation17 + $0x348] ss:$16 sps:$4 sm:$0xff]  }
 0x62f   : > { %4952 = vmatpush1.bf16.msra.mxu0 %v7162_v35  ;;  %5035 = vmatprep.subr.bf16.mxu1 %v7173_v56  ;;  %v7251_v35 = vld [vmem:[#allocation17 + $0x34c] ss:$16 sps:$4 sm:$0xff]   ;;  %v7246_v56 = vld [vmem:[#allocation17 + $0x740] ss:$16 sps:$4 sm:$0xff]  }
 0x630   : > { %4953 = vmatprep.subr.bf16.mxu0 %v7170_v55  ;;  %v7254_v55 = vld [vmem:[#allocation17 + $0x764] ss:$16 sps:$4 sm:$0xff]  }
 0x632   : > { %5036 = vmatpush1.bf16.msra.mxu1 %v7171_v9  ;;  %v7255_v9 = vld [vmem:[#allocation17 + $0x368] ss:$16 sps:$4 sm:$0xff]  }
 0x633   : > { %4954 = vmatpush1.bf16.msra.mxu0 %v7168_v32  ;;  %5037 = vmatprep.subr.bf16.mxu1 %v7179_v33  ;;  %v7257_v32 = vld [vmem:[#allocation17 + $0x36c] ss:$16 sps:$4 sm:$0xff]   ;;  %v7252_v33 = vld [vmem:[#allocation17 + $0x760] ss:$16 sps:$4 sm:$0xff]  }
 0x634   : > { %4955 = vmatprep.subr.bf16.mxu0 %v7176_v54  ;;  %v7260_v54 = vld [vmem:[#allocation17 + $0x784] ss:$16 sps:$4 sm:$0xff]  }
 0x636   : > { %5038 = vmatpush1.bf16.msra.mxu1 %v7177_v12  ;;  %v7261_v12 = vld [vmem:[#allocation17 + $0x388] ss:$16 sps:$4 sm:$0xff]  }
 0x637   : > { %4956 = vmatpush1.bf16.msra.mxu0 %v7174_v25  ;;  %5039 = vmatprep.subr.bf16.mxu1 %v7185_v39  ;;  %v7263_v25 = vld [vmem:[#allocation17 + $0x38c] ss:$16 sps:$4 sm:$0xff]   ;;  %v7258_v39 = vld [vmem:[#allocation17 + $0x780] ss:$16 sps:$4 sm:$0xff]  }
 0x638   : > { %4957 = vmatprep.subr.bf16.mxu0 %v7182_v36  ;;  %v7266_v36 = vld [vmem:[#allocation17 + $0x7a4] ss:$16 sps:$4 sm:$0xff]  }
 0x63a   : > { %5040 = vmatpush1.bf16.msra.mxu1 %v7183_v19  ;;  %v7264_v19 = vld [vmem:[#allocation17 + $0x7a0] ss:$16 sps:$4 sm:$0xff]  }
 0x63b   : > { %4958 = vmatpush1.bf16.msra.mxu0 %v7180_v15  ;;  %5050 = vmatprep.subr.bf16.mxu1 %v7191_v57  ;;  %v7269_v15 = vld [vmem:[#allocation17 + $0x3ac] ss:$16 sps:$4 sm:$0xff]   ;;  %v7267_v57 = vld [vmem:[#allocation17 + $0x3a8] ss:$16 sps:$4 sm:$0xff]  }
 0x63c   : > { %4968 = vmatprep.subr.bf16.mxu0 %v7188_v27  ;;  %v7275_v27 = vld [vmem:[#allocation17 + $0x3cc] ss:$16 sps:$4 sm:$0xff]  }
 0x63d   : > { %5042 = vmatmul.mubr.bf16.vlgmr.msra.gmra.mrb[4].mxu1 %v8431_v5  ;;  %v7209_v5 = vld [vmem:[#allocation17 + $0x26c] ss:$16 sps:$4 sm:$0xff]  }
 0x63e   : > { %4960 = vmatmul.mubr.bf16.vlgmr.msra.gmra.mrb[0].mxu0 %v8509_v7  ;;  %5051 = vmatpush1.bf16.msra.mxu1 %v7189_v60  ;;  %v7273_v60 = vld [vmem:[#allocation17 + $0x3c8] ss:$16 sps:$4 sm:$0xff]  }
 0x63f   : > { %4969 = vmatpush1.bf16.msra.mxu0 %v7186_v58  ;;  %5052 = vmatprep.subr.bf16.mxu1 %v7197_v13  ;;  %v7272_v58 = vld [vmem:[#allocation17 + $0x7c4] ss:$16 sps:$4 sm:$0xff]   ;;  %v7270_v13 = vld [vmem:[#allocation17 + $0x7c0] ss:$16 sps:$4 sm:$0xff]  }
 0x640   : > { %4970 = vmatprep.subr.bf16.mxu0 %v7194_v38  ;;  %5000 = vmatprep.mubr.bf16.mxu0 %v8513_v63  ;;  %v7281_v38 = vld [vmem:[#allocation17 + $0x3ec] ss:$16 sps:$4 sm:$0xff]  }
 0x641   : > { %5082 = vmatprep.mubr.bf16.mxu1 %v8433_v40  ;;  %v7221_v40 = vld [vmem:[#allocation17 + $0x2ac] ss:$16 sps:$4 sm:$0xff]  }
 0x642   : > { %5053 = vmatpush1.bf16.msra.mxu1 %v7195_v8  ;;  %v7279_v8 = vld [vmem:[#allocation17 + $0x3e8] ss:$16 sps:$4 sm:$0xff]  }
 0x643   : > { %4971 = vmatpush1.bf16.msra.mxu0 %v7192_v0  ;;  %5054 = vmatprep.subr.bf16.mxu1 %v7203_v29  ;;  %v7278_v0 = vld [vmem:[#allocation17 + $0x7e4] ss:$16 sps:$4 sm:$0xff]   ;;  %v7276_v29 = vld [vmem:[#allocation17 + $0x7e0] ss:$16 sps:$4 sm:$0xff]  }
 0x644   : > { %4972 = vmatprep.subr.bf16.mxu0 %v7200_v18  ;;  %v7286_v18 = vld [vmem:[#allocation17 + $0x40c] ss:$16 sps:$4 sm:$0xff]  }
 0x646   : > { %5055 = vmatpush1.bf16.msra.mxu1 %v7201_v21  ;;  %v7284_v21 = vld [vmem:[#allocation17 + $0x408] ss:$16 sps:$4 sm:$0xff]  }
 0x647   : > { %4973 = vmatpush1.bf16.msra.mxu0 %v7198_v20  ;;  %5056 = vmatprep.subr.bf16.mxu1 %v7209_v5  ;;  %v8521_v20 = vpack.c.bf16 %v8502_v34, %v8502_v34  ;;  %v7289_v5 = vld [vmem:[#allocation17 + $0x42c] ss:$16 sps:$4 sm:$0xff]   ;;  %v7383_v34 = vld [vmem:[#allocation19 + $0x10] ss:$8 sps:$4 sm:$0xff]  }
 0x648   : > { %4974 = vmatprep.subr.bf16.mxu0 %v7206_v26  ;;  %v7380_v26 = vld [vmem:[#allocation19] ss:$8 sps:$4 sm:$0xff]  }
 0x64a   : > { %5057 = vmatpush1.bf16.msra.mxu1 %v7207_v14  ;;  %v7287_v14 = vld [vmem:[#allocation17 + $0x428] ss:$16 sps:$4 sm:$0xff]  }
 0x64b   : > { %4975 = vmatpush1.bf16.msra.mxu0 %v7204_v37  ;;  %5058 = vmatprep.subr.bf16.mxu1 %v7215_v24  ;;  %v7382_v37 = vld [vmem:[#allocation19 + $0x4] ss:$8 sps:$4 sm:$0xff]   ;;  %v7385_v24 = vld [vmem:[#allocation19 + $0x14] ss:$8 sps:$4 sm:$0xff]  }
 0x64c   : > { %4976 = vmatprep.subr.bf16.mxu0 %v7212_v10  ;;  %v7292_v10 = vld [vmem:[#allocation17 + $0x44c] ss:$16 sps:$4 sm:$0xff]  }
 0x64e   : > { %5059 = vmatpush1.bf16.msra.mxu1 %v7213_v42  ;;  %v7388_v42 = vld [vmem:[#allocation19 + $0x24] ss:$8 sps:$4 sm:$0xff]  }
 0x64f   : > { %4977 = vmatpush1.bf16.msra.mxu0 %v7210_v41  ;;  %5060 = vmatprep.subr.bf16.mxu1 %v7221_v40  ;;  %v7290_v41 = vld [vmem:[#allocation17 + $0x448] ss:$16 sps:$4 sm:$0xff]  }
 0x650   : > { %4978 = vmatprep.subr.bf16.mxu0 %v7218_v43  ;;  %v7386_v40 = vld [vmem:[#allocation19 + $0x20] ss:$8 sps:$4 sm:$0xff]  }
 0x651   : > { %v7293_v43 = vld [vmem:[#allocation17 + $0x468] ss:$16 sps:$4 sm:$0xff]  }
 0x652   : > { %5061 = vmatpush1.bf16.msra.mxu1 %v7219_v53  ;;  %v7391_v53 = vld [vmem:[#allocation19 + $0x34] ss:$8 sps:$4 sm:$0xff]  }
 0x653   : > { %4979 = vmatpush1.bf16.msra.mxu0 %v7216_v62  ;;  %5062 = vmatprep.subr.bf16.mxu1 %v7227_v44  ;;  %v7298_v62 = vld [vmem:[#allocation17 + $0x48c] ss:$16 sps:$4 sm:$0xff]   ;;  %v7389_v44 = vld [vmem:[#allocation19 + $0x30] ss:$8 sps:$4 sm:$0xff]  }
 0x654   : > { %4980 = vmatprep.subr.bf16.mxu0 %v7224_v45  ;;  %v7301_v45 = vld [vmem:[#allocation17 + $0x4ac] ss:$16 sps:$4 sm:$0xff]  }
 0x656   : > { %5063 = vmatpush1.bf16.msra.mxu1 %v7225_v59  ;;  %v7304_v59 = vld [vmem:[#allocation17 + $0x4cc] ss:$16 sps:$4 sm:$0xff]  }
 0x657   : > { %4981 = vmatpush1.bf16.msra.mxu0 %v7222_v49  ;;  %5064 = vmatprep.subr.bf16.mxu1 %v7233_v3  ;;  %v7299_v49 = vld [vmem:[#allocation17 + $0x4a8] ss:$16 sps:$4 sm:$0xff]   ;;  %v7307_v3 = vld [vmem:[#allocation17 + $0x4ec] ss:$16 sps:$4 sm:$0xff]  }
 0x658   : > { %4982 = vmatprep.subr.bf16.mxu0 %v7230_v28  ;;  %v7302_v28 = vld [vmem:[#allocation17 + $0x4c8] ss:$16 sps:$4 sm:$0xff]  }
 0x65a   : > { %5065 = vmatpush1.bf16.msra.mxu1 %v7231_v50  ;;  %v7305_v50 = vld [vmem:[#allocation17 + $0x4e8] ss:$16 sps:$4 sm:$0xff]  }
 0x65b   : > { %4983 = vmatpush1.bf16.msra.mxu0 %v7228_v4  ;;  %5066 = vmatprep.subr.bf16.mxu1 %v7239_v17  ;;  %v7310_v4 = vld [vmem:[#allocation17 + $0x50c] ss:$16 sps:$4 sm:$0xff]  }
 0x65c   : > { %4984 = vmatprep.subr.bf16.mxu0 %v7236_v31  ;;  %v7308_v31 = vld [vmem:[#allocation17 + $0x508] ss:$16 sps:$4 sm:$0xff]   ;;  %v7313_v17 = vld [vmem:[#allocation17 + $0x52c] ss:$16 sps:$4 sm:$0xff]  }
 0x65e   : > { %5067 = vmatpush1.bf16.msra.mxu1 %v7237_v52  ;;  %v7311_v52 = vld [vmem:[#allocation17 + $0x528] ss:$16 sps:$4 sm:$0xff]  }
 0x65f   : > { %4985 = vmatpush1.bf16.msra.mxu0 %v7234_v11  ;;  %5068 = vmatprep.subr.bf16.mxu1 %v7245_v6  ;;  %v7316_v11 = vld [vmem:[#allocation17 + $0x54c] ss:$16 sps:$4 sm:$0xff]  }
 0x660   : > { %4986 = vmatprep.subr.bf16.mxu0 %v7242_v22  ;;  %v7314_v22 = vld [vmem:[#allocation17 + $0x548] ss:$16 sps:$4 sm:$0xff]   ;;  %v7319_v6 = vld [vmem:[#allocation17 + $0x56c] ss:$16 sps:$4 sm:$0xff]  }
 0x662   : > { %5069 = vmatpush1.bf16.msra.mxu1 %v7243_v16  ;;  %v7317_v16 = vld [vmem:[#allocation17 + $0x568] ss:$16 sps:$4 sm:$0xff]  }
 0x663   : > { %4987 = vmatpush1.bf16.msra.mxu0 %v7240_v23  ;;  %5070 = vmatprep.subr.bf16.mxu1 %v7251_v35  ;;  %v7322_v23 = vld [vmem:[#allocation17 + $0x58c] ss:$16 sps:$4 sm:$0xff]  }
 0x664   : > { %4988 = vmatprep.subr.bf16.mxu0 %v7248_v51  ;;  %v7320_v51 = vld [vmem:[#allocation17 + $0x588] ss:$16 sps:$4 sm:$0xff]   ;;  %v7325_v35 = vld [vmem:[#allocation17 + $0x5ac] ss:$16 sps:$4 sm:$0xff]  }
 0x666   : > { %5071 = vmatpush1.bf16.msra.mxu1 %v7249_v61  ;;  %v7323_v61 = vld [vmem:[#allocation17 + $0x5a8] ss:$16 sps:$4 sm:$0xff]  }
 0x667   : > { %4989 = vmatpush1.bf16.msra.mxu0 %v7246_v56  ;;  %5072 = vmatprep.subr.bf16.mxu1 %v7257_v32  ;;  %v7328_v56 = vld [vmem:[#allocation17 + $0x5cc] ss:$16 sps:$4 sm:$0xff]  }
 0x668   : > { %4990 = vmatprep.subr.bf16.mxu0 %v7254_v55  ;;  %v7326_v55 = vld [vmem:[#allocation17 + $0x5c8] ss:$16 sps:$4 sm:$0xff]   ;;  %v7331_v32 = vld [vmem:[#allocation17 + $0x5ec] ss:$16 sps:$4 sm:$0xff]  }
 0x66a   : > { %5073 = vmatpush1.bf16.msra.mxu1 %v7255_v9  ;;  %v7329_v9 = vld [vmem:[#allocation17 + $0x5e8] ss:$16 sps:$4 sm:$0xff]  }
 0x66b   : > { %4991 = vmatpush1.bf16.msra.mxu0 %v7252_v33  ;;  %5074 = vmatprep.subr.bf16.mxu1 %v7263_v25  ;;  %v7334_v33 = vld [vmem:[#allocation17 + $0x60c] ss:$16 sps:$4 sm:$0xff]  }
 0x66c   : > { %4992 = vmatprep.subr.bf16.mxu0 %v7260_v54  ;;  %v7332_v54 = vld [vmem:[#allocation17 + $0x608] ss:$16 sps:$4 sm:$0xff]   ;;  %v7337_v25 = vld [vmem:[#allocation17 + $0x62c] ss:$16 sps:$4 sm:$0xff]  }
 0x66e   : > { %5075 = vmatpush1.bf16.msra.mxu1 %v7261_v12  ;;  %v7335_v12 = vld [vmem:[#allocation17 + $0x628] ss:$16 sps:$4 sm:$0xff]  }
 0x66f   : > { %4993 = vmatpush1.bf16.msra.mxu0 %v7258_v39  ;;  %5076 = vmatprep.subr.bf16.mxu1 %v7269_v15  ;;  %v7340_v39 = vld [vmem:[#allocation17 + $0x64c] ss:$16 sps:$4 sm:$0xff]  }
 0x670   : > { %4994 = vmatprep.subr.bf16.mxu0 %v7266_v36  ;;  %v7338_v36 = vld [vmem:[#allocation17 + $0x648] ss:$16 sps:$4 sm:$0xff]   ;;  %v7343_v15 = vld [vmem:[#allocation17 + $0x66c] ss:$16 sps:$4 sm:$0xff]  }
 0x672   : > { %5077 = vmatpush1.bf16.msra.mxu1 %v7267_v57  ;;  %v7346_v57 = vld [vmem:[#allocation17 + $0x68c] ss:$16 sps:$4 sm:$0xff]  }
 0x673   : > { %4995 = vmatpush1.bf16.msra.mxu0 %v7264_v19  ;;  %5078 = vmatprep.subr.bf16.mxu1 %v7275_v27  ;;  %v7341_v19 = vld [vmem:[#allocation17 + $0x668] ss:$16 sps:$4 sm:$0xff]  }
 0x674   : > { %4996 = vmatprep.subr.bf16.mxu0 %v7272_v58  ;;  %v7344_v27 = vld [vmem:[#allocation17 + $0x688] ss:$16 sps:$4 sm:$0xff]   ;;  %v7349_v58 = vld [vmem:[#allocation17 + $0x6ac] ss:$16 sps:$4 sm:$0xff]  }
 0x676   : > { %5079 = vmatpush1.bf16.msra.mxu1 %v7273_v60  ;;  %v7352_v60 = vld [vmem:[#allocation17 + $0x6cc] ss:$16 sps:$4 sm:$0xff]  }
 0x677   : > { %4997 = vmatpush1.bf16.msra.mxu0 %v7270_v13  ;;  %5080 = vmatprep.subr.bf16.mxu1 %v7281_v38 }
 0x678   : > { %4998 = vmatprep.subr.bf16.mxu0 %v7278_v0  ;;  %v7392_v0 = vld [vmem:[#allocation19 + $0x40] ss:$8 sps:$4 sm:$0xff]  }
 0x67a   : > { %5081 = vmatpush1.bf16.msra.mxu1 %v7279_v8 }
 0x67b   : > { %4999 = vmatpush1.bf16.msra.mxu0 %v7276_v29  ;;  %5091 = vmatprep.subr.bf16.mxu1 %v7286_v18  ;;  %v7350_v29 = vld [vmem:[#allocation17 + $0x6c8] ss:$16 sps:$4 sm:$0xff]  }
 0x67c   : > { %5726 = vmatprep.subr.bf16.mxu0 %v7382_v37  ;;  %v7353_v37 = vld [vmem:[#allocation17 + $0x6e8] ss:$16 sps:$4 sm:$0xff]  }
 0x67d   : > { %5083 = vmatmul.mubr.bf16.vlgmr.msra.gmra.mrb[4].mxu1 %v8435_v2  ;;  %v7295_v2 = vld [vmem:[#allocation17 + $0x46c] ss:$16 sps:$4 sm:$0xff]  }
 0x67e   : > { %5001 = vmatmul.mubr.bf16.vlgmr.msra.gmra.mrb[0].mxu0 %v8521_v20  ;;  %5092 = vmatpush1.bf16.msra.mxu1 %v7284_v21  ;;  %v7355_v21 = vld [vmem:[#allocation17 + $0x6ec] ss:$16 sps:$4 sm:$0xff]  }
 0x67f   : > { %5093 = vmatprep.subr.bf16.mxu1 %v7289_v5  ;;  %5123 = vmatprep.mubr.bf16.mxu1 %v8500_v30  ;;  %v7296_v30 = vld [vmem:[#allocation17 + $0x488] ss:$16 sps:$4 sm:$0xff]   ;;  %v7397_v5 = vld [vmem:[#allocation19 + $0x54] ss:$8 sps:$4 sm:$0xff]  }
 0x680   : > { %5727 = vmatpush1.bf16.msra.mxu0 %v7380_v26  ;;  %v7395_v26 = vld [vmem:[#allocation19 + $0x50] ss:$8 sps:$4 sm:$0xff]  }
 0x681   : > { %5728 = vmatprep.subr.bf16.mxu0 %v7385_v24  ;;  %v7400_v24 = vld [vmem:[#allocation19 + $0x64] ss:$8 sps:$4 sm:$0xff]  }
 0x682   : > { %5094 = vmatpush1.bf16.msra.mxu1 %v7287_v14  ;;  %v7358_v14 = vld [vmem:[#allocation17 + $0x70c] ss:$16 sps:$4 sm:$0xff]  }
 0x683   : > { %5095 = vmatprep.subr.bf16.mxu1 %v7292_v10  ;;  %v7398_v10 = vld [vmem:[#allocation19 + $0x60] ss:$8 sps:$4 sm:$0xff]  }
 0x684   : > { %5729 = vmatpush1.bf16.msra.mxu0 %v7383_v34  ;;  %v7356_v34 = vld [vmem:[#allocation17 + $0x708] ss:$16 sps:$4 sm:$0xff]  }
 0x685   : > { %5730 = vmatprep.subr.bf16.mxu0 %v7388_v42  ;;  %v7403_v42 = vld [vmem:[#allocation19 + $0x74] ss:$8 sps:$4 sm:$0xff]  }
 0x686   : > { %5096 = vmatpush1.bf16.msra.mxu1 %v7290_v41  ;;  %v7361_v41 = vld [vmem:[#allocation17 + $0x72c] ss:$16 sps:$4 sm:$0xff]  }
 0x687   : > { %5097 = vmatprep.subr.bf16.mxu1 %v7295_v2  ;;  %v7401_v2 = vld [vmem:[#allocation19 + $0x70] ss:$8 sps:$4 sm:$0xff]  }
 0x688   : > { %5731 = vmatpush1.bf16.msra.mxu0 %v7386_v40  ;;  %v7359_v40 = vld [vmem:[#allocation17 + $0x728] ss:$16 sps:$4 sm:$0xff]  }
 0x689   : > { %5732 = vmatprep.subr.bf16.mxu0 %v7391_v53  ;;  %v7406_v53 = vld [vmem:[#allocation19 + $0x84] ss:$8 sps:$4 sm:$0xff]  }
 0x68a   : > { %5098 = vmatpush1.bf16.msra.mxu1 %v7293_v43  ;;  %v7364_v43 = vld [vmem:[#allocation17 + $0x74c] ss:$16 sps:$4 sm:$0xff]  }
 0x68b   : > { %5099 = vmatprep.subr.bf16.mxu1 %v7298_v62  ;;  %v7404_v62 = vld [vmem:[#allocation19 + $0x80] ss:$8 sps:$4 sm:$0xff]  }
 0x68c   : > { %5733 = vmatpush1.bf16.msra.mxu0 %v7389_v44  ;;  %v7362_v44 = vld [vmem:[#allocation17 + $0x748] ss:$16 sps:$4 sm:$0xff]  }
 0x68e   : > { %5100 = vmatpush1.bf16.msra.mxu1 %v7296_v30  ;;  %v7367_v30 = vld [vmem:[#allocation17 + $0x76c] ss:$16 sps:$4 sm:$0xff]  }
 0x68f   : > { %5101 = vmatprep.subr.bf16.mxu1 %v7301_v45  ;;  %v7409_v45 = vld [vmem:[#allocation19 + $0x94] ss:$8 sps:$4 sm:$0xff]  }
 0x692   : > { %5102 = vmatpush1.bf16.msra.mxu1 %v7299_v49  ;;  %v7407_v49 = vld [vmem:[#allocation19 + $0x90] ss:$8 sps:$4 sm:$0xff]  }
 0x693   : > { %5103 = vmatprep.subr.bf16.mxu1 %v7304_v59  ;;  %v7365_v59 = vld [vmem:[#allocation17 + $0x768] ss:$16 sps:$4 sm:$0xff]  }
 0x696   : > { %5104 = vmatpush1.bf16.msra.mxu1 %v7302_v28  ;;  %v7370_v28 = vld [vmem:[#allocation17 + $0x78c] ss:$16 sps:$4 sm:$0xff]  }
 0x697   : > { %5105 = vmatprep.subr.bf16.mxu1 %v7307_v3  ;;  %v7412_v3 = vld [vmem:[#allocation19 + $0xa4] ss:$8 sps:$4 sm:$0xff]  }
 0x69a   : > { %5106 = vmatpush1.bf16.msra.mxu1 %v7305_v50  ;;  %v7410_v50 = vld [vmem:[#allocation19 + $0xa0] ss:$8 sps:$4 sm:$0xff]  }
 0x69b   : > { %5107 = vmatprep.subr.bf16.mxu1 %v7310_v4  ;;  %v7368_v4 = vld [vmem:[#allocation17 + $0x788] ss:$16 sps:$4 sm:$0xff]  }
 0x69e   : > { %5108 = vmatpush1.bf16.msra.mxu1 %v7308_v31  ;;  %v7373_v31 = vld [vmem:[#allocation17 + $0x7ac] ss:$16 sps:$4 sm:$0xff]  }
 0x69f   : > { %5109 = vmatprep.subr.bf16.mxu1 %v7313_v17  ;;  %v7415_v17 = vld [vmem:[#allocation19 + $0xb4] ss:$8 sps:$4 sm:$0xff]  }
 0x6a2   : > { %5110 = vmatpush1.bf16.msra.mxu1 %v7311_v52  ;;  %v7413_v52 = vld [vmem:[#allocation19 + $0xb0] ss:$8 sps:$4 sm:$0xff]  }
 0x6a3   : > { %5111 = vmatprep.subr.bf16.mxu1 %v7316_v11  ;;  %v7371_v11 = vld [vmem:[#allocation17 + $0x7a8] ss:$16 sps:$4 sm:$0xff]  }
 0x6a6   : > { %5112 = vmatpush1.bf16.msra.mxu1 %v7314_v22  ;;  %v7376_v22 = vld [vmem:[#allocation17 + $0x7cc] ss:$16 sps:$4 sm:$0xff]  }
 0x6a7   : > { %5113 = vmatprep.subr.bf16.mxu1 %v7319_v6  ;;  %v7418_v6 = vld [vmem:[#allocation19 + $0xc4] ss:$8 sps:$4 sm:$0xff]  }
 0x6aa   : > { %5114 = vmatpush1.bf16.msra.mxu1 %v7317_v16  ;;  %v7416_v16 = vld [vmem:[#allocation19 + $0xc0] ss:$8 sps:$4 sm:$0xff]  }
 0x6ab   : > { %5115 = vmatprep.subr.bf16.mxu1 %v7322_v23  ;;  %v7374_v23 = vld [vmem:[#allocation17 + $0x7c8] ss:$16 sps:$4 sm:$0xff]  }
 0x6ae   : > { %5116 = vmatpush1.bf16.msra.mxu1 %v7320_v51  ;;  %v7379_v51 = vld [vmem:[#allocation17 + $0x7ec] ss:$16 sps:$4 sm:$0xff]  }
 0x6af   : > { %5117 = vmatprep.subr.bf16.mxu1 %v7325_v35  ;;  %v7421_v35 = vld [vmem:[#allocation19 + $0xd4] ss:$8 sps:$4 sm:$0xff]  }
 0x6b2   : > { %5118 = vmatpush1.bf16.msra.mxu1 %v7323_v61  ;;  %v7419_v61 = vld [vmem:[#allocation19 + $0xd0] ss:$8 sps:$4 sm:$0xff]  }
 0x6b3   : > { %5119 = vmatprep.subr.bf16.mxu1 %v7328_v56  ;;  %v7377_v56 = vld [vmem:[#allocation17 + $0x7e8] ss:$16 sps:$4 sm:$0xff]  }
 0x6b6   : > { %5120 = vmatpush1.bf16.msra.mxu1 %v7326_v55  ;;  %v7422_v55 = vld [vmem:[#allocation19 + $0xe0] ss:$8 sps:$4 sm:$0xff]  }
 0x6b7   : > { %5121 = vmatprep.subr.bf16.mxu1 %v7331_v32  ;;  %v7424_v32 = vld [vmem:[#allocation19 + $0xe4] ss:$8 sps:$4 sm:$0xff]  }
 0x6ba   : > { %5122 = vmatpush1.bf16.msra.mxu1 %v7329_v9  ;;  %v7427_v9 = vld [vmem:[#allocation19 + $0xf4] ss:$8 sps:$4 sm:$0xff]  }
 0x6bb   : > { %5132 = vmatprep.subr.bf16.mxu1 %v7334_v33  ;;  %v7425_v33 = vld [vmem:[#allocation19 + $0xf0] ss:$8 sps:$4 sm:$0xff]  }
 0x6bd   : > { %5124 = vmatmul.mubr.bf16.vlgmr.msra.gmra.mrb[4].mxu1 %v8509_v7  ;;  %v7347_v7 = vld [vmem:[#allocation17 + $0x6a8] ss:$16 sps:$4 sm:$0xff]  }
 0x6be   : > { %5133 = vmatpush1.bf16.msra.mxu1 %v7332_v54  ;;  %5164 = vmatprep.mubr.bf16.mxu1 %v8513_v63  ;;  %v7394_v63 = vld [vmem:[#allocation19 + $0x44] ss:$8 sps:$4 sm:$0xff]  }
 0x6bf   : > { %5134 = vmatprep.subr.bf16.mxu1 %v7337_v25  ;;  %5734 = vmatprep.subr.bf16.mxu0 %v7394_v63  ;;  %v7430_v54 = vld [vmem:[#allocation19 + $0x104] ss:$8 sps:$4 sm:$0xff]  }
 0x6c0   : > { %5735 = vmatpush1.bf16.msra.mxu0 %v7392_v0  ;;  %v8536_v25 = vld [vmem:[%s8810_s18] sm:$0xf] }
 0x6c1   : > { %5736 = vmatprep.subr.bf16.mxu0 %v7397_v5 }
 0x6c2   : > { %5135 = vmatpush1.bf16.msra.mxu1 %v7335_v12  ;;  %v3548_v12 = vrot.slane %v8536_v25, %v8389_v47 }
 0x6c3   : > { %5136 = vmatprep.subr.bf16.mxu1 %v7340_v39  ;;  %v3552_v39 = vrot.slane %v8536_v25, %v8386_v46 }
 0x6c4   : > { %5737 = vmatpush1.bf16.msra.mxu0 %v7395_v26 }
 0x6c5   : > { %5738 = vmatprep.subr.bf16.mxu0 %v7400_v24 }
 0x6c6   : > { %5137 = vmatpush1.bf16.msra.mxu1 %v7338_v36 }
 0x6c7   : > { %5138 = vmatprep.subr.bf16.mxu1 %v7343_v15 }
 0x6c8   : > { %5739 = vmatpush1.bf16.msra.mxu0 %v7398_v10 }
 0x6c9   : > { %5740 = vmatprep.subr.bf16.mxu0 %v7403_v42 }
 0x6ca   : > { %5139 = vmatpush1.bf16.msra.mxu1 %v7341_v19 }
 0x6cb   : > { %5140 = vmatprep.subr.bf16.mxu1 %v7346_v57 }
 0x6cc   : > { %5741 = vmatpush1.bf16.msra.mxu0 %v7401_v2 }
 0x6cd   : > { %5742 = vmatprep.subr.bf16.mxu0 %v7406_v53 }
 0x6ce   : > { %5141 = vmatpush1.bf16.msra.mxu1 %v7344_v27 }
 0x6cf   : > { %5142 = vmatprep.subr.bf16.mxu1 %v7349_v58 }
 0x6d0   : > { %v8528_v13 = vpop.f32.mrb[0].mxu1  ;;  %5743 = vmatpush1.bf16.msra.mxu0 %v7404_v62 }
 0x6d1   : > { %v8530_v38 = vpop.f32.mrb[1].mxu1  ;;  %5744 = vmatprep.subr.bf16.mxu0 %v7409_v45  ;;  %v4880_v36 = vadd.f32 %v8528_v13, %v3548_v12 }
 0x6d2   : > { %v4883_v8 = vpop.f32.mrb[2].mxu1  ;;  %5143 = vmatpush1.bf16.msra.mxu1 %v7347_v7  ;;  %v4882_v15 = vadd.f32 %v8530_v38, %v3552_v39 }
 0x6d3   : > { %v4884_v18 = vpop.f32.mrb[3].mxu1  ;;  %5144 = vmatprep.subr.bf16.mxu1 %v7352_v60 }
 0x6d4   : > { %5745 = vmatpush1.bf16.msra.mxu0 %v7407_v49 }
 0x6d5   : > { %5746 = vmatprep.subr.bf16.mxu0 %v7412_v3 }
 0x6d6   : > { %5145 = vmatpush1.bf16.msra.mxu1 %v7350_v29 }
 0x6d7   : > { %5146 = vmatprep.subr.bf16.mxu1 %v7355_v21 }
 0x6d8   : > { %5747 = vmatpush1.bf16.msra.mxu0 %v7410_v50 }
 0x6d9   : > { %5748 = vmatprep.subr.bf16.mxu0 %v7415_v17 }
 0x6da   : > { %5147 = vmatpush1.bf16.msra.mxu1 %v7353_v37 }
 0x6db   : > { %5148 = vmatprep.subr.bf16.mxu1 %v7358_v14 }
 0x6dc   : > { %5749 = vmatpush1.bf16.msra.mxu0 %v7413_v52 }
 0x6dd   : > { %5750 = vmatprep.subr.bf16.mxu0 %v7418_v6 }
 0x6de   : > { %5149 = vmatpush1.bf16.msra.mxu1 %v7356_v34 }
 0x6df   : > { %5150 = vmatprep.subr.bf16.mxu1 %v7361_v41 }
 0x6e0   : > { %5751 = vmatpush1.bf16.msra.mxu0 %v7416_v16 }
 0x6e1   : > { %5752 = vmatprep.subr.bf16.mxu0 %v7421_v35 }
 0x6e2   : > { %5151 = vmatpush1.bf16.msra.mxu1 %v7359_v40 }
 0x6e3   : > { %5152 = vmatprep.subr.bf16.mxu1 %v7364_v43 }
 0x6e4   : > { %5753 = vmatpush1.bf16.msra.mxu0 %v7419_v61  ;;  %v8551_v61 = vld [vmem:[%s8811_s12] sm:$0xf] }
 0x6e5   : > { %5754 = vmatprep.subr.bf16.mxu0 %v7424_v32  ;;  %v5276_v32 = vrot.slane %v8551_v61, %v8389_v47 }
 0x6e6   : > { %5153 = vmatpush1.bf16.msra.mxu1 %v7362_v44 }
 0x6e7   : > { %5154 = vmatprep.subr.bf16.mxu1 %v7367_v30 }
 0x6e8   : > { %5755 = vmatpush1.bf16.msra.mxu0 %v7422_v55 }
 0x6e9   : > { %5756 = vmatprep.subr.bf16.mxu0 %v7427_v9 }
 0x6ea   : > { %5155 = vmatpush1.bf16.msra.mxu1 %v7365_v59 }
 0x6eb   : > { %5156 = vmatprep.subr.bf16.mxu1 %v7370_v28 }
 0x6ec   : > { %5757 = vmatpush1.bf16.msra.mxu0 %v7425_v33 }
 0x6ed   : > { %5767 = vmatprep.subr.bf16.mxu0 %v7430_v54  ;;  %v5280_v54 = vrot.slane %v8551_v61, %v8386_v46 }
 0x6ee   : > { %5157 = vmatpush1.bf16.msra.mxu1 %v7368_v4 }
 0x6ef   : > { %5158 = vmatprep.subr.bf16.mxu1 %v7373_v31 }
 0x6f2   : > { %5159 = vmatpush1.bf16.msra.mxu1 %v7371_v11 }
 0x6f3   : > { %5160 = vmatprep.subr.bf16.mxu1 %v7376_v22 }
 0x6f6   : > { %5161 = vmatpush1.bf16.msra.mxu1 %v7374_v23 }
 0x6f7   : > { %5162 = vmatprep.subr.bf16.mxu1 %v7379_v51 }
 0x6fa   : > { %5163 = vmatpush1.bf16.msra.mxu1 %v7377_v56  ;;  %v8556_v56 = vld [vmem:[%s8812_s14] sm:$0xf] }
 0x6fd   : > { %5165 = vmatmul.mubr.bf16.vlgmr.msra.gmra.mrb[4].mxu1 %v8521_v20 }
 0x751   : > { %v5002_v19 = vpop.f32.mrb[0].mxu0 }
 0x752   : > { %v6783_v20 = vadd.f32 %v5002_v19, %v4880_v36  ;;  %v5004_v57 = vpop.f32.mrb[1].mxu0  ;;  %v5301_v36 = vrot.slane %v8556_v56, %v8389_v47  ;;  %v5305_v19 = vrot.slane %v8556_v56, %v8386_v46 }
 0x753   : > { %v6785_v27 = vadd.f32 %v5004_v57, %v4882_v15  ;;  %v5006_v58 = vpop.f32.mrb[2].mxu0 }
 0x754   : > { %v5176_v7 = vsel %vm5175_vm12, %v6783_v20, 0.0  ;;  %v5208_v60 = vmul.f32 %v6783_v20, %v6783_v20  ;;  %v5007_v63 = vpop.f32.mrb[3].mxu0 }
 0x755   : > { %v5177_v0 = vrot.slane %v5176_v7, 4  ;;  %v5183_v8 = vsel %vm5175_vm12, %v6785_v27, 0.0  ;;  %v5209_v29 = vmul.f32 %v6785_v27, %v6785_v27 }
 0x756   : > { %v5212_v18 = vsel %vm5175_vm12, %v5208_v60, 0.0  ;;  %v5184_v21 = vrot.slane %v5183_v8, 4 }
 0x757   : > { %v5178_v13 = vadd.f32 %v5177_v0, %v5176_v7  ;;  %v5213_v5 = vrot.slane %v5212_v18, 4  ;;  %v5219_v38 = vsel %vm5175_vm12, %v5209_v29, 0.0  ;;  %v7433_v29 = vld [vmem:[#allocation19 + $0x114] ss:$8 sps:$4 sm:$0xff]  }
 0x758   : > { %v5185_v26 = vadd.f32 %v5184_v21, %v5183_v8  ;;  %v5220_v37 = vrot.slane %v5219_v38, 4  ;;  %v7436_v21 = vld [vmem:[#allocation19 + $0x124] ss:$8 sps:$4 sm:$0xff]  }
 0x759   : > { %v5179_v14 = vrot.slane %v5178_v13, 2  ;;  %v5214_v24 = vadd.f32 %v5213_v5, %v5212_v18  ;;  %v7431_v18 = vld [vmem:[#allocation19 + $0x110] ss:$8 sps:$4 sm:$0xff]   ;;  %v7439_v5 = vld [vmem:[#allocation19 + $0x134] ss:$8 sps:$4 sm:$0xff]  }
 0x75a   : > { %v5186_v10 = vrot.slane %v5185_v26, 2  ;;  %v5221_v34 = vadd.f32 %v5220_v37, %v5219_v38  ;;  %v7437_v38 = vld [vmem:[#allocation19 + $0x130] ss:$8 sps:$4 sm:$0xff]   ;;  %v7440_v37 = vld [vmem:[#allocation19 + $0x140] ss:$8 sps:$4 sm:$0xff]  }
 0x75b   : > { %v5180_v41 = vadd.f32 %v5179_v14, %v5178_v13  ;;  %v5215_v42 = vrot.slane %v5214_v24, 2  ;;  %v7434_v13 = vld [vmem:[#allocation19 + $0x120] ss:$8 sps:$4 sm:$0xff]   ;;  %v7445_v14 = vld [vmem:[#allocation19 + $0x154] ss:$8 sps:$4 sm:$0xff]  }
 0x75c   : > { %v5187_v2 = vadd.f32 %v5186_v10, %v5185_v26  ;;  %v5222_v40 = vrot.slane %v5221_v34, 2  ;;  %v7442_v26 = vld [vmem:[#allocation19 + $0x144] ss:$8 sps:$4 sm:$0xff]  }
 0x75d   : > { %v5181_v43 = vrot.slane %v5180_v41, 1  ;;  %v5216_v53 = vadd.f32 %v5215_v42, %v5214_v24  ;;  %v7443_v24 = vld [vmem:[#allocation19 + $0x150] ss:$8 sps:$4 sm:$0xff]   ;;  %v7448_v10 = vld [vmem:[#allocation19 + $0x164] ss:$8 sps:$4 sm:$0xff]  }
 0x75e   : > { %v5188_v62 = vrot.slane %v5187_v2, 1  ;;  %v5223_v44 = vadd.f32 %v5222_v40, %v5221_v34  ;;  %v7446_v34 = vld [vmem:[#allocation19 + $0x160] ss:$8 sps:$4 sm:$0xff]   ;;  %v7449_v42 = vld [vmem:[#allocation19 + $0x170] ss:$8 sps:$4 sm:$0xff]  }
 0x75f   : > { %v5182_v30 = vadd.f32 %v5181_v43, %v5180_v41  ;;  %v5217_v45 = vrot.slane %v5216_v53, 1  ;;  %v7451_v41 = vld [vmem:[#allocation19 + $0x174] ss:$8 sps:$4 sm:$0xff]   ;;  %v7452_v40 = vld [vmem:[#allocation19 + $0x180] ss:$8 sps:$4 sm:$0xff]  }
 0x760   : > { %v5189_v49 = vadd.f32 %v5188_v62, %v5187_v2  ;;  %v5224_v59 = vrot.slane %v5223_v44, 1  ;;  %v7454_v2 = vld [vmem:[#allocation19 + $0x184] ss:$8 sps:$4 sm:$0xff]   ;;  %v7457_v43 = vld [vmem:[#allocation19 + $0x194] ss:$8 sps:$4 sm:$0xff]  }
 0x761   : > { %v5204_v28 = vmul.f32 0.5, %v5182_v30  ;;  %v5218_v3 = vadd.f32 %v5217_v45, %v5216_v53  ;;  %v7455_v53 = vld [vmem:[#allocation19 + $0x190] ss:$8 sps:$4 sm:$0xff]   ;;  %v7460_v62 = vld [vmem:[#allocation19 + $0x1a4] ss:$8 sps:$4 sm:$0xff]  }
 0x762   : > { %v5205_v50 = vmul.f32 0.5, %v5189_v49  ;;  %v5225_v4 = vadd.f32 %v5224_v59, %v5223_v44  ;;  %v7458_v44 = vld [vmem:[#allocation19 + $0x1a0] ss:$8 sps:$4 sm:$0xff]   ;;  %v7463_v30 = vld [vmem:[#allocation19 + $0x1b4] ss:$8 sps:$4 sm:$0xff]  }
 0x763   : > { %v5240_v31 = vmul.f32 0.5, %v5218_v3  ;;  %v5244_v17 = vmul.f32 %v5204_v28, %v5204_v28  ;;  %v5256_v55 = vsub.f32 %v6783_v20, %v5204_v28  ;;  %v7461_v45 = vld [vmem:[#allocation19 + $0x1b0] ss:$8 sps:$4 sm:$0xff]   ;;  %v7466_v49 = vld [vmem:[#allocation19 + $0x1c4] ss:$8 sps:$4 sm:$0xff]  }
 0x764   : > { %v5241_v52 = vmul.f32 0.5, %v5225_v4  ;;  %v5245_v11 = vmul.f32 %v5205_v50, %v5205_v50  ;;  %v5257_v33 = vsub.f32 %v6785_v27, %v5205_v50  ;;  %v7428_v27 = vld [vmem:[#allocation19 + $0x100] ss:$8 sps:$4 sm:$0xff]   ;;  %v7469_v28 = vld [vmem:[#allocation19 + $0x1d4] ss:$8 sps:$4 sm:$0xff]  }
 0x765   : > { %v5248_v22 = vsub.f32 %v5240_v31, %v5244_v17  ;;  %v7464_v59 = vld [vmem:[#allocation19 + $0x1c0] ss:$8 sps:$4 sm:$0xff]   ;;  %v7467_v3 = vld [vmem:[#allocation19 + $0x1d0] ss:$8 sps:$4 sm:$0xff]   ;;  %v7472_v50 = vld [vmem:[#allocation19 + $0x1e4] ss:$8 sps:$4 sm:$0xff]  }
 0x766   : > { %v5249_v6 = vsub.f32 %v5241_v52, %v5245_v11  ;;  %v7470_v4 = vld [vmem:[#allocation19 + $0x1e0] ss:$8 sps:$4 sm:$0xff]   ;;  %v7475_v31 = vld [vmem:[#allocation19 + $0x1f4] ss:$8 sps:$4 sm:$0xff]   ;;  %v7473_v17 = vld [vmem:[#allocation19 + $0x1f0] ss:$8 sps:$4 sm:$0xff]   ;;  %v3556_v52 = vrot.slane %v8536_v25, %v8398_v1  ;;  %v3560_v11 = vrot.slane %v8536_v25, %v8392_v48 }
 0x767   : > { %v5252_v16 = vmax.f32 %v5248_v22, 0.0 }
 0x768   : > { %v5253_v23 = vmax.f32 %v5249_v6, 0.0 }
 0x769   : > { %v5260_v51 = vadd.f32 1e-05, %v5252_v16 }
 0x76a   : > { %v5261_v35 = vadd.f32 1e-05, %v5253_v23 }
 0x76b   : > { %7478 = vrsqrt.f32 %v5260_v51 }
 0x76c   : > { %7480 = vrsqrt.f32 %v5261_v35 }
 0x775   : > { %v7479_v9 = vpop.eup %7478 }
 0x776   : > { %v7481_v12 = vpop.eup %7480  ;;  %v5268_v39 = vmul.f32 %v7479_v9, %v5256_v55 }
 0x777   : > { %v5269_v15 = vmul.f32 %v7481_v12, %v5257_v33 }
 0x778   : > { %v5293_v57 = vmul.f32 %v5276_v32, %v5268_v39 }
 0x779   : > { %v5294_v58 = vmul.f32 %v5280_v54, %v5269_v15 }
 0x77a   : > { %v5318_v20 = vadd.f32 %v5301_v36, %v5293_v57 }
 0x77b   : > { %v5319_v7 = vadd.f32 %v5305_v19, %v5294_v58 }
 0x77c   : > { %v5322_v60 = vmax.f32 %v5318_v20, 0.0 }
 0x77d   : > { %v5323_v63 = vmax.f32 %v5319_v7, 0.0 }
 0x77e   : > { %v5326_v8 = vpack.c.bf16 %v5322_v60, %v5322_v60 }
 0x77f   : > { %v5327_v0 = vpack.c.bf16 %v5323_v63, %v5323_v63 }
 0x781   : > { %5758 = vmatprep.mubr.bf16.mxu0 %v5327_v0 }
 0x782   : > { %5759 = vmatmul.mubr.bf16.vlgmr.msra.gmra.mrb[4].mxu0 %v5326_v8 }
 0x783   : > { %5768 = vmatpush1.bf16.msra.mxu0 %v7428_v27 }
 0x784   : > { %5769 = vmatprep.subr.bf16.mxu0 %v7433_v29 }
 0x787   : > { %5770 = vmatpush1.bf16.msra.mxu0 %v7431_v18 }
 0x788   : > { %5771 = vmatprep.subr.bf16.mxu0 %v7436_v21 }
 0x78b   : > { %5772 = vmatpush1.bf16.msra.mxu0 %v7434_v13 }
 0x78c   : > { %5773 = vmatprep.subr.bf16.mxu0 %v7439_v5 }
 0x78f   : > { %5774 = vmatpush1.bf16.msra.mxu0 %v7437_v38 }
 0x790   : > { %5775 = vmatprep.subr.bf16.mxu0 %v7442_v26 }
 0x793   : > { %5776 = vmatpush1.bf16.msra.mxu0 %v7440_v37 }
 0x794   : > { %5777 = vmatprep.subr.bf16.mxu0 %v7445_v14 }
 0x797   : > { %5778 = vmatpush1.bf16.msra.mxu0 %v7443_v24 }
 0x798   : > { %5779 = vmatprep.subr.bf16.mxu0 %v7448_v10 }
 0x79b   : > { %5780 = vmatpush1.bf16.msra.mxu0 %v7446_v34 }
 0x79c   : > { %5781 = vmatprep.subr.bf16.mxu0 %v7451_v41 }
 0x79f   : > { %5782 = vmatpush1.bf16.msra.mxu0 %v7449_v42 }
 0x7a0   : > { %5783 = vmatprep.subr.bf16.mxu0 %v7454_v2 }
 0x7a3   : > { %5784 = vmatpush1.bf16.msra.mxu0 %v7452_v40 }
 0x7a4   : > { %5785 = vmatprep.subr.bf16.mxu0 %v7457_v43 }
 0x7a7   : > { %5786 = vmatpush1.bf16.msra.mxu0 %v7455_v53 }
 0x7a8   : > { %5787 = vmatprep.subr.bf16.mxu0 %v7460_v62 }
 0x7ab   : > { %5788 = vmatpush1.bf16.msra.mxu0 %v7458_v44 }
 0x7ac   : > { %5789 = vmatprep.subr.bf16.mxu0 %v7463_v30 }
 0x7af   : > { %5790 = vmatpush1.bf16.msra.mxu0 %v7461_v45 }
 0x7b0   : > { %5791 = vmatprep.subr.bf16.mxu0 %v7466_v49 }
 0x7b3   : > { %5792 = vmatpush1.bf16.msra.mxu0 %v7464_v59  ;;  %v5284_v59 = vrot.slane %v8551_v61, %v8398_v1 }
 0x7b4   : > { %5793 = vmatprep.subr.bf16.mxu0 %v7469_v28 }
 0x7b7   : > { %5794 = vmatpush1.bf16.msra.mxu0 %v7467_v3 }
 0x7b8   : > { %5795 = vmatprep.subr.bf16.mxu0 %v7472_v50  ;;  %v5288_v50 = vrot.slane %v8551_v61, %v8392_v48  ;;  %v5902_v61 = vld [vmem:[%s8813_s28 + $0x80] sm:$0xff] }
 0x7bb   : > { %5796 = vmatpush1.bf16.msra.mxu0 %v7470_v4 }
 0x7bc   : > { %5797 = vmatprep.subr.bf16.mxu0 %v7475_v31 }
 0x7bf   : > { %5798 = vmatpush1.bf16.msra.mxu0 %v7473_v17  ;;  %v5309_v17 = vrot.slane %v8556_v56, %v8398_v1  ;;  %v5903_v1 = vld [vmem:[%s8813_s28 + $0x88] sm:$0xff] }
 0x7d0   : > { %v5166_v22 = vpop.f32.mrb[4].mxu1 }
 0x7d1   : > { %v6786_v6 = vadd.f32 %v5166_v22, %v3556_v52  ;;  %v5168_v16 = vpop.f32.mrb[5].mxu1 }
 0x7d2   : > { %v6787_v23 = vadd.f32 %v5168_v16, %v3560_v11  ;;  %v5170_v51 = vpop.f32.mrb[6].mxu1  ;;  %v5313_v11 = vrot.slane %v8556_v56, %v8392_v48  ;;  %v5886_v48 = vld [vmem:[%s8813_s28] sm:$0xff]  ;;  %v5887_v56 = vld [vmem:[%s8813_s28 + $0x8] sm:$0xff] }
 0x7d3   : > { %v5190_v35 = vsel %vm5175_vm12, %v6786_v6, 0.0  ;;  %v5210_v55 = vmul.f32 %v6786_v6, %v6786_v6  ;;  %v5171_v32 = vpop.f32.mrb[7].mxu1 }
 0x7d4   : > { %v5191_v9 = vrot.slane %v5190_v35, 4  ;;  %v5197_v33 = vsel %vm5175_vm12, %v6787_v23, 0.0  ;;  %v5211_v54 = vmul.f32 %v6787_v23, %v6787_v23 }
 0x7d5   : > { %v5226_v12 = vsel %vm5175_vm12, %v5210_v55, 0.0  ;;  %v5198_v39 = vrot.slane %v5197_v33, 4 }
 0x7d6   : > { %v5192_v36 = vadd.f32 %v5191_v9, %v5190_v35  ;;  %v5227_v15 = vrot.slane %v5226_v12, 4  ;;  %v5233_v25 = vsel %vm5175_vm12, %v5211_v54, 0.0  ;;  %v6750_v9 = vpack.c.bf16 %v5903_v1, %v5902_v61  ;;  %v5904_v54 = vld [vmem:[%s8813_s28 + $0x90] sm:$0xff] }
 0x7d7   : > { %v5199_v19 = vadd.f32 %v5198_v39, %v5197_v33  ;;  %v5234_v57 = vrot.slane %v5233_v25, 4  ;;  %v6752_v33 = vpack.c.bf16 %v5887_v56, %v5886_v48 }
 0x7d8   : > { %v5193_v58 = vrot.slane %v5192_v36, 2  ;;  %v5228_v20 = vadd.f32 %v5227_v15, %v5226_v12  ;;  %6751 = vmatprep.subr.bf16.mxu1 %v6750_v9  ;;  %v5905_v12 = vld [vmem:[%s8813_s28 + $0x98] sm:$0xff] }
 0x7d9   : > { %v5200_v7 = vrot.slane %v5199_v19, 2  ;;  %v5235_v60 = vadd.f32 %v5234_v57, %v5233_v25  ;;  %6753 = vmatpush3.bf16.msra.mxu1 %v6752_v33  ;;  %v6754_v39 = vpack.c.bf16 %v5905_v12, %v5904_v54  ;;  %v5889_v15 = vld [vmem:[%s8813_s28 + $0x18] sm:$0xff]  ;;  %v5907_v57 = vld [vmem:[%s8813_s28 + $0xa8] sm:$0xff] }
 0x7da   : > { %v5194_v63 = vadd.f32 %v5193_v58, %v5192_v36  ;;  %v5229_v0 = vrot.slane %v5228_v20, 2  ;;  %v5888_v36 = vld [vmem:[%s8813_s28 + $0x10] sm:$0xff] }
 0x7db   : > { %v5201_v27 = vadd.f32 %v5200_v7, %v5199_v19  ;;  %v5236_v8 = vrot.slane %v5235_v60, 2  ;;  %v6756_v25 = vpack.c.bf16 %v5889_v15, %v5888_v36  ;;  %6755 = vmatprep.subr.bf16.mxu1 %v6754_v39  ;;  %v5906_v19 = vld [vmem:[%s8813_s28 + $0xa0] sm:$0xff]  ;;  %v5891_v7 = vld [vmem:[%s8813_s28 + $0x28] sm:$0xff] }
 0x7dc   : > { %v5195_v29 = vrot.slane %v5194_v63, 1  ;;  %v5230_v18 = vadd.f32 %v5229_v0, %v5228_v20  ;;  %v6758_v58 = vpack.c.bf16 %v5907_v57, %v5906_v19  ;;  %v5890_v20 = vld [vmem:[%s8813_s28 + $0x20] sm:$0xff]  ;;  %v5909_v0 = vld [vmem:[%s8813_s28 + $0xb8] sm:$0xff] }
 0x7dd   : > { %v5202_v21 = vrot.slane %v5201_v27, 1  ;;  %v5237_v13 = vadd.f32 %v5236_v8, %v5235_v60  ;;  %6757 = vmatpush3.bf16.msra.mxu1 %v6756_v25  ;;  %v6760_v60 = vpack.c.bf16 %v5891_v7, %v5890_v20  ;;  %v5892_v8 = vld [vmem:[%s8813_s28 + $0x30] sm:$0xff] }
 0x7de   : > { %v5196_v5 = vadd.f32 %v5195_v29, %v5194_v63  ;;  %v5231_v38 = vrot.slane %v5230_v18, 1  ;;  %6759 = vmatprep.subr.bf16.mxu1 %v6758_v58  ;;  %v5908_v63 = vld [vmem:[%s8813_s28 + $0xb0] sm:$0xff]  ;;  %v5893_v29 = vld [vmem:[%s8813_s28 + $0x38] sm:$0xff] }
 0x7df   : > { %v5203_v26 = vadd.f32 %v5202_v21, %v5201_v27  ;;  %v5238_v37 = vrot.slane %v5237_v13, 1  ;;  %v6762_v27 = vpack.c.bf16 %v5909_v0, %v5908_v63  ;;  %v5910_v21 = vld [vmem:[%s8813_s28 + $0xc0] sm:$0xff] }
 0x7e0   : > { %v5206_v14 = vmul.f32 0.5, %v5196_v5  ;;  %v5232_v24 = vadd.f32 %v5231_v38, %v5230_v18  ;;  %v6764_v18 = vpack.c.bf16 %v5893_v29, %v5892_v8  ;;  %v5894_v38 = vld [vmem:[%s8813_s28 + $0x40] sm:$0xff] }
 0x7e1   : > { %v5207_v10 = vmul.f32 0.5, %v5203_v26  ;;  %v5239_v34 = vadd.f32 %v5238_v37, %v5237_v13  ;;  %6761 = vmatpush3.bf16.msra.mxu1 %v6760_v60  ;;  %v5911_v13 = vld [vmem:[%s8813_s28 + $0xc8] sm:$0xff] }
 0x7e2   : > { %v5242_v41 = vmul.f32 0.5, %v5232_v24  ;;  %v5246_v42 = vmul.f32 %v5206_v14, %v5206_v14  ;;  %v5258_v49 = vsub.f32 %v6786_v6, %v5206_v14  ;;  %6763 = vmatprep.subr.bf16.mxu1 %v6762_v27  ;;  %v6766_v5 = vpack.c.bf16 %v5911_v13, %v5910_v21  ;;  %v5895_v26 = vld [vmem:[%s8813_s28 + $0x48] sm:$0xff]  ;;  %v5912_v14 = vld [vmem:[%s8813_s28 + $0xd0] sm:$0xff]  ;;  %v5913_v24 = vld [vmem:[%s8813_s28 + $0xd8] sm:$0xff] }
 0x7e3   : > { %v5243_v2 = vmul.f32 0.5, %v5239_v34  ;;  %v5247_v40 = vmul.f32 %v5207_v10, %v5207_v10  ;;  %v5259_v3 = vsub.f32 %v6787_v23, %v5207_v10  ;;  %v6768_v37 = vpack.c.bf16 %v5895_v26, %v5894_v38  ;;  %v5896_v34 = vld [vmem:[%s8813_s28 + $0x50] sm:$0xff] }
 0x7e4   : > { %v5250_v43 = vsub.f32 %v5242_v41, %v5246_v42  ;;  %v6770_v10 = vpack.c.bf16 %v5913_v24, %v5912_v14  ;;  %v5897_v41 = vld [vmem:[%s8813_s28 + $0x58] sm:$0xff] }
 0x7e5   : > { %v5251_v53 = vsub.f32 %v5243_v2, %v5247_v40  ;;  %6765 = vmatpush3.bf16.msra.mxu1 %v6764_v18  ;;  %v6772_v42 = vpack.c.bf16 %v5897_v41, %v5896_v34  ;;  %v5914_v2 = vld [vmem:[%s8813_s28 + $0xe0] sm:$0xff]  ;;  %v5915_v40 = vld [vmem:[%s8813_s28 + $0xe8] sm:$0xff] }
 0x7e6   : > { %v5254_v62 = vmax.f32 %v5250_v43, 0.0  ;;  %6767 = vmatprep.subr.bf16.mxu1 %v6766_v5  ;;  %v6774_v43 = vpack.c.bf16 %v5915_v40, %v5914_v2  ;;  %v5808_v40 = vld [vmem:[%s8815_s4] sm:$0x3] }
 0x7e7   : > { %v5255_v44 = vmax.f32 %v5251_v53, 0.0  ;;  %v5898_v53 = vld [vmem:[%s8813_s28 + $0x60] sm:$0xff] }
 0x7e8   : > { %v5262_v30 = vadd.f32 1e-05, %v5254_v62  ;;  %v5899_v62 = vld [vmem:[%s8813_s28 + $0x68] sm:$0xff] }
 0x7e9   : > { %v5263_v45 = vadd.f32 1e-05, %v5255_v44  ;;  %6769 = vmatpush3.bf16.msra.mxu1 %v6768_v37  ;;  %v6776_v44 = vpack.c.bf16 %v5899_v62, %v5898_v53  ;;  %v5862_v62 = vrot.slane %v5808_v40, %v8389_v47 }
 0x7ea   : > { %7482 = vrsqrt.f32 %v5262_v30  ;;  %6771 = vmatprep.subr.bf16.mxu1 %v6770_v10  ;;  %v5916_v30 = vld [vmem:[%s8813_s28 + $0xf0] sm:$0xff] }
 0x7eb   : > { %7484 = vrsqrt.f32 %v5263_v45  ;;  %v5917_v45 = vld [vmem:[%s8813_s28 + $0xf8] sm:$0xff] }
 0x7ed   : > { %6773 = vmatpush3.bf16.msra.mxu1 %v6772_v42 }
 0x7ee   : > { %6775 = vmatprep.subr.bf16.mxu1 %v6774_v43  ;;  %v5809_v43 = vld [vmem:[%s8816_s15] sm:$0x3] }
 0x7f1   : > { %6777 = vmatpush3.bf16.msra.mxu1 %v6776_v44 }
 0x7f4   : > { %v7483_v28 = vpop.eup %7482 }
 0x7f5   : > { %v7485_v4 = vpop.eup %7484  ;;  %v5270_v31 = vmul.f32 %v7483_v28, %v5258_v49  ;;  %v5900_v49 = vld [vmem:[%s8813_s28 + $0x70] sm:$0xff]  ;;  %v5901_v28 = vld [vmem:[%s8813_s28 + $0x78] sm:$0xff] }
 0x7f6   : > { %v5271_v52 = vmul.f32 %v7485_v4, %v5259_v3  ;;  %v6780_v3 = vpack.c.bf16 %v5901_v28, %v5900_v49  ;;  %v5875_v28 = vrot.slane %v5809_v43, %v8389_v47 }
 0x7f7   : > { %v5295_v22 = vmul.f32 %v5284_v59, %v5270_v31  ;;  %v6778_v59 = vpack.c.bf16 %v5917_v45, %v5916_v30  ;;  %v5866_v45 = vrot.slane %v5808_v40, %v8386_v46 }
 0x7f8   : > { %v5296_v16 = vmul.f32 %v5288_v50, %v5271_v52  ;;  %v5394_v50 = vld [vmem:[%s8814_s0] sm:$0x3] }
 0x7f9   : > { %v5320_v6 = vadd.f32 %v5309_v17, %v5295_v22  ;;  %6779 = vmatprep.subr.bf16.mxu1 %v6778_v59  ;;  %v5399_v4 = vrot.slane %v5394_v50, %v8389_v47  ;;  %v5403_v31 = vrot.slane %v5394_v50, %v8386_v46  ;;  %v5879_v50 = vrot.slane %v5809_v43, %v8386_v46 }
 0x7fa   : > { %v5321_v51 = vadd.f32 %v5313_v11, %v5296_v16  ;;  %6781 = vmatpush3.bf16.msra.mxu1 %v6780_v3 }
 0x7fb   : > { %v5324_v35 = vmax.f32 %v5320_v6, 0.0 }
 0x7fc   : > { %v5325_v55 = vmax.f32 %v5321_v51, 0.0 }
 0x7fd   : > { %v5328_v23 = vpack.c.bf16 %v5324_v35, %v5324_v35 }
 0x7fe   : > { %v5329_v32 = vpack.c.bf16 %v5325_v55, %v5325_v55 }
 0x800   : > { %5799 = vmatprep.mubr.bf16.mxu0 %v5329_v32 }
 0x801   : > { %5800 = vmatmul.mubr.bf16.vlgmr.msra.gmra.mrb[4].mxu0 %v5328_v23 }
 0x8d4   : > { %v5801_v17 = vpop.f32.mrb[4].mxu0 }
 0x8d5   : > { %v6788_v52 = vadd.f32 %v5801_v17, %v5399_v4  ;;  %v5803_v11 = vpop.f32.mrb[5].mxu0 }
 0x8d6   : > { %v6789_v22 = vadd.f32 %v5803_v11, %v5403_v31  ;;  %v5805_v16 = vpop.f32.mrb[6].mxu0 }
 0x8d7   : > { %v5810_v6 = vsel %vm5175_vm12, %v6788_v52, 0.0  ;;  %v5826_v51 = vmul.f32 %v6788_v52, %v6788_v52  ;;  %v5806_v35 = vpop.f32.mrb[7].mxu0 }
 0x8d8   : > { %v5811_v55 = vrot.slane %v5810_v6, 4  ;;  %v5817_v32 = vsel %vm5175_vm12, %v6789_v22, 0.0  ;;  %v5827_v23 = vmul.f32 %v6789_v22, %v6789_v22 }
 0x8d9   : > { %v5828_v61 = vsel %vm5175_vm12, %v5826_v51, 0.0  ;;  %v5818_v1 = vrot.slane %v5817_v32, 4 }
 0x8da   : > { %v5812_v9 = vadd.f32 %v5811_v55, %v5810_v6  ;;  %v5829_v48 = vrot.slane %v5828_v61, 4  ;;  %v5835_v56 = vsel %vm5175_vm12, %v5827_v23, 0.0 }
 0x8db   : > { %v5819_v33 = vadd.f32 %v5818_v1, %v5817_v32  ;;  %v5836_v54 = vrot.slane %v5835_v56, 4 }
 0x8dc   : > { %v5813_v12 = vrot.slane %v5812_v9, 2  ;;  %v5830_v39 = vadd.f32 %v5829_v48, %v5828_v61 }
 0x8dd   : > { %v5820_v36 = vrot.slane %v5819_v33, 2  ;;  %v5837_v15 = vadd.f32 %v5836_v54, %v5835_v56 }
 0x8de   : > { %v5814_v25 = vadd.f32 %v5813_v12, %v5812_v9  ;;  %v5831_v19 = vrot.slane %v5830_v39, 2 }
 0x8df   : > { %v5821_v57 = vadd.f32 %v5820_v36, %v5819_v33  ;;  %v5838_v58 = vrot.slane %v5837_v15, 2 }
 0x8e0   : > { %v5815_v20 = vrot.slane %v5814_v25, 1  ;;  %v5832_v7 = vadd.f32 %v5831_v19, %v5830_v39 }
 0x8e1   : > { %v5822_v60 = vrot.slane %v5821_v57, 1  ;;  %v5839_v63 = vadd.f32 %v5838_v58, %v5837_v15 }
 0x8e2   : > { %v5816_v0 = vadd.f32 %v5815_v20, %v5814_v25  ;;  %v5833_v27 = vrot.slane %v5832_v7, 1 }
 0x8e3   : > { %v5823_v8 = vadd.f32 %v5822_v60, %v5821_v57  ;;  %v5840_v29 = vrot.slane %v5839_v63, 1 }
 0x8e4   : > { %v5824_v18 = vmul.f32 0.5, %v5816_v0  ;;  %v5834_v21 = vadd.f32 %v5833_v27, %v5832_v7 }
 0x8e5   : > { %v5825_v13 = vmul.f32 0.5, %v5823_v8  ;;  %v5841_v5 = vadd.f32 %v5840_v29, %v5839_v63 }
 0x8e6   : > { %v5842_v38 = vmul.f32 0.5, %v5834_v21  ;;  %v5844_v26 = vmul.f32 %v5824_v18, %v5824_v18  ;;  %v5850_v53 = vsub.f32 %v6788_v52, %v5824_v18 }
 0x8e7   : > { %v5843_v37 = vmul.f32 0.5, %v5841_v5  ;;  %v5845_v14 = vmul.f32 %v5825_v13, %v5825_v13  ;;  %v5851_v30 = vsub.f32 %v6789_v22, %v5825_v13  ;;  %v6709_v22 = vld [vmem:[%s8817_s22] ss:$0 sm:$0xff] }
 0x8e8   : > { %v5846_v24 = vsub.f32 %v5842_v38, %v5844_v26 }
 0x8e9   : > { %v5847_v10 = vsub.f32 %v5843_v37, %v5845_v14 }
 0x8ea   : > { %v5848_v34 = vmax.f32 %v5846_v24, 0.0 }
 0x8eb   : > { %v5849_v41 = vmax.f32 %v5847_v10, 0.0 }
 0x8ec   : > { %v5852_v42 = vadd.f32 1e-05, %v5848_v34 }
 0x8ed   : > { %v5853_v2 = vadd.f32 1e-05, %v5849_v41 }
 0x8ee   : > { %7486 = vrsqrt.f32 %v5852_v42 }
 0x8ef   : > { %7488 = vrsqrt.f32 %v5853_v2 }
 0x8f8   : > { %v7487_v44 = vpop.eup %7486 }
 0x8f9   : > { %v7489_v49 = vpop.eup %7488  ;;  %v5856_v59 = vmul.f32 %v7487_v44, %v5850_v53 }
 0x8fa   : > { %v5857_v3 = vmul.f32 %v7489_v49, %v5851_v30 }
 0x8fb   : > { %v5869_v4 = vmul.f32 %v5862_v62, %v5856_v59 }
 0x8fc   : > { %v5870_v31 = vmul.f32 %v5866_v45, %v5857_v3 }
 0x8fd   : > { %v5882_v17 = vadd.f32 %v5875_v28, %v5869_v4 }
 0x8fe   : > { %v5883_v11 = vadd.f32 %v5879_v50, %v5870_v31 }
 0x8ff   : > { %v5884_v6 = vmax.f32 %v5882_v17, 0.0 }
 0x900   : > { %v5885_v16 = vmax.f32 %v5883_v11, 0.0 }
 0x902   : > { %5989 = vmatprep.mubr.f32.mxu1 %v5885_v16 }
 0x903   : > { %5990 = vmatmul.mubr.f32.vlgmr.msra.gmra.mrb[8].mxu1 %v5884_v6 }
 0x9d6   : > { %v6747_v52 = vpop.f32.mrb[8].mxu1 }
 0x9d7   : > { %v6748_v51 = vpop.f32.mrb[9].mxu1 }
 0x9d8   : > { %v6749_v35 = vadd.f32 %v6748_v51, %v6747_v52 }
 0x9da   : > { %v5992_v47 = vadd.f32 %v6749_v35, %v6709_v22 }
 0x9dc   : > { %5996 = vst.msk [vmem:[#allocation14] sm:$0x3] %vm5995_vm13, %v5992_v47 }
 0x9dd PF: > { %p6710_p1 = scmp.ne.s32.totalorder %s7625_s24, 3 }
 0x9de   : > { %v6001_v46 = vld [vmem:[%s7943_s26] sm:$0xff] (!%p6710_p1)  ;;  %v7668_v55 = vmov (!%p6710_p1), 2   ;;  %v7669_v32 = vmov (!%p6710_p1), 1   ;;  %v6002_v23 = vld [vmem:[%s7943_s26 + $0x8] sm:$0xff] (!%p6710_p1)  ;;  %v7670_v61 = vmov (!%p6710_p1), 0   ;;  %s6003_s24 = scalar_lea.vmem (!%p6710_p1), [#allocation14], %s7621_s30 }
 0x9df   : > { %6000 = sbr.rel (%p6710_p1) target bundleno = 2784 (0xae0), region = 156  ;;  %7491 = vset.pattern.permute.xlu1 (!%p6710_p1), %v7668_v55  ;;  %7490 = vset.pattern.permute.xlu0 (!%p6710_p1), %v7669_v32  ;;  %s7671_s11 = smov (!%p6710_p1), 125   ;;  %vm6063_vm14 = vcmask (!%p6710_p1), 23552  }
 0x9e0   : > { %6044 = vperm.xlu1 (!%p6710_p1), %7491, %v6001_v46   ;;  %6024 = vperm.xlu0 (!%p6710_p1), %7490, %v6001_v46   ;;  %s7672_s26 = smov (!%p6710_p1), 122  }
 0x9e3   : > { %v6711_v1 = vld [vmem:[%s6003_s24] ss:$0 sm:$0xff] (!%p6710_p1) }
 0x9e4   : > { %6048 = vperm.xlu1 (!%p6710_p1), %7491, %v6002_v23   ;;  %6028 = vperm.xlu0 (!%p6710_p1), %7490, %v6002_v23  }
 0x9e8   : > { %7493 = vset.pattern.permute.xlu1 %v7670_v61  ;;  %7492 = vset.pattern.permute.xlu0 %v7670_v61 }
 0x9e9   : > { %6012 = vperm.xlu1 %7493, %v6002_v23   ;;  %6007 = vperm.xlu0 %7492, %v6001_v46  }
 0x9ed   : > { %7494 = vset.pattern.permute.xlu0 %v7668_v55 }
 0xa5f   : > { %v6045_v9 = vpop.permute.xlu1 %6044  ;;  %v6025_v48 = vpop.permute.xlu0 %6024 }
 0xa60   : > { %v6031_v56 = vmul.f32 %v6711_v1, %v6025_v48  ;;  %v6051_v33 = vmul.f32 %v6711_v1, %v6045_v9 }
 0xa62   : > { %6035 = vrot.lane.b32.xlu1 %v6031_v56, %s7671_s11 }
 0xa63   : > { %v6029_v54 = vpop.permute.xlu0 %6028  ;;  %v6049_v39 = vpop.permute.xlu1 %6048 }
 0xa64   : > { %v6032_v12 = vmul.f32 %v6711_v1, %v6029_v54  ;;  %v6052_v36 = vmul.f32 %v6711_v1, %v6049_v39 }
 0xa66   : > { %6055 = vrot.lane.b32.xlu1 %v6051_v33, %s7672_s26  ;;  %6037 = vrot.lane.b32.xlu0 %v6032_v12, %s7671_s11 }
 0xa68   : > { %v6008_v15 = vpop.permute.xlu0 %6007  ;;  %v6013_v25 = vpop.permute.xlu1 %6012 }
 0xa69   : > { %v6019_v19 = vmul.f32 %v6711_v1, %v6008_v15  ;;  %v6020_v57 = vmul.f32 %v6711_v1, %v6013_v25 }
 0xa6a   : > { %6057 = vrot.lane.b32.xlu0 %v6052_v36, %s7672_s26 }
 0xa6b   : > { %v6021_v58 = vadd.f32 %v6019_v19, %v6001_v46  ;;  %v6022_v60 = vadd.f32 %v6020_v57, %v6002_v23 }
 0xad4   : > { %v6036_v20 = vpop.permute.xlu1 %6035 }
 0xad5   : > { %v6041_v7 = vadd.f32 %v6036_v20, %v6021_v58 }
 0xad8   : > { %v6056_v63 = vpop.permute.xlu1 %6055  ;;  %v6038_v0 = vpop.permute.xlu0 %6037 }
 0xad9   : > { %v6061_v27 = vadd.f32 %v6056_v63, %v6041_v7  ;;  %v6042_v8 = vadd.f32 %v6038_v0, %v6022_v60 }
 0xadb   : > { %6064 = vst.msk [vmem:[%s7948_s27] sm:$0xff] %vm6063_vm14, %v6061_v27 }
 0xadc   : > { %v6058_v29 = vpop.permute.xlu0 %6057 }
 0xadd   : > { %v6062_v18 = vadd.f32 %v6058_v29, %v6042_v8 }
 0xadf   : > { %6065 = vst.msk [vmem:[%s7948_s27 + $0x8] sm:$0xff] %vm6063_vm14, %v6062_v18 }
 0xae0 PF: > { %s8818_s30 = sld [smem:[#allocation22_spill]]  ;;  %s8819_s4 = smov %s7629_s25 }
 0xae1   : > { %s8821_s24 = smov %s7637_s1  ;;  %s8822_s25 = smov %s8826_s2 }
 0xae2   : > { %s8824_s1 = smov %s8832_s3 }
 0xae6   : > { %s35_s26 = sadd.s32 1, %s8818_s30   ;;  %s8820_s30 = smov %s7633_s5 }
 0xae7   : > { %p32_p4 = scmp.ge.s32.totalorder %s35_s26, 18   ;;  %s8823_s5 = smov %s7896_s16 }
 0xae9   :  { %34 = sbr.rel (!%p32_p4) target bundleno = 25 (0x19), region = 190 }
 0xaf0   :  { %6096 = vsyncpa [#allocation16], 1 }
 0xaf1   :  { %6098 = vsyncpa [#allocation16 + $0x1], 1 }
 0xaf2   :  { %6099 = vsyncpa [#allocation18], 1 }

</bundles_post_ra>
